<compile_context>
chip_gen: v5e
topology: v5e:2x2
jax: 0.10.0
libtpu: 0.0.40
codegen_flags: <defaults>
</compile_context>

<pallas_src>
import functools

import jax
import jax.numpy as jnp
from jax.experimental import pallas as pl
from jax.experimental.pallas import tpu as pltpu

_LANE = 128          # lane width / padding granularity for feature dims
_SUB = 16            # row-tile granularity (bf16 sublane packing)
_NEG_BIG = -1.0e30   # bias for padded class columns -> softmax weight exactly 0
_TM_CAP = 512        # past ~512 rows the f32 activation chain spills vregs


def _round_up(n, m):
    return ((n + m - 1) // m) * m


# ----------------------------------------------------------------------------
# Kernel
# ----------------------------------------------------------------------------
def _guesser_kernel(x_ref, a_ref,
                    w1_ref, b1_ref,
                    w2_ref, b2_ref,
                    w3_ref, b3_ref,
                    w4_ref, b4_ref,
                    o_ref):
    """All four linear layers + PReLUs + softmax, fused in one kernel.

    x_ref: (tm, F) bf16 tile.  Weights: bf16, lane-dense (padded to 128).
    Biases, PReLU slopes and all elementwise math: f32.  Output: bf16.
    """

    def prelu(h, a):
        # PReLU with one shared slope: cmp + mul + select (3 VALU ops).
        return jnp.where(h > 0.0, h, a * h)

    x = x_ref[...]                                                      # (tm, F)   bf16

    h1 = jnp.dot(x, w1_ref[...], preferred_element_type=jnp.float32)   # (tm, H1p) f32
    h1 = prelu(h1 + b1_ref[...], a_ref[0, 0])

    h2 = jnp.dot(h1.astype(jnp.bfloat16), w2_ref[...],
                 preferred_element_type=jnp.float32)                   # (tm, H2p) f32
    h2 = prelu(h2 + b2_ref[...], a_ref[0, 1])

    h3 = jnp.dot(h2.astype(jnp.bfloat16), w3_ref[...],
                 preferred_element_type=jnp.float32)                   # (tm, H2p) f32
    h3 = prelu(h3 + b3_ref[...], a_ref[0, 2])

    logits = jnp.dot(h3.astype(jnp.bfloat16), w4_ref[...],
                     preferred_element_type=jnp.float32) + b4_ref[...]  # (tm, Cp) f32

    # Softmax over the lane-dense (128-wide) class axis.  Padded class columns
    # carry a -1e30 f32 bias, so exp(logit - max) == 0 there exactly.
    m = jnp.max(logits, axis=-1, keepdims=True)
    e = jnp.exp(logits - m)
    s = jnp.sum(e, axis=-1, keepdims=True)
    inv = pl.reciprocal(s, approx=True)        # EUP slot; removes the VALU divide
    o_ref[...] = (e * inv).astype(o_ref.dtype)


# ----------------------------------------------------------------------------
# One-time parameter prep (hoisted out of the per-call path)
# ----------------------------------------------------------------------------
def prepare_params(params):
    """Pad to lane-dense shapes, cast weights to bf16, pack PReLU slopes.

    Call once after the parameters are created / updated; the result is passed
    to `guesser_forward` so no padding / casting runs per forward call.
    """
    F, H1 = params["w1"].shape
    H2 = params["w2"].shape[1]
    C = params["w4"].shape[1]
    H1p, H2p, Cp = (_round_up(d, _LANE) for d in (H1, H2, C))

    def pad_to(a, shape, fill=0.0):
        pads = [(0, t - s) for s, t in zip(a.shape, shape)]
        return jnp.pad(a, pads, constant_values=fill)

    return dict(
        w1=pad_to(params["w1"], (F, H1p)).astype(jnp.bfloat16),
        b1=pad_to(params["b1"], (1, H1p)).astype(jnp.float32),
        w2=pad_to(params["w2"], (H1p, H2p)).astype(jnp.bfloat16),
        b2=pad_to(params["b2"], (1, H2p)).astype(jnp.float32),
        w3=pad_to(params["w3"], (H2p, H2p)).astype(jnp.bfloat16),
        b3=pad_to(params["b3"], (1, H2p)).astype(jnp.float32),
        w4=pad_to(params["w4"], (H2p, Cp)).astype(jnp.bfloat16),
        # f32 -1e30 bias on padded class columns keeps their softmax weight 0.
        b4=pad_to(params["b4"], (1, Cp), fill=_NEG_BIG).astype(jnp.float32),
        # All three PReLU slopes in one small SMEM operand.
        slopes=jnp.stack([params["a1"].reshape(()),
                          params["a2"].reshape(()),
                          params["a3"].reshape(())]).reshape(1, 3).astype(jnp.float32),
    )


# ----------------------------------------------------------------------------
# Tile-size heuristic (per TPU generation)
# ----------------------------------------------------------------------------
def _num_tensorcores():
    """2 for megacore / dual-TC chips (v4, v5p, v7x), else 1. Perf-only hint."""
    try:
        dev = jax.devices()[0]
        nc = getattr(dev, "num_cores", None)
        if isinstance(nc, int) and nc > 0:
            return min(int(nc), 2)
        kind = str(getattr(dev, "device_kind", "")).lower()
        if any(t in kind for t in ("7x", "v7", "v4", "v5p")):
            return 2
    except Exception:
        pass
    return 1


def _choose_tm(batch):
    """Single-TC: one big block (grid=1). Dual-TC: even split over both cores."""
    n_cores = _num_tensorcores()
    per_core = -(-batch // n_cores)
    tm = _round_up(max(per_core, _SUB), _SUB)
    return min(tm, _TM_CAP)


# ----------------------------------------------------------------------------
# Forward wrapper
# ----------------------------------------------------------------------------
@functools.partial(jax.jit, static_argnames=("num_classes", "tm"))
def guesser_forward(x, prepped, *, num_classes, tm):
    """Fused Guesser forward. x: (B, F) f32. Returns probs: (B, num_classes) f32."""
    B, F = x.shape
    H1p = prepped["w1"].shape[1]
    H2p = prepped["w2"].shape[1]
    Cp = prepped["w4"].shape[1]

    # Batch padding so the grid tiles evenly (handles any B).
    n_blocks = pl.cdiv(B, tm)
    Bp = n_blocks * tm
    xk = x.astype(jnp.bfloat16)
    if Bp != B:
        xk = jnp.pad(xk, ((0, Bp - B), (0, 0)))

    # Full-extent constant-index blocks for the parameters: fetched once and
    # kept resident in VMEM across grid steps (block index never changes, so
    # the pipeline skips the re-DMA).
    # TODO(synk): if hidden dims ever scale into the 1K-4K range, re-derive the
    # VMEM budget for v7x (64 MiB), set vmem_limit_bytes and tile the K dim.
    def fixed(shape):
        return pl.BlockSpec(shape, lambda i: tuple(0 for _ in shape))

    smem = pl.BlockSpec(memory_space=pltpu.MemorySpace.SMEM)

    probs_padded = pl.pallas_call(
        _guesser_kernel,
        out_shape=jax.ShapeDtypeStruct((Bp, Cp), jnp.bfloat16),
        grid_spec=pltpu.PrefetchScalarGridSpec(
            num_scalar_prefetch=0,
            grid=(n_blocks,),
            in_specs=[
                pl.BlockSpec((tm, F), lambda i: (i, 0)),   # x tile
                smem,                                      # PReLU slopes (1, 3)
                fixed((F, H1p)), fixed((1, H1p)),
                fixed((H1p, H2p)), fixed((1, H2p)),
                fixed((H2p, H2p)), fixed((1, H2p)),
                fixed((H2p, Cp)), fixed((1, Cp)),
            ],
            out_specs=pl.BlockSpec((tm, Cp), lambda i: (i, 0)),
        ),
        compiler_params=pltpu.CompilerParams(
            dimension_semantics=("parallel",)),
    )(xk, prepped["slopes"],
      prepped["w1"], prepped["b1"], prepped["w2"], prepped["b2"],
      prepped["w3"], prepped["b3"], prepped["w4"], prepped["b4"])

    # Drop batch padding + zero-probability padded class columns; back to f32.
    return probs_padded[:B, :num_classes].astype(jnp.float32)


# ----------------------------------------------------------------------------
# Synthetic parameters + pure-JAX reference
# ----------------------------------------------------------------------------
def init_params(key, features_size, hidden_dim1, hidden_dim2, num_classes):
    """Deterministic synthetic parameters (shapes match Guesser.__init__)."""
    ks = jax.random.split(key, 8)

    def lin(kw, kb, fan_in, fan_out):
        bound = 1.0 / jnp.sqrt(fan_in)
        w = jax.random.uniform(kw, (fan_in, fan_out), jnp.float32, -bound, bound)
        b = jax.random.uniform(kb, (1, fan_out), jnp.float32, -bound, bound)
        return w, b

    w1, b1 = lin(ks[0], ks[1], features_size, hidden_dim1)
    w2, b2 = lin(ks[2], ks[3], hidden_dim1, hidden_dim2)
    w3, b3 = lin(ks[4], ks[5], hidden_dim2, hidden_dim2)
    w4, b4 = lin(ks[6], ks[7], hidden_dim2, num_classes)
    prelu_init = jnp.full((1, 1), 0.25, jnp.float32)  # nn.PReLU() default
    return dict(w1=w1, b1=b1, a1=prelu_init,
                w2=w2, b2=b2, a2=prelu_init,
                w3=w3, b3=b3, a3=prelu_init,
                w4=w4, b4=b4)


def reference_forward(x, p):
    """Plain-JAX f32 reference for correctness checking."""
    def prelu(h, a):
        return jnp.maximum(h, 0.0) + a * jnp.minimum(h, 0.0)
    h = prelu(x @ p["w1"] + p["b1"], p["a1"][0, 0])
    h = prelu(h @ p["w2"] + p["b2"], p["a2"][0, 0])
    h = prelu(h @ p["w3"] + p["b3"], p["a3"][0, 0])
    logits = h @ p["w4"] + p["b4"]
    return jax.nn.softmax(logits, axis=-1)


# TODO(synk): the BERT text model, ImageEmbedder (ResNet-50), diabetes dataset
# loading / class balancing, loss and optimizer in Guesser.__init__ are not
# part of forward() and are not translated here.

if __name__ == "__main__":
    # Small shapes consistent with the module: tabular diabetes features,
    # two hidden layers, binary classification.
    BATCH = 500            # not a multiple of the tile -> exercises batch padding
    FEATURES_SIZE = 16     # self.features_size (tabular feature count)
    HIDDEN_DIM1 = 64       # FLAGS.hidden_dim1
    HIDDEN_DIM2 = 32       # FLAGS.hidden_dim2
    NUM_CLASSES = 2

    key = jax.random.PRNGKey(0)
    kx, kp = jax.random.split(key)
    x = jax.random.normal(kx, (BATCH, FEATURES_SIZE), jnp.float32)
    params = init_params(kp, FEATURES_SIZE, HIDDEN_DIM1, HIDDEN_DIM2, NUM_CLASSES)

    # One-time prep (padding / bf16 cast / slope packing) -- not per call.
    prepped = prepare_params(params)
    tm = _choose_tm(BATCH)   # grid=(1,) on single-TC chips, even 2-way on v7x

    probs = guesser_forward(x, prepped, num_classes=NUM_CLASSES, tm=tm)
    probs = jax.block_until_ready(probs)

    ref = reference_forward(x, params)
    assert probs.shape == (BATCH, NUM_CLASSES)
    # bf16 output + approx-EUP reciprocal -> rows sum to 1 within ~1e-2.
    assert jnp.allclose(jnp.sum(probs, axis=-1), 1.0, atol=1e-2)
    # bf16 MXU operands, bf16 output store, approx reciprocal -> loose tolerance.
    assert jnp.allclose(probs, ref, atol=3e-2, rtol=3e-2), (
        float(jnp.max(jnp.abs(probs - ref))))

    print("KERNEL_OK")
</pallas_src>

<mosaic_0001>
module attributes {stable_mosaic.version = 11 : i64} {
  func.func @_guesser_kernel(%arg0: i32, %arg1: memref<512x16xbf16, #tpu.memory_space<vmem>>, %arg2: memref<1x3xf32, #tpu.memory_space<smem>>, %arg3: memref<16x128xbf16, #tpu.memory_space<vmem>>, %arg4: memref<1x128xf32, #tpu.memory_space<vmem>>, %arg5: memref<128x128xbf16, #tpu.memory_space<vmem>>, %arg6: memref<1x128xf32, #tpu.memory_space<vmem>>, %arg7: memref<128x128xbf16, #tpu.memory_space<vmem>>, %arg8: memref<1x128xf32, #tpu.memory_space<vmem>>, %arg9: memref<128x128xbf16, #tpu.memory_space<vmem>>, %arg10: memref<1x128xf32, #tpu.memory_space<vmem>>, %arg11: memref<512x128xbf16, #tpu.memory_space<vmem>>) attributes {dimension_semantics = [#tpu.dimension_semantics<parallel>], iteration_bounds = array<i64: 1>, scalar_prefetch = 0 : i64, scratch_operands = 0 : i64, tpu.core_type = #tpu.core_type<tc>, window_params = [{transform_indices = @transform_0, window_bounds = array<i64: 512, 16>}, {transform_indices = @transform_1, window_bounds = array<i64: 1, 3>}, {pipeline_mode = #tpu.pipeline_mode<synchronous>, transform_indices = @transform_2, window_bounds = array<i64: 16, 128>}, {pipeline_mode = #tpu.pipeline_mode<synchronous>, transform_indices = @transform_3, window_bounds = array<i64: 1, 128>}, {pipeline_mode = #tpu.pipeline_mode<synchronous>, transform_indices = @transform_4, window_bounds = array<i64: 128, 128>}, {pipeline_mode = #tpu.pipeline_mode<synchronous>, transform_indices = @transform_5, window_bounds = array<i64: 1, 128>}, {pipeline_mode = #tpu.pipeline_mode<synchronous>, transform_indices = @transform_6, window_bounds = array<i64: 128, 128>}, {pipeline_mode = #tpu.pipeline_mode<synchronous>, transform_indices = @transform_7, window_bounds = array<i64: 1, 128>}, {pipeline_mode = #tpu.pipeline_mode<synchronous>, transform_indices = @transform_8, window_bounds = array<i64: 128, 128>}, {pipeline_mode = #tpu.pipeline_mode<synchronous>, transform_indices = @transform_9, window_bounds = array<i64: 1, 128>}, {transform_indices = @transform_10, window_bounds = array<i64: 512, 128>}]} {
    %c0 = arith.constant 0 : index
    %c0_0 = arith.constant 0 : index
    %0 = vector.load %arg1[%c0, %c0_0] : memref<512x16xbf16, #tpu.memory_space<vmem>>, vector<512x16xbf16>
    %c0_1 = arith.constant 0 : index
    %c0_2 = arith.constant 0 : index
    %1 = vector.load %arg3[%c0_1, %c0_2] : memref<16x128xbf16, #tpu.memory_space<vmem>>, vector<16x128xbf16>
    %cst = arith.constant dense<0.000000e+00> : vector<512x128xf32>
    %2 = tpu.matmul %0, %1, %cst {dimension_numbers = #tpu.dot_dimension_numbers<[1], [0], [0], [1], [0, 0, 1, 1], [], []>} : vector<512x16xbf16>, vector<16x128xbf16>, vector<512x128xf32> -> vector<512x128xf32>
    %c0_3 = arith.constant 0 : index
    %c0_4 = arith.constant 0 : index
    %3 = vector.load %arg4[%c0_3, %c0_4] : memref<1x128xf32, #tpu.memory_space<vmem>>, vector<1x128xf32>
    %4 = vector.broadcast %3 : vector<1x128xf32> to vector<512x128xf32>
    %5 = arith.addf %2, %4 : vector<512x128xf32>
    %c0_5 = arith.constant 0 : index
    %c0_6 = arith.constant 0 : index
    %6 = memref.load %arg2[%c0_5, %c0_6] : memref<1x3xf32, #tpu.memory_space<smem>>
    %cst_7 = arith.constant 0.000000e+00 : f32
    %7 = vector.broadcast %cst_7 : f32 to vector<512x128xf32>
    %8 = arith.cmpf ogt, %5, %7 : vector<512x128xf32>
    %9 = vector.broadcast %6 : f32 to vector<512x128xf32>
    %10 = arith.mulf %9, %5 : vector<512x128xf32>
    %11 = arith.select %8, %5, %10 : vector<512x128xi1>, vector<512x128xf32>
    %12 = arith.truncf %11 : vector<512x128xf32> to vector<512x128xbf16>
    %c0_8 = arith.constant 0 : index
    %c0_9 = arith.constant 0 : index
    %13 = vector.load %arg5[%c0_8, %c0_9] : memref<128x128xbf16, #tpu.memory_space<vmem>>, vector<128x128xbf16>
    %cst_10 = arith.constant dense<0.000000e+00> : vector<512x128xf32>
    %14 = tpu.matmul %12, %13, %cst_10 {dimension_numbers = #tpu.dot_dimension_numbers<[1], [0], [0], [1], [0, 0, 1, 1], [], []>} : vector<512x128xbf16>, vector<128x128xbf16>, vector<512x128xf32> -> vector<512x128xf32>
    %c0_11 = arith.constant 0 : index
    %c0_12 = arith.constant 0 : index
    %15 = vector.load %arg6[%c0_11, %c0_12] : memref<1x128xf32, #tpu.memory_space<vmem>>, vector<1x128xf32>
    %16 = vector.broadcast %15 : vector<1x128xf32> to vector<512x128xf32>
    %17 = arith.addf %14, %16 : vector<512x128xf32>
    %c0_13 = arith.constant 0 : index
    %c1 = arith.constant 1 : index
    %18 = memref.load %arg2[%c0_13, %c1] : memref<1x3xf32, #tpu.memory_space<smem>>
    %cst_14 = arith.constant 0.000000e+00 : f32
    %19 = vector.broadcast %cst_14 : f32 to vector<512x128xf32>
    %20 = arith.cmpf ogt, %17, %19 : vector<512x128xf32>
    %21 = vector.broadcast %18 : f32 to vector<512x128xf32>
    %22 = arith.mulf %21, %17 : vector<512x128xf32>
    %23 = arith.select %20, %17, %22 : vector<512x128xi1>, vector<512x128xf32>
    %24 = arith.truncf %23 : vector<512x128xf32> to vector<512x128xbf16>
    %c0_15 = arith.constant 0 : index
    %c0_16 = arith.constant 0 : index
    %25 = vector.load %arg7[%c0_15, %c0_16] : memref<128x128xbf16, #tpu.memory_space<vmem>>, vector<128x128xbf16>
    %cst_17 = arith.constant dense<0.000000e+00> : vector<512x128xf32>
    %26 = tpu.matmul %24, %25, %cst_17 {dimension_numbers = #tpu.dot_dimension_numbers<[1], [0], [0], [1], [0, 0, 1, 1], [], []>} : vector<512x128xbf16>, vector<128x128xbf16>, vector<512x128xf32> -> vector<512x128xf32>
    %c0_18 = arith.constant 0 : index
    %c0_19 = arith.constant 0 : index
    %27 = vector.load %arg8[%c0_18, %c0_19] : memref<1x128xf32, #tpu.memory_space<vmem>>, vector<1x128xf32>
    %28 = vector.broadcast %27 : vector<1x128xf32> to vector<512x128xf32>
    %29 = arith.addf %26, %28 : vector<512x128xf32>
    %c0_20 = arith.constant 0 : index
    %c2 = arith.constant 2 : index
    %30 = memref.load %arg2[%c0_20, %c2] : memref<1x3xf32, #tpu.memory_space<smem>>
    %cst_21 = arith.constant 0.000000e+00 : f32
    %31 = vector.broadcast %cst_21 : f32 to vector<512x128xf32>
    %32 = arith.cmpf ogt, %29, %31 : vector<512x128xf32>
    %33 = vector.broadcast %30 : f32 to vector<512x128xf32>
    %34 = arith.mulf %33, %29 : vector<512x128xf32>
    %35 = arith.select %32, %29, %34 : vector<512x128xi1>, vector<512x128xf32>
    %36 = arith.truncf %35 : vector<512x128xf32> to vector<512x128xbf16>
    %c0_22 = arith.constant 0 : index
    %c0_23 = arith.constant 0 : index
    %37 = vector.load %arg9[%c0_22, %c0_23] : memref<128x128xbf16, #tpu.memory_space<vmem>>, vector<128x128xbf16>
    %cst_24 = arith.constant dense<0.000000e+00> : vector<512x128xf32>
    %38 = tpu.matmul %36, %37, %cst_24 {dimension_numbers = #tpu.dot_dimension_numbers<[1], [0], [0], [1], [0, 0, 1, 1], [], []>} : vector<512x128xbf16>, vector<128x128xbf16>, vector<512x128xf32> -> vector<512x128xf32>
    %c0_25 = arith.constant 0 : index
    %c0_26 = arith.constant 0 : index
    %39 = vector.load %arg10[%c0_25, %c0_26] : memref<1x128xf32, #tpu.memory_space<vmem>>, vector<1x128xf32>
    %40 = vector.broadcast %39 : vector<1x128xf32> to vector<512x128xf32>
    %41 = arith.addf %38, %40 : vector<512x128xf32>
    %cst_27 = arith.constant dense<0xFF800000> : vector<512xf32>
    %42 = vector.multi_reduction <maximumf>, %41, %cst_27 [1] : vector<512x128xf32> to vector<512xf32>
    %43 = vector.shape_cast %42 : vector<512xf32> to vector<512x1xf32>
    %44 = vector.broadcast %43 : vector<512x1xf32> to vector<512x128xf32>
    %45 = arith.subf %41, %44 : vector<512x128xf32>
    %46 = math.exp %45 : vector<512x128xf32>
    %cst_28 = arith.constant dense<0.000000e+00> : vector<512xf32>
    %47 = vector.multi_reduction <add>, %46, %cst_28 [1] : vector<512x128xf32> to vector<512xf32>
    %48 = vector.shape_cast %47 : vector<512xf32> to vector<512x1xf32>
    %49 = tpu.reciprocal %48 {approx = true} : vector<512x1xf32> -> vector<512x1xf32>
    %50 = vector.broadcast %49 : vector<512x1xf32> to vector<512x128xf32>
    %51 = arith.mulf %46, %50 : vector<512x128xf32>
    %52 = arith.truncf %51 : vector<512x128xf32> to vector<512x128xbf16>
    %c0_29 = arith.constant 0 : index
    %c0_30 = arith.constant 0 : index
    %53 = vector.load %arg11[%c0_29, %c0_30] : memref<512x128xbf16, #tpu.memory_space<vmem>>, vector<512x128xbf16>
    tpu.vector_store %arg11[%c0_29, %c0_30], %52 {strides = array<i32>} : memref<512x128xbf16, #tpu.memory_space<vmem>>, vector<512x128xbf16>,
    return
  }
  func.func @transform_0(%arg0: i32) -> (i32, i32) {
    %c0_i32 = arith.constant 0 : i32
    %c0_i32_0 = arith.constant 0 : i32
    return %arg0, %c0_i32 : i32, i32
  }
  func.func @transform_1(%arg0: i32) -> (i32, i32) {
    %c0_i32 = arith.constant 0 : i32
    %c0_i32_0 = arith.constant 0 : i32
    %c0_i32_1 = arith.constant 0 : i32
    return %c0_i32, %c0_i32_0 : i32, i32
  }
  func.func @transform_2(%arg0: i32) -> (i32, i32) {
    %c0_i32 = arith.constant 0 : i32
    %c0_i32_0 = arith.constant 0 : i32
    %c0_i32_1 = arith.constant 0 : i32
    return %c0_i32, %c0_i32_0 : i32, i32
  }
  func.func @transform_3(%arg0: i32) -> (i32, i32) {
    %c0_i32 = arith.constant 0 : i32
    %c0_i32_0 = arith.constant 0 : i32
    %c0_i32_1 = arith.constant 0 : i32
    return %c0_i32, %c0_i32_0 : i32, i32
  }
  func.func @transform_4(%arg0: i32) -> (i32, i32) {
    %c0_i32 = arith.constant 0 : i32
    %c0_i32_0 = arith.constant 0 : i32
    %c0_i32_1 = arith.constant 0 : i32
    return %c0_i32, %c0_i32_0 : i32, i32
  }
  func.func @transform_5(%arg0: i32) -> (i32, i32) {
    %c0_i32 = arith.constant 0 : i32
    %c0_i32_0 = arith.constant 0 : i32
    %c0_i32_1 = arith.constant 0 : i32
    return %c0_i32, %c0_i32_0 : i32, i32
  }
  func.func @transform_6(%arg0: i32) -> (i32, i32) {
    %c0_i32 = arith.constant 0 : i32
    %c0_i32_0 = arith.constant 0 : i32
    %c0_i32_1 = arith.constant 0 : i32
    return %c0_i32, %c0_i32_0 : i32, i32
  }
  func.func @transform_7(%arg0: i32) -> (i32, i32) {
    %c0_i32 = arith.constant 0 : i32
    %c0_i32_0 = arith.constant 0 : i32
    %c0_i32_1 = arith.constant 0 : i32
    return %c0_i32, %c0_i32_0 : i32, i32
  }
  func.func @transform_8(%arg0: i32) -> (i32, i32) {
    %c0_i32 = arith.constant 0 : i32
    %c0_i32_0 = arith.constant 0 : i32
    %c0_i32_1 = arith.constant 0 : i32
    return %c0_i32, %c0_i32_0 : i32, i32
  }
  func.func @transform_9(%arg0: i32) -> (i32, i32) {
    %c0_i32 = arith.constant 0 : i32
    %c0_i32_0 = arith.constant 0 : i32
    %c0_i32_1 = arith.constant 0 : i32
    return %c0_i32, %c0_i32_0 : i32, i32
  }
  func.func @transform_10(%arg0: i32) -> (i32, i32) {
    %c0_i32 = arith.constant 0 : i32
    %c0_i32_0 = arith.constant 0 : i32
    return %arg0, %c0_i32 : i32, i32
  }
}

</mosaic_0001>

<bundles_post_ra>
// kernel: guesser_forward.1
= control target key start
LH: loop header
LB: loop body
LE: loop exit
PB: predicated region body
PF: predicated region fallthrough
CT: control target
= control target key end

     0   :  { %15 = vsyncpa [#allocation3], 0  ;;  %s3441_s16 = smov [#allocation2]   ;;  %s4820_s0 = inlined_call_operand.vmem [shape: bf16[512,16], index: 0, kind: input, shape index: {}]   ;;  %s4821_s1 = inlined_call_operand.vmem [shape: f32[1,3], index: 1, kind: input, shape index: {}]   ;;  %s4822_s2 = inlined_call_operand.vmem [shape: bf16[16,128], index: 2, kind: input, shape index: {}]   ;;  %s4823_s3 = inlined_call_operand.vmem [shape: f32[1,128], index: 3, kind: input, shape index: {}]   ;;  %s4824_s4 = inlined_call_operand.vmem [shape: bf16[128,128], index: 4, kind: input, shape index: {}]   ;;  %s4825_s5 = inlined_call_operand.vmem [shape: f32[1,128], index: 5, kind: input, shape index: {}]   ;;  %s4826_s6 = inlined_call_operand.vmem [shape: bf16[128,128], index: 6, kind: input, shape index: {}]   ;;  %s4827_s7 = inlined_call_operand.vmem [shape: f32[1,128], index: 7, kind: input, shape index: {}]   ;;  %s4828_s8 = inlined_call_operand.vmem [shape: bf16[128,128], index: 8, kind: input, shape index: {}]   ;;  %s4829_s9 = inlined_call_operand.vmem [shape: f32[1,128], index: 9, kind: input, shape index: {}]   ;;  %s4830_s10 = inlined_call_operand.vmem [shape: bf16[512,128], index: 10, kind: output, shape index: {}]  }
   0x1   :  { %s23_s15 = sshll.u32 %s4821_s1, 4  ;;  %s24_s15 = int_to_ptr.vmem [resolvable:$true] %s23_s15 }
   0x2   :  { %26 = dma.vmem_to_smem %s24_s15, 16, %s3441_s16, [#allocation3]  }
   0x3   :  { %3439 = dma.done.wait [#allocation3], 16  }
   0x4   :  { %3440 = vsyncadd [#allocation3], 4294967280 }
   0x5   :  { %47 = sfence }
   0x6   :  { %v2943_v0 = vld [vmem:[%s4822_s2] sm:$0xff]  ;;  %vm285_vm0 = vcmask 130048   ;;  %v2912_v2 = vld [vmem:[%s4820_s0 + $0x8] sm:$0xff]  ;;  %v2913_v3 = vld [vmem:[%s4820_s0 + $0x10] sm:$0xff]  ;;  %s551_s27 = sld [smem:[#allocation2]] }
   0x7   :  { %v2911_v1 = vld [vmem:[%s4820_s0] sm:$0xff]  ;;  %389 = vmatpush.bf16.msra.mxu0 %v2943_v0  ;;  %v2914_v4 = vld [vmem:[%s4820_s0 + $0x18] sm:$0xff]  ;;  %v2916_v7 = vld [vmem:[%s4820_s0 + $0x28] sm:$0xff] }
   0x8   :  { %v2915_v5 = vld [vmem:[%s4820_s0 + $0x20] sm:$0xff]  ;;  %v2951_v6 = vld [vmem:[%s4824_s4 + $0x38] sm:$0xff]  ;;  %v2950_v8 = vld [vmem:[%s4824_s4 + $0x30] sm:$0xff] }
   0x9   :  { %845 = vmatpush.bf16.msra.mxu1 %v2951_v6  ;;  %v2949_v9 = vld [vmem:[%s4824_s4 + $0x28] sm:$0xff]  ;;  %v2948_v10 = vld [vmem:[%s4824_s4 + $0x20] sm:$0xff]  ;;  %v2917_v11 = vld [vmem:[%s4820_s0 + $0x30] sm:$0xff] }
   0xa   :  { %2781 = vmatmul.msk.bf16.vlgmr.msra.gmra.mxu0 %vm285_vm0, %v2911_v1  ;;  %v2947_v12 = vld [vmem:[%s4824_s4 + $0x18] sm:$0xff]  ;;  %v2946_v13 = vld [vmem:[%s4824_s4 + $0x10] sm:$0xff]  ;;  %v2945_v14 = vld [vmem:[%s4824_s4 + $0x8] sm:$0xff] }
   0xb   :  { %v2944_v15 = vld [vmem:[%s4824_s4] sm:$0xff]  ;;  %v2918_v16 = vld [vmem:[%s4820_s0 + $0x38] sm:$0xff]  ;;  %v2920_v29 = vld [vmem:[%s4820_s0 + $0x48] sm:$0xff] }
   0xc   :  { %v2919_v17 = vld [vmem:[%s4820_s0 + $0x40] sm:$0xff]  ;;  %v3569_v21 = vstv %s551_s27  ;;  %v2921_v39 = vld [vmem:[%s4820_s0 + $0x50] sm:$0xff]  ;;  %v2922_v49 = vld [vmem:[%s4820_s0 + $0x58] sm:$0xff] }
   0xd   :  { %846 = vmatpush.bf16.msra.mxu1 %v2950_v8  ;;  %v3565_v19 = vld [vmem:[%s4823_s3] ss:$0 sm:$0xff] }
   0xe   :  { %v2923_v59 = vld [vmem:[%s4820_s0 + $0x60] sm:$0xff] }
  0x11   :  { %847 = vmatpush.bf16.msra.mxu1 %v2949_v9 }
  0x15   :  { %848 = vmatpush.bf16.msra.mxu1 %v2948_v10 }
  0x19   :  { %849 = vmatpush.bf16.msra.mxu1 %v2947_v12  ;;  %v2959_v12 = vld [vmem:[%s4826_s6 + $0x38] sm:$0xff] }
  0x1a   :  { %2782 = vmatmul.msk.bf16.gmra.mxu0 %vm285_vm0, %v2912_v2  ;;  %1308 = vmatpush.bf16.msra.mxu2 %v2959_v12 }
  0x1d   :  { %850 = vmatpush.bf16.msra.mxu1 %v2946_v13 }
  0x21   :  { %851 = vmatpush.bf16.msra.mxu1 %v2945_v14 }
  0x25   :  { %852 = vmatpush.bf16.msra.mxu1 %v2944_v15 }
  0x2a   :  { %2783 = vmatmul.msk.bf16.gmra.mxu0 %vm285_vm0, %v2913_v3 }
  0x3a   :  { %2784 = vmatmul.msk.bf16.gmra.mxu0 %vm285_vm0, %v2914_v4 }
  0x4a   :  { %2785 = vmatmul.msk.bf16.gmra.mxu0 %vm285_vm0, %v2915_v5  ;;  %v2924_v5 = vld [vmem:[%s4820_s0 + $0x68] sm:$0xff] }
  0x5a   :  { %2786 = vmatmul.msk.bf16.gmra.mxu0 %vm285_vm0, %v2916_v7 }
  0x6a   :  { %2787 = vmatmul.msk.bf16.gmra.mxu0 %vm285_vm0, %v2917_v11 }
  0x7a   :  { %2788 = vmatmul.msk.bf16.gmra.mxu0 %vm285_vm0, %v2918_v16  ;;  %v2925_v16 = vld [vmem:[%s4820_s0 + $0x70] sm:$0xff] }
  0x87   :  { %v391_v18 = vpop.f32.mrf.mxu0 }
  0x88   :  { %v392_v20 = vadd.f32 %v3565_v19, %v391_v18  ;;  %v2958_v18 = vld [vmem:[%s4826_s6 + $0x30] sm:$0xff] }
  0x89   :  { %1309 = vmatpush.bf16.msra.mxu2 %v2958_v18 }
  0x8a   :  { %2789 = vmatmul.msk.bf16.gmra.mxu0 %vm285_vm0, %v2919_v17  ;;  %v617_v23 = vmul.f32 %v3569_v21, %v392_v20  ;;  %vm552_vm1 = vcmp.gt.f32.partialorder %v392_v20, 0.0 }
  0x8c   :  { %v681_v26 = vsel %vm552_vm1, %v392_v20, %v617_v23  ;;  %v2957_v20 = vld [vmem:[%s4826_s6 + $0x28] sm:$0xff] }
  0x8d   :  { %1310 = vmatpush.bf16.msra.mxu2 %v2957_v20 }
  0x8f   :  { %v393_v22 = vpop.f32.mrf.mxu0 }
  0x90   :  { %v394_v24 = vadd.f32 %v3565_v19, %v393_v22 }
  0x92   :  { %v618_v25 = vmul.f32 %v3569_v21, %v394_v24  ;;  %vm553_vm2 = vcmp.gt.f32.partialorder %v394_v24, 0.0 }
  0x94   :  { %v682_v27 = vsel %vm553_vm2, %v394_v24, %v618_v25  ;;  %v2956_v24 = vld [vmem:[%s4826_s6 + $0x20] sm:$0xff] }
  0x95   :  { %v745_v28 = vpack.c.bf16 %v682_v27, %v681_v26  ;;  %1311 = vmatpush.bf16.msra.mxu2 %v2956_v24 }
  0x97   :  { %v396_v30 = vpop.f32.mrf.mxu0  ;;  %853 = vmatmul.bf16.vlgmr.msra.gmra.mxu1 %v745_v28  ;;  %v2955_v28 = vld [vmem:[%s4826_s6 + $0x18] sm:$0xff] }
  0x98   :  { %v397_v31 = vadd.f32 %v3565_v19, %v396_v30 }
  0x99   :  { %1312 = vmatpush.bf16.msra.mxu2 %v2955_v28 }
  0x9a   :  { %2790 = vmatmul.msk.bf16.gmra.mxu0 %vm285_vm0, %v2920_v29  ;;  %v619_v33 = vmul.f32 %v3569_v21, %v397_v31  ;;  %vm554_vm3 = vcmp.gt.f32.partialorder %v397_v31, 0.0 }
  0x9c   :  { %v683_v36 = vsel %vm554_vm3, %v397_v31, %v619_v33 }
  0x9f   :  { %v398_v32 = vpop.f32.mrf.mxu0 }
  0xa0   :  { %v399_v34 = vadd.f32 %v3565_v19, %v398_v32  ;;  %v2926_v32 = vld [vmem:[%s4820_s0 + $0x78] sm:$0xff] }
  0xa2   :  { %v620_v35 = vmul.f32 %v3569_v21, %v399_v34  ;;  %vm555_vm4 = vcmp.gt.f32.partialorder %v399_v34, 0.0 }
  0xa4   :  { %v684_v37 = vsel %vm555_vm4, %v399_v34, %v620_v35  ;;  %v2954_v34 = vld [vmem:[%s4826_s6 + $0x10] sm:$0xff]  ;;  %v2953_v35 = vld [vmem:[%s4826_s6 + $0x8] sm:$0xff] }
  0xa5   :  { %v746_v38 = vpack.c.bf16 %v684_v37, %v683_v36  ;;  %1313 = vmatpush.bf16.msra.mxu2 %v2954_v34  ;;  %v2930_v34 = vld [vmem:[%s4820_s0 + $0x98] sm:$0xff] }
  0xa7   :  { %v401_v40 = vpop.f32.mrf.mxu0  ;;  %858 = vmatmul.bf16.gmra.mxu1 %v746_v38  ;;  %v2952_v38 = vld [vmem:[%s4826_s6] sm:$0xff]  ;;  %s2845_s6 = sld [smem:[#allocation2 + $0x1]] }
  0xa8   :  { %v402_v41 = vadd.f32 %v3565_v19, %v401_v40 }
  0xa9   :  { %1314 = vmatpush.bf16.msra.mxu2 %v2953_v35 }
  0xaa   :  { %2791 = vmatmul.msk.bf16.gmra.mxu0 %vm285_vm0, %v2921_v39  ;;  %v621_v43 = vmul.f32 %v3569_v21, %v402_v41  ;;  %vm556_vm5 = vcmp.gt.f32.partialorder %v402_v41, 0.0 }
  0xac   :  { %v685_v46 = vsel %vm556_vm5, %v402_v41, %v621_v43 }
  0xad   :  { %1315 = vmatpush.bf16.msra.mxu2 %v2952_v38 }
  0xaf   :  { %v403_v42 = vpop.f32.mrf.mxu0 }
  0xb0   :  { %v404_v44 = vadd.f32 %v3565_v19, %v403_v42 }
  0xb2   :  { %v622_v45 = vmul.f32 %v3569_v21, %v404_v44  ;;  %vm557_vm6 = vcmp.gt.f32.partialorder %v404_v44, 0.0 }
  0xb4   :  { %v686_v47 = vsel %vm557_vm6, %v404_v44, %v622_v45  ;;  %v2927_v45 = vld [vmem:[%s4820_s0 + $0x80] sm:$0xff] }
  0xb5   :  { %v747_v48 = vpack.c.bf16 %v686_v47, %v685_v46 }
  0xb7   :  { %v406_v50 = vpop.f32.mrf.mxu0  ;;  %863 = vmatmul.bf16.gmra.mxu1 %v747_v48 }
  0xb8   :  { %v407_v51 = vadd.f32 %v3565_v19, %v406_v50 }
  0xba   :  { %2792 = vmatmul.msk.bf16.gmra.mxu0 %vm285_vm0, %v2922_v49  ;;  %v623_v53 = vmul.f32 %v3569_v21, %v407_v51  ;;  %vm558_vm7 = vcmp.gt.f32.partialorder %v407_v51, 0.0 }
  0xbc   :  { %v687_v56 = vsel %vm558_vm7, %v407_v51, %v623_v53 }
  0xbf   :  { %v408_v52 = vpop.f32.mrf.mxu0 }
  0xc0   :  { %v409_v54 = vadd.f32 %v3565_v19, %v408_v52 }
  0xc2   :  { %v624_v55 = vmul.f32 %v3569_v21, %v409_v54  ;;  %vm559_vm8 = vcmp.gt.f32.partialorder %v409_v54, 0.0 }
  0xc4   :  { %v688_v57 = vsel %vm559_vm8, %v409_v54, %v624_v55  ;;  %v3665_v55 = vld [vmem:[%s4825_s5] ss:$0 sm:$0xff] }
  0xc5   :  { %v748_v58 = vpack.c.bf16 %v688_v57, %v687_v56  ;;  %v2928_v57 = vld [vmem:[%s4820_s0 + $0x88] sm:$0xff] }
  0xc7   :  { %v411_v60 = vpop.f32.mrf.mxu0  ;;  %868 = vmatmul.bf16.gmra.mxu1 %v748_v58 }
  0xc8   :  { %v412_v61 = vadd.f32 %v3565_v19, %v411_v60  ;;  %v3671_v60 = vstv %s2845_s6 }
  0xca   :  { %2793 = vmatmul.msk.bf16.gmra.mxu0 %vm285_vm0, %v2923_v59  ;;  %v625_v63 = vmul.f32 %v3569_v21, %v412_v61  ;;  %vm560_vm9 = vcmp.gt.f32.partialorder %v412_v61, 0.0 }
  0xcc   :  { %v689_v2 = vsel %vm560_vm9, %v412_v61, %v625_v63 }
  0xcf   :  { %v413_v62 = vpop.f32.mrf.mxu0 }
  0xd0   :  { %v414_v0 = vadd.f32 %v3565_v19, %v413_v62 }
  0xd2   :  { %v626_v1 = vmul.f32 %v3569_v21, %v414_v0  ;;  %vm561_vm10 = vcmp.gt.f32.partialorder %v414_v0, 0.0 }
  0xd4   :  { %v690_v3 = vsel %vm561_vm10, %v414_v0, %v626_v1 }
  0xd5   :  { %v749_v4 = vpack.c.bf16 %v690_v3, %v689_v2 }
  0xd7   :  { %v416_v6 = vpop.f32.mrf.mxu0  ;;  %873 = vmatmul.bf16.gmra.mxu1 %v749_v4 }
  0xd8   :  { %v417_v7 = vadd.f32 %v3565_v19, %v416_v6 }
  0xda   :  { %2794 = vmatmul.msk.bf16.gmra.mxu0 %vm285_vm0, %v2924_v5  ;;  %v627_v9 = vmul.f32 %v3569_v21, %v417_v7  ;;  %vm562_vm11 = vcmp.gt.f32.partialorder %v417_v7, 0.0 }
  0xdc   :  { %v691_v13 = vsel %vm562_vm11, %v417_v7, %v627_v9 }
  0xdf   :  { %v418_v8 = vpop.f32.mrf.mxu0 }
  0xe0   :  { %v419_v10 = vadd.f32 %v3565_v19, %v418_v8 }
  0xe2   :  { %v628_v11 = vmul.f32 %v3569_v21, %v419_v10  ;;  %vm563_vm12 = vcmp.gt.f32.partialorder %v419_v10, 0.0 }
  0xe4   :  { %v692_v14 = vsel %vm563_vm12, %v419_v10, %v628_v11 }
  0xe5   :  { %v750_v15 = vpack.c.bf16 %v692_v14, %v691_v13  ;;  %v2929_v13 = vld [vmem:[%s4820_s0 + $0x90] sm:$0xff] }
  0xe7   :  { %v421_v17 = vpop.f32.mrf.mxu0  ;;  %878 = vmatmul.bf16.gmra.mxu1 %v750_v15 }
  0xe8   :  { %v422_v22 = vadd.f32 %v3565_v19, %v421_v17 }
  0xea   :  { %2795 = vmatmul.msk.bf16.gmra.mxu0 %vm285_vm0, %v2925_v16  ;;  %v629_v25 = vmul.f32 %v3569_v21, %v422_v22  ;;  %vm564_vm13 = vcmp.gt.f32.partialorder %v422_v22, 0.0 }
  0xec   :  { %v693_v29 = vsel %vm564_vm13, %v422_v22, %v629_v25 }
  0xef   :  { %v423_v23 = vpop.f32.mrf.mxu0 }
  0xf0   :  { %v424_v26 = vadd.f32 %v3565_v19, %v423_v23 }
  0xf2   :  { %v630_v27 = vmul.f32 %v3569_v21, %v424_v26  ;;  %vm565_vm14 = vcmp.gt.f32.partialorder %v424_v26, 0.0 }
  0xf4   :  { %v694_v30 = vsel %vm565_vm14, %v424_v26, %v630_v27 }
  0xf5   :  { %v751_v31 = vpack.c.bf16 %v694_v30, %v693_v29 }
  0xf7   :  { %v426_v33 = vpop.f32.mrf.mxu0  ;;  %883 = vmatmul.bf16.gmra.mxu1 %v751_v31 }
  0xf8   :  { %v427_v36 = vadd.f32 %v3565_v19, %v426_v33 }
  0xfa   :  { %2796 = vmatmul.msk.bf16.gmra.mxu0 %vm285_vm0, %v2926_v32  ;;  %v631_v39 = vmul.f32 %v3569_v21, %v427_v36  ;;  %vm566_vm15 = vcmp.gt.f32.partialorder %v427_v36, 0.0 }
  0xfc   :  { %v695_v42 = vsel %vm566_vm15, %v427_v36, %v631_v39 }
  0xff   :  { %v428_v37 = vpop.f32.mrf.mxu0 }
 0x100   :  { %v429_v40 = vadd.f32 %v3565_v19, %v428_v37 }
 0x102   :  { %v632_v41 = vmul.f32 %v3569_v21, %v429_v40  ;;  %vm567_vm1 = vcmp.gt.f32.partialorder %v429_v40, 0.0 }
 0x104   :  { %v696_v43 = vsel %vm567_vm1, %v429_v40, %v632_v41 }
 0x105   :  { %v752_v44 = vpack.c.bf16 %v696_v43, %v695_v42 }
 0x107   :  { %v431_v46 = vpop.f32.mrf.mxu0  ;;  %888 = vmatmul.bf16.gmra.mxu1 %v752_v44 }
 0x108   :  { %v432_v47 = vadd.f32 %v3565_v19, %v431_v46 }
 0x10a   :  { %2797 = vmatmul.msk.bf16.gmra.mxu0 %vm285_vm0, %v2927_v45  ;;  %v633_v49 = vmul.f32 %v3569_v21, %v432_v47  ;;  %vm568_vm2 = vcmp.gt.f32.partialorder %v432_v47, 0.0 }
 0x10c   :  { %v697_v53 = vsel %vm568_vm2, %v432_v47, %v633_v49 }
 0x10f   :  { %v433_v48 = vpop.f32.mrf.mxu0 }
 0x110   :  { %v434_v50 = vadd.f32 %v3565_v19, %v433_v48 }
 0x112   :  { %v634_v51 = vmul.f32 %v3569_v21, %v434_v50  ;;  %vm569_vm3 = vcmp.gt.f32.partialorder %v434_v50, 0.0 }
 0x114   :  { %v854_v52 = vpop.f32.mrf.mxu1  ;;  %v698_v54 = vsel %vm569_vm3, %v434_v50, %v634_v51 }
 0x115   :  { %v753_v56 = vpack.c.bf16 %v698_v54, %v697_v53  ;;  %v855_v59 = vadd.f32 %v3665_v55, %v854_v52  ;;  %v2931_v53 = vld [vmem:[%s4820_s0 + $0xa0] sm:$0xff] }
 0x117   :  { %v436_v58 = vpop.f32.mrf.mxu0  ;;  %893 = vmatmul.bf16.gmra.mxu1 %v753_v56  ;;  %v1080_v63 = vmul.f32 %v3671_v60, %v855_v59  ;;  %vm1015_vm4 = vcmp.gt.f32.partialorder %v855_v59, 0.0 }
 0x118   :  { %v437_v61 = vadd.f32 %v3565_v19, %v436_v58 }
 0x119   :  { %v1144_v5 = vsel %vm1015_vm4, %v855_v59, %v1080_v63 }
 0x11a   :  { %2798 = vmatmul.msk.bf16.gmra.mxu0 %vm285_vm0, %v2928_v57  ;;  %v635_v3 = vmul.f32 %v3569_v21, %v437_v61  ;;  %vm570_vm6 = vcmp.gt.f32.partialorder %v437_v61, 0.0 }
 0x11c   :  { %v856_v62 = vpop.f32.mrf.mxu1  ;;  %v699_v10 = vsel %vm570_vm6, %v437_v61, %v635_v3 }
 0x11d   :  { %v857_v0 = vadd.f32 %v3665_v55, %v856_v62 }
 0x11f   :  { %v1081_v1 = vmul.f32 %v3671_v60, %v857_v0  ;;  %v438_v2 = vpop.f32.mrf.mxu0  ;;  %vm1016_vm5 = vcmp.gt.f32.partialorder %v857_v0, 0.0 }
 0x120   :  { %v439_v4 = vadd.f32 %v3565_v19, %v438_v2 }
 0x121   :  { %v1145_v6 = vsel %vm1016_vm5, %v857_v0, %v1081_v1 }
 0x122   :  { %v636_v7 = vmul.f32 %v3569_v21, %v439_v4  ;;  %v1208_v8 = vpack.c.bf16 %v1145_v6, %v1144_v5  ;;  %vm571_vm7 = vcmp.gt.f32.partialorder %v439_v4, 0.0 }
 0x124   :  { %v859_v9 = vpop.f32.mrf.mxu1  ;;  %1316 = vmatmul.bf16.vlgmr.msra.gmra.mxu2 %v1208_v8  ;;  %v700_v11 = vsel %vm571_vm7, %v439_v4, %v636_v7 }
 0x125   :  { %v754_v12 = vpack.c.bf16 %v700_v11, %v699_v10  ;;  %v860_v15 = vadd.f32 %v3665_v55, %v859_v9  ;;  %v2932_v10 = vld [vmem:[%s4820_s0 + $0xa8] sm:$0xff] }
 0x127   :  { %v441_v14 = vpop.f32.mrf.mxu0  ;;  %898 = vmatmul.bf16.gmra.mxu1 %v754_v12  ;;  %v1082_v18 = vmul.f32 %v3671_v60, %v860_v15  ;;  %vm1017_vm8 = vcmp.gt.f32.partialorder %v860_v15, 0.0 }
 0x128   :  { %v442_v16 = vadd.f32 %v3565_v19, %v441_v14 }
 0x129   :  { %v1146_v26 = vsel %vm1017_vm8, %v860_v15, %v1082_v18 }
 0x12a   :  { %2799 = vmatmul.msk.bf16.gmra.mxu0 %vm285_vm0, %v2929_v13  ;;  %v637_v24 = vmul.f32 %v3569_v21, %v442_v16  ;;  %vm572_vm10 = vcmp.gt.f32.partialorder %v442_v16, 0.0 }
 0x12c   :  { %v861_v17 = vpop.f32.mrf.mxu1  ;;  %v701_v31 = vsel %vm572_vm10, %v442_v16, %v637_v24 }
 0x12d   :  { %v862_v20 = vadd.f32 %v3665_v55, %v861_v17 }
 0x12f   :  { %v1083_v22 = vmul.f32 %v3671_v60, %v862_v20  ;;  %v443_v23 = vpop.f32.mrf.mxu0  ;;  %vm1018_vm9 = vcmp.gt.f32.partialorder %v862_v20, 0.0 }
 0x130   :  { %v444_v25 = vadd.f32 %v3565_v19, %v443_v23 }
 0x131   :  { %v1147_v27 = vsel %vm1018_vm9, %v862_v20, %v1083_v22 }
 0x132   :  { %v638_v28 = vmul.f32 %v3569_v21, %v444_v25  ;;  %v1209_v29 = vpack.c.bf16 %v1147_v27, %v1146_v26  ;;  %vm573_vm11 = vcmp.gt.f32.partialorder %v444_v25, 0.0 }
 0x134   :  { %v864_v30 = vpop.f32.mrf.mxu1  ;;  %1321 = vmatmul.bf16.gmra.mxu2 %v1209_v29  ;;  %v702_v32 = vsel %vm573_vm11, %v444_v25, %v638_v28 }
 0x135   :  { %v755_v33 = vpack.c.bf16 %v702_v32, %v701_v31  ;;  %v865_v36 = vadd.f32 %v3665_v55, %v864_v30  ;;  %v2933_v31 = vld [vmem:[%s4820_s0 + $0xb0] sm:$0xff] }
 0x137   :  { %v446_v35 = vpop.f32.mrf.mxu0  ;;  %903 = vmatmul.bf16.gmra.mxu1 %v755_v33  ;;  %v1084_v39 = vmul.f32 %v3671_v60, %v865_v36  ;;  %vm1019_vm12 = vcmp.gt.f32.partialorder %v865_v36, 0.0 }
 0x138   :  { %v447_v37 = vadd.f32 %v3565_v19, %v446_v35 }
 0x139   :  { %v1148_v45 = vsel %vm1019_vm12, %v865_v36, %v1084_v39 }
 0x13a   :  { %2800 = vmatmul.msk.bf16.gmra.mxu0 %vm285_vm0, %v2930_v34  ;;  %v639_v43 = vmul.f32 %v3569_v21, %v447_v37  ;;  %vm574_vm14 = vcmp.gt.f32.partialorder %v447_v37, 0.0 }
 0x13c   :  { %v866_v38 = vpop.f32.mrf.mxu1  ;;  %v703_v50 = vsel %vm574_vm14, %v447_v37, %v639_v43 }
 0x13d   :  { %v867_v40 = vadd.f32 %v3665_v55, %v866_v38 }
 0x13f   :  { %v1085_v41 = vmul.f32 %v3671_v60, %v867_v40  ;;  %v448_v42 = vpop.f32.mrf.mxu0  ;;  %vm1020_vm13 = vcmp.gt.f32.partialorder %v867_v40, 0.0 }
 0x140   :  { %v449_v44 = vadd.f32 %v3565_v19, %v448_v42 }
 0x141   :  { %v1149_v46 = vsel %vm1020_vm13, %v867_v40, %v1085_v41 }
 0x142   :  { %v640_v47 = vmul.f32 %v3569_v21, %v449_v44  ;;  %v1210_v48 = vpack.c.bf16 %v1149_v46, %v1148_v45  ;;  %vm575_vm15 = vcmp.gt.f32.partialorder %v449_v44, 0.0 }
 0x144   :  { %v869_v49 = vpop.f32.mrf.mxu1  ;;  %1326 = vmatmul.bf16.gmra.mxu2 %v1210_v48  ;;  %v704_v51 = vsel %vm575_vm15, %v449_v44, %v640_v47 }
 0x145   :  { %v756_v52 = vpack.c.bf16 %v704_v51, %v703_v50  ;;  %v870_v56 = vadd.f32 %v3665_v55, %v869_v49  ;;  %v2934_v50 = vld [vmem:[%s4820_s0 + $0xb8] sm:$0xff] }
 0x146   :  { %v2967_v51 = vld [vmem:[%s4828_s8 + $0x38] sm:$0xff] }
 0x147   :  { %v451_v54 = vpop.f32.mrf.mxu0  ;;  %908 = vmatmul.bf16.gmra.mxu1 %v756_v52  ;;  %v1086_v59 = vmul.f32 %v3671_v60, %v870_v56  ;;  %vm1021_vm1 = vcmp.gt.f32.partialorder %v870_v56, 0.0  ;;  %1771 = vmatpush.bf16.msra.mxu3 %v2967_v51 }
 0x148   :  { %v452_v57 = vadd.f32 %v3565_v19, %v451_v54  ;;  %v2966_v54 = vld [vmem:[%s4828_s8 + $0x30] sm:$0xff] }
 0x149   :  { %v1150_v2 = vsel %vm1021_vm1, %v870_v56, %v1086_v59 }
 0x14a   :  { %2801 = vmatmul.msk.bf16.gmra.mxu0 %vm285_vm0, %v2931_v53  ;;  %v641_v0 = vmul.f32 %v3569_v21, %v452_v57  ;;  %vm576_vm3 = vcmp.gt.f32.partialorder %v452_v57, 0.0 }
 0x14b   :  { %1772 = vmatpush.bf16.msra.mxu3 %v2966_v54 }
 0x14c   :  { %v871_v58 = vpop.f32.mrf.mxu1  ;;  %v705_v7 = vsel %vm576_vm3, %v452_v57, %v641_v0 }
 0x14d   :  { %v872_v61 = vadd.f32 %v3665_v55, %v871_v58 }
 0x14f   :  { %v1087_v62 = vmul.f32 %v3671_v60, %v872_v61  ;;  %v453_v63 = vpop.f32.mrf.mxu0  ;;  %vm1022_vm2 = vcmp.gt.f32.partialorder %v872_v61, 0.0 }
 0x150   :  { %v454_v1 = vadd.f32 %v3565_v19, %v453_v63 }
 0x151   :  { %v1151_v3 = vsel %vm1022_vm2, %v872_v61, %v1087_v62  ;;  %v2965_v61 = vld [vmem:[%s4828_s8 + $0x28] sm:$0xff] }
 0x152   :  { %vm577_vm4 = vcmp.gt.f32.partialorder %v454_v1, 0.0  ;;  %v642_v4 = vmul.f32 %v3569_v21, %v454_v1  ;;  %v1211_v5 = vpack.c.bf16 %v1151_v3, %v1150_v2  ;;  %1773 = vmatpush.bf16.msra.mxu3 %v2965_v61 }
 0x154   :  { %v874_v6 = vpop.f32.mrf.mxu1  ;;  %1331 = vmatmul.bf16.gmra.mxu2 %v1211_v5  ;;  %v706_v8 = vsel %vm577_vm4, %v454_v1, %v642_v4 }
 0x155   :  { %v757_v9 = vpack.c.bf16 %v706_v8, %v705_v7  ;;  %v875_v12 = vadd.f32 %v3665_v55, %v874_v6  ;;  %v2964_v6 = vld [vmem:[%s4828_s8 + $0x20] sm:$0xff] }
 0x156   :  { %1774 = vmatpush.bf16.msra.mxu3 %v2964_v6 }
 0x157   :  { %v456_v11 = vpop.f32.mrf.mxu0  ;;  %913 = vmatmul.bf16.gmra.mxu1 %v757_v9  ;;  %v1088_v15 = vmul.f32 %v3671_v60, %v875_v12  ;;  %vm1023_vm5 = vcmp.gt.f32.partialorder %v875_v12, 0.0 }
 0x158   :  { %v457_v13 = vadd.f32 %v3565_v19, %v456_v11  ;;  %v2935_v11 = vld [vmem:[%s4820_s0 + $0xc0] sm:$0xff] }
 0x159   :  { %v1152_v23 = vsel %vm1023_vm5, %v875_v12, %v1088_v15  ;;  %v2963_v12 = vld [vmem:[%s4828_s8 + $0x18] sm:$0xff]  ;;  %v2962_v15 = vld [vmem:[%s4828_s8 + $0x10] sm:$0xff] }
 0x15a   :  { %2802 = vmatmul.msk.bf16.gmra.mxu0 %vm285_vm0, %v2932_v10  ;;  %v643_v20 = vmul.f32 %v3569_v21, %v457_v13  ;;  %vm578_vm7 = vcmp.gt.f32.partialorder %v457_v13, 0.0  ;;  %1775 = vmatpush.bf16.msra.mxu3 %v2963_v12 }
 0x15c   :  { %v876_v14 = vpop.f32.mrf.mxu1  ;;  %v707_v28 = vsel %vm578_vm7, %v457_v13, %v643_v20 }
 0x15d   :  { %v877_v16 = vadd.f32 %v3665_v55, %v876_v14 }
 0x15e   :  { %1776 = vmatpush.bf16.msra.mxu3 %v2962_v15 }
 0x15f   :  { %v1089_v17 = vmul.f32 %v3671_v60, %v877_v16  ;;  %v458_v18 = vpop.f32.mrf.mxu0  ;;  %vm1024_vm6 = vcmp.gt.f32.partialorder %v877_v16, 0.0 }
 0x160   :  { %v459_v22 = vadd.f32 %v3565_v19, %v458_v18 }
 0x161   :  { %v1153_v24 = vsel %vm1024_vm6, %v877_v16, %v1089_v17 }
 0x162   :  { %vm579_vm8 = vcmp.gt.f32.partialorder %v459_v22, 0.0  ;;  %v644_v25 = vmul.f32 %v3569_v21, %v459_v22  ;;  %v1212_v26 = vpack.c.bf16 %v1153_v24, %v1152_v23 }
 0x164   :  { %v879_v27 = vpop.f32.mrf.mxu1  ;;  %1336 = vmatmul.bf16.gmra.mxu2 %v1212_v26  ;;  %v708_v29 = vsel %vm579_vm8, %v459_v22, %v644_v25  ;;  %v2961_v22 = vld [vmem:[%s4828_s8 + $0x8] sm:$0xff] }
 0x165   :  { %v758_v30 = vpack.c.bf16 %v708_v29, %v707_v28  ;;  %v880_v33 = vadd.f32 %v3665_v55, %v879_v27  ;;  %1777 = vmatpush.bf16.msra.mxu3 %v2961_v22 }
 0x167   :  { %v461_v32 = vpop.f32.mrf.mxu0  ;;  %918 = vmatmul.bf16.gmra.mxu1 %v758_v30  ;;  %v1090_v36 = vmul.f32 %v3671_v60, %v880_v33  ;;  %vm1025_vm9 = vcmp.gt.f32.partialorder %v880_v33, 0.0 }
 0x168   :  { %v462_v34 = vadd.f32 %v3565_v19, %v461_v32 }
 0x169   :  { %v1154_v42 = vsel %vm1025_vm9, %v880_v33, %v1090_v36  ;;  %v2936_v36 = vld [vmem:[%s4820_s0 + $0xc8] sm:$0xff] }
 0x16a   :  { %2803 = vmatmul.msk.bf16.gmra.mxu0 %vm285_vm0, %v2933_v31  ;;  %v645_v40 = vmul.f32 %v3569_v21, %v462_v34  ;;  %vm580_vm11 = vcmp.gt.f32.partialorder %v462_v34, 0.0  ;;  %v2960_v31 = vld [vmem:[%s4828_s8] sm:$0xff]  ;;  %s2878_s8 = sld [smem:[#allocation2 + $0x2]] }
 0x16b   :  { %1778 = vmatpush.bf16.msra.mxu3 %v2960_v31 }
 0x16c   :  { %v881_v35 = vpop.f32.mrf.mxu1  ;;  %v709_v47 = vsel %vm580_vm11, %v462_v34, %v645_v40 }
 0x16d   :  { %v882_v37 = vadd.f32 %v3665_v55, %v881_v35 }
 0x16f   :  { %v1091_v38 = vmul.f32 %v3671_v60, %v882_v37  ;;  %v463_v39 = vpop.f32.mrf.mxu0  ;;  %vm1026_vm10 = vcmp.gt.f32.partialorder %v882_v37, 0.0 }
 0x170   :  { %v464_v41 = vadd.f32 %v3565_v19, %v463_v39 }
 0x171   :  { %v1155_v43 = vsel %vm1026_vm10, %v882_v37, %v1091_v38 }
 0x172   :  { %vm581_vm12 = vcmp.gt.f32.partialorder %v464_v41, 0.0  ;;  %v646_v44 = vmul.f32 %v3569_v21, %v464_v41  ;;  %v1213_v45 = vpack.c.bf16 %v1155_v43, %v1154_v42 }
 0x174   :  { %v884_v46 = vpop.f32.mrf.mxu1  ;;  %1341 = vmatmul.bf16.gmra.mxu2 %v1213_v45  ;;  %v710_v48 = vsel %vm581_vm12, %v464_v41, %v646_v44 }
 0x175   :  { %v759_v49 = vpack.c.bf16 %v710_v48, %v709_v47  ;;  %v885_v53 = vadd.f32 %v3665_v55, %v884_v46 }
 0x177   :  { %v466_v52 = vpop.f32.mrf.mxu0  ;;  %923 = vmatmul.bf16.gmra.mxu1 %v759_v49  ;;  %v1092_v58 = vmul.f32 %v3671_v60, %v885_v53  ;;  %vm1027_vm13 = vcmp.gt.f32.partialorder %v885_v53, 0.0 }
 0x178   :  { %v467_v56 = vadd.f32 %v3565_v19, %v466_v52 }
 0x179   :  { %v1156_v2 = vsel %vm1027_vm13, %v885_v53, %v1092_v58 }
 0x17a   :  { %2804 = vmatmul.msk.bf16.gmra.mxu0 %vm285_vm0, %v2934_v50  ;;  %v647_v0 = vmul.f32 %v3569_v21, %v467_v56  ;;  %vm582_vm15 = vcmp.gt.f32.partialorder %v467_v56, 0.0 }
 0x17c   :  { %v886_v57 = vpop.f32.mrf.mxu1  ;;  %v711_v8 = vsel %vm582_vm15, %v467_v56, %v647_v0  ;;  %v2937_v56 = vld [vmem:[%s4820_s0 + $0xd0] sm:$0xff] }
 0x17d   :  { %v887_v59 = vadd.f32 %v3665_v55, %v886_v57 }
 0x17f   :  { %v1093_v62 = vmul.f32 %v3671_v60, %v887_v59  ;;  %v468_v63 = vpop.f32.mrf.mxu0  ;;  %vm1028_vm14 = vcmp.gt.f32.partialorder %v887_v59, 0.0 }
 0x180   :  { %v469_v1 = vadd.f32 %v3565_v19, %v468_v63 }
 0x181   :  { %v1157_v3 = vsel %vm1028_vm14, %v887_v59, %v1093_v62  ;;  %v3807_v59 = vld [vmem:[%s4827_s7] ss:$0 sm:$0xff] }
 0x182   :  { %vm583_vm1 = vcmp.gt.f32.partialorder %v469_v1, 0.0  ;;  %v648_v4 = vmul.f32 %v3569_v21, %v469_v1  ;;  %v1214_v5 = vpack.c.bf16 %v1157_v3, %v1156_v2  ;;  %v3814_v2 = vstv %s2878_s8 }
 0x184   :  { %v889_v7 = vpop.f32.mrf.mxu1  ;;  %1346 = vmatmul.bf16.gmra.mxu2 %v1214_v5  ;;  %v712_v9 = vsel %vm583_vm1, %v469_v1, %v648_v4 }
 0x185   :  { %v760_v10 = vpack.c.bf16 %v712_v9, %v711_v8  ;;  %v890_v14 = vadd.f32 %v3665_v55, %v889_v7 }
 0x187   :  { %v471_v13 = vpop.f32.mrf.mxu0  ;;  %928 = vmatmul.bf16.gmra.mxu1 %v760_v10  ;;  %v1094_v18 = vmul.f32 %v3671_v60, %v890_v14  ;;  %vm1029_vm2 = vcmp.gt.f32.partialorder %v890_v14, 0.0 }
 0x188   :  { %v472_v16 = vadd.f32 %v3565_v19, %v471_v13 }
 0x189   :  { %v1158_v27 = vsel %vm1029_vm2, %v890_v14, %v1094_v18 }
 0x18a   :  { %2805 = vmatmul.msk.bf16.gmra.mxu0 %vm285_vm0, %v2935_v11  ;;  %v649_v25 = vmul.f32 %v3569_v21, %v472_v16  ;;  %vm584_vm4 = vcmp.gt.f32.partialorder %v472_v16, 0.0 }
 0x18c   :  { %v891_v17 = vpop.f32.mrf.mxu1  ;;  %v713_v33 = vsel %vm584_vm4, %v472_v16, %v649_v25  ;;  %v2938_v25 = vld [vmem:[%s4820_s0 + $0xd8] sm:$0xff] }
 0x18d   :  { %v892_v20 = vadd.f32 %v3665_v55, %v891_v17 }
 0x18f   :  { %v1095_v23 = vmul.f32 %v3671_v60, %v892_v20  ;;  %v473_v24 = vpop.f32.mrf.mxu0  ;;  %vm1030_vm3 = vcmp.gt.f32.partialorder %v892_v20, 0.0 }
 0x190   :  { %v474_v26 = vadd.f32 %v3565_v19, %v473_v24 }
 0x191   :  { %v1159_v28 = vsel %vm1030_vm3, %v892_v20, %v1095_v23 }
 0x192   :  { %vm585_vm5 = vcmp.gt.f32.partialorder %v474_v26, 0.0  ;;  %v650_v29 = vmul.f32 %v3569_v21, %v474_v26  ;;  %v1215_v30 = vpack.c.bf16 %v1159_v28, %v1158_v27 }
 0x194   :  { %v894_v32 = vpop.f32.mrf.mxu1  ;;  %1351 = vmatmul.bf16.gmra.mxu2 %v1215_v30  ;;  %v714_v34 = vsel %vm585_vm5, %v474_v26, %v650_v29 }
 0x195   :  { %v761_v35 = vpack.c.bf16 %v714_v34, %v713_v33  ;;  %v895_v38 = vadd.f32 %v3665_v55, %v894_v32 }
 0x197   :  { %v476_v37 = vpop.f32.mrf.mxu0  ;;  %933 = vmatmul.bf16.gmra.mxu1 %v761_v35  ;;  %v1096_v41 = vmul.f32 %v3671_v60, %v895_v38  ;;  %vm1031_vm6 = vcmp.gt.f32.partialorder %v895_v38, 0.0 }
 0x198   :  { %v477_v39 = vadd.f32 %v3565_v19, %v476_v37 }
 0x199   :  { %v1160_v47 = vsel %vm1031_vm6, %v895_v38, %v1096_v41 }
 0x19a   :  { %2806 = vmatmul.msk.bf16.gmra.mxu0 %vm285_vm0, %v2936_v36  ;;  %v651_v45 = vmul.f32 %v3569_v21, %v477_v39  ;;  %vm586_vm8 = vcmp.gt.f32.partialorder %v477_v39, 0.0 }
 0x19c   :  { %v896_v40 = vpop.f32.mrf.mxu1  ;;  %v715_v52 = vsel %vm586_vm8, %v477_v39, %v651_v45 }
 0x19d   :  { %v897_v42 = vadd.f32 %v3665_v55, %v896_v40 }
 0x19f   :  { %v1097_v43 = vmul.f32 %v3671_v60, %v897_v42  ;;  %v478_v44 = vpop.f32.mrf.mxu0  ;;  %vm1032_vm7 = vcmp.gt.f32.partialorder %v897_v42, 0.0 }
 0x1a0   :  { %v479_v46 = vadd.f32 %v3565_v19, %v478_v44 }
 0x1a1   :  { %v1161_v48 = vsel %vm1032_vm7, %v897_v42, %v1097_v43 }
 0x1a2   :  { %vm587_vm9 = vcmp.gt.f32.partialorder %v479_v46, 0.0  ;;  %v652_v49 = vmul.f32 %v3569_v21, %v479_v46  ;;  %v1216_v50 = vpack.c.bf16 %v1161_v48, %v1160_v47 }
 0x1a4   :  { %v899_v51 = vpop.f32.mrf.mxu1  ;;  %1356 = vmatmul.bf16.gmra.mxu2 %v1216_v50  ;;  %v716_v53 = vsel %vm587_vm9, %v479_v46, %v652_v49 }
 0x1a5   :  { %v762_v54 = vpack.c.bf16 %v716_v53, %v715_v52  ;;  %v900_v61 = vadd.f32 %v3665_v55, %v899_v51  ;;  %v2939_v53 = vld [vmem:[%s4820_s0 + $0xe0] sm:$0xff] }
 0x1a7   :  { %v481_v57 = vpop.f32.mrf.mxu0  ;;  %938 = vmatmul.bf16.gmra.mxu1 %v762_v54  ;;  %v1317_v58 = vpop.f32.mrf.mxu2  ;;  %v1098_v1 = vmul.f32 %v3671_v60, %v900_v61  ;;  %vm1033_vm10 = vcmp.gt.f32.partialorder %v900_v61, 0.0 }
 0x1a8   :  { %v482_v62 = vadd.f32 %v3565_v19, %v481_v57  ;;  %v1318_v63 = vadd.f32 %v3807_v59, %v1317_v58 }
 0x1a9   :  { %v1162_v11 = vsel %vm1033_vm10, %v900_v61, %v1098_v1 }
 0x1aa   :  { %2807 = vmatmul.msk.bf16.gmra.mxu0 %vm285_vm0, %v2937_v56  ;;  %v653_v7 = vmul.f32 %v3569_v21, %v482_v62  ;;  %v1543_v8 = vmul.f32 %v3814_v2, %v1318_v63  ;;  %vm588_vm12 = vcmp.gt.f32.partialorder %v482_v62, 0.0  ;;  %vm1478_vm13 = vcmp.gt.f32.partialorder %v1318_v63, 0.0 }
 0x1ac   :  { %v901_v0 = vpop.f32.mrf.mxu1  ;;  %v717_v17 = vsel %vm588_vm12, %v482_v62, %v653_v7  ;;  %v1607_v20 = vsel %vm1478_vm13, %v1318_v63, %v1543_v8 }
 0x1ad   :  { %v902_v3 = vadd.f32 %v3665_v55, %v901_v0 }
 0x1af   :  { %v1099_v4 = vmul.f32 %v3671_v60, %v902_v3  ;;  %v483_v5 = vpop.f32.mrf.mxu0  ;;  %v1319_v6 = vpop.f32.mrf.mxu2  ;;  %vm1034_vm11 = vcmp.gt.f32.partialorder %v902_v3, 0.0 }
 0x1b0   :  { %v484_v9 = vadd.f32 %v3565_v19, %v483_v5  ;;  %v1320_v10 = vadd.f32 %v3807_v59, %v1319_v6 }
 0x1b1   :  { %v1163_v12 = vsel %vm1034_vm11, %v902_v3, %v1099_v4 }
 0x1b2   :  { %vm589_vm14 = vcmp.gt.f32.partialorder %v484_v9, 0.0  ;;  %v654_v13 = vmul.f32 %v3569_v21, %v484_v9  ;;  %v1544_v14 = vmul.f32 %v3814_v2, %v1320_v10  ;;  %v1217_v15 = vpack.c.bf16 %v1163_v12, %v1162_v11 }
 0x1b3   :  { %vm1479_vm15 = vcmp.gt.f32.partialorder %v1320_v10, 0.0 }
 0x1b4   :  { %v904_v16 = vpop.f32.mrf.mxu1  ;;  %1361 = vmatmul.bf16.gmra.mxu2 %v1217_v15  ;;  %v718_v18 = vsel %vm589_vm14, %v484_v9, %v654_v13  ;;  %v1608_v22 = vsel %vm1479_vm15, %v1320_v10, %v1544_v14 }
 0x1b5   :  { %v763_v23 = vpack.c.bf16 %v718_v18, %v717_v17  ;;  %v1671_v24 = vpack.c.bf16 %v1608_v22, %v1607_v20  ;;  %v905_v28 = vadd.f32 %v3665_v55, %v904_v16  ;;  %v2940_v22 = vld [vmem:[%s4820_s0 + $0xe8] sm:$0xff] }
 0x1b7   :  { %v486_v26 = vpop.f32.mrf.mxu0  ;;  %943 = vmatmul.bf16.gmra.mxu1 %v763_v23  ;;  %v1322_v27 = vpop.f32.mrf.mxu2  ;;  %1779 = vmatmul.bf16.vlgmr.msra.gmra.mxu3 %v1671_v24  ;;  %v1100_v32 = vmul.f32 %v3671_v60, %v905_v28  ;;  %vm1035_vm1 = vcmp.gt.f32.partialorder %v905_v28, 0.0 }
 0x1b8   :  { %v487_v29 = vadd.f32 %v3565_v19, %v486_v26  ;;  %v1323_v30 = vadd.f32 %v3807_v59, %v1322_v27  ;;  %v3864_v26 = vld [vmem:[%s4823_s3] ss:$0 sm:$0xff] }
 0x1b9   :  { %v1164_v41 = vsel %vm1035_vm1, %v905_v28, %v1100_v32 }
 0x1ba   :  { %2808 = vmatmul.msk.bf16.gmra.mxu0 %vm285_vm0, %v2938_v25  ;;  %v655_v37 = vmul.f32 %v3569_v21, %v487_v29  ;;  %v1545_v38 = vmul.f32 %v3814_v2, %v1323_v30  ;;  %vm590_vm3 = vcmp.gt.f32.partialorder %v487_v29, 0.0  ;;  %vm1480_vm4 = vcmp.gt.f32.partialorder %v1323_v30, 0.0 }
 0x1bc   :  { %v906_v31 = vpop.f32.mrf.mxu1  ;;  %v719_v47 = vsel %vm590_vm3, %v487_v29, %v655_v37  ;;  %v1609_v49 = vsel %vm1480_vm4, %v1323_v30, %v1545_v38 }
 0x1bd   :  { %v907_v33 = vadd.f32 %v3665_v55, %v906_v31 }
 0x1bf   :  { %v1101_v34 = vmul.f32 %v3671_v60, %v907_v33  ;;  %v488_v35 = vpop.f32.mrf.mxu0  ;;  %v1324_v36 = vpop.f32.mrf.mxu2  ;;  %vm1036_vm2 = vcmp.gt.f32.partialorder %v907_v33, 0.0 }
 0x1c0   :  { %v489_v39 = vadd.f32 %v3565_v19, %v488_v35  ;;  %v1325_v40 = vadd.f32 %v3807_v59, %v1324_v36 }
 0x1c1   :  { %v1165_v42 = vsel %vm1036_vm2, %v907_v33, %v1101_v34 }
 0x1c2   :  { %vm591_vm5 = vcmp.gt.f32.partialorder %v489_v39, 0.0  ;;  %v656_v43 = vmul.f32 %v3569_v21, %v489_v39  ;;  %v1546_v44 = vmul.f32 %v3814_v2, %v1325_v40  ;;  %v1218_v45 = vpack.c.bf16 %v1165_v42, %v1164_v41 }
 0x1c3   :  { %vm1481_vm6 = vcmp.gt.f32.partialorder %v1325_v40, 0.0 }
 0x1c4   :  { %v909_v46 = vpop.f32.mrf.mxu1  ;;  %1366 = vmatmul.bf16.gmra.mxu2 %v1218_v45  ;;  %v720_v48 = vsel %vm591_vm5, %v489_v39, %v656_v43  ;;  %v1610_v50 = vsel %vm1481_vm6, %v1325_v40, %v1546_v44 }
 0x1c5   :  { %v764_v51 = vpack.c.bf16 %v720_v48, %v719_v47  ;;  %v1672_v52 = vpack.c.bf16 %v1610_v50, %v1609_v49  ;;  %v910_v57 = vadd.f32 %v3665_v55, %v909_v46 }
 0x1c7   :  { %v491_v54 = vpop.f32.mrf.mxu0  ;;  %948 = vmatmul.bf16.gmra.mxu1 %v764_v51  ;;  %v1327_v56 = vpop.f32.mrf.mxu2  ;;  %1784 = vmatmul.bf16.gmra.mxu3 %v1672_v52  ;;  %v1102_v63 = vmul.f32 %v3671_v60, %v910_v57  ;;  %vm1037_vm7 = vcmp.gt.f32.partialorder %v910_v57, 0.0  ;;  %v2941_v51 = vld [vmem:[%s4820_s0 + $0xf0] sm:$0xff] }
 0x1c8   :  { %v492_v58 = vadd.f32 %v3565_v19, %v491_v54  ;;  %v1328_v61 = vadd.f32 %v3807_v59, %v1327_v56 }
 0x1c9   :  { %v1166_v9 = vsel %vm1037_vm7, %v910_v57, %v1102_v63 }
 0x1ca   :  { %2809 = vmatmul.msk.bf16.gmra.mxu0 %vm285_vm0, %v2939_v53  ;;  %v657_v5 = vmul.f32 %v3569_v21, %v492_v58  ;;  %v1547_v6 = vmul.f32 %v3814_v2, %v1328_v61  ;;  %vm592_vm9 = vcmp.gt.f32.partialorder %v492_v58, 0.0  ;;  %vm1482_vm10 = vcmp.gt.f32.partialorder %v1328_v61, 0.0 }
 0x1cc   :  { %v911_v62 = vpop.f32.mrf.mxu1  ;;  %v721_v15 = vsel %vm592_vm9, %v492_v58, %v657_v5  ;;  %v1611_v17 = vsel %vm1482_vm10, %v1328_v61, %v1547_v6 }
 0x1cd   :  { %v912_v0 = vadd.f32 %v3665_v55, %v911_v62 }
 0x1cf   :  { %v1103_v1 = vmul.f32 %v3671_v60, %v912_v0  ;;  %v493_v3 = vpop.f32.mrf.mxu0  ;;  %v1329_v4 = vpop.f32.mrf.mxu2  ;;  %vm1038_vm8 = vcmp.gt.f32.partialorder %v912_v0, 0.0 }
 0x1d0   :  { %v494_v7 = vadd.f32 %v3565_v19, %v493_v3  ;;  %v1330_v8 = vadd.f32 %v3807_v59, %v1329_v4 }
 0x1d1   :  { %v1167_v10 = vsel %vm1038_vm8, %v912_v0, %v1103_v1 }
 0x1d2   :  { %vm593_vm11 = vcmp.gt.f32.partialorder %v494_v7, 0.0  ;;  %v658_v11 = vmul.f32 %v3569_v21, %v494_v7  ;;  %v1548_v12 = vmul.f32 %v3814_v2, %v1330_v8  ;;  %v1219_v13 = vpack.c.bf16 %v1167_v10, %v1166_v9 }
 0x1d3   :  { %vm1483_vm12 = vcmp.gt.f32.partialorder %v1330_v8, 0.0 }
 0x1d4   :  { %v914_v14 = vpop.f32.mrf.mxu1  ;;  %1371 = vmatmul.bf16.gmra.mxu2 %v1219_v13  ;;  %v722_v16 = vsel %vm593_vm11, %v494_v7, %v658_v11  ;;  %v1612_v18 = vsel %vm1483_vm12, %v1330_v8, %v1548_v12 }
 0x1d5   :  { %v765_v19 = vpack.c.bf16 %v722_v16, %v721_v15  ;;  %v1673_v20 = vpack.c.bf16 %v1612_v18, %v1611_v17  ;;  %v915_v25 = vadd.f32 %v3665_v55, %v914_v14 }
 0x1d7   :  { %v496_v23 = vpop.f32.mrf.mxu0  ;;  %953 = vmatmul.bf16.gmra.mxu1 %v765_v19  ;;  %v1332_v24 = vpop.f32.mrf.mxu2  ;;  %1789 = vmatmul.bf16.gmra.mxu3 %v1673_v20  ;;  %v1104_v30 = vmul.f32 %v3671_v60, %v915_v25  ;;  %vm1039_vm13 = vcmp.gt.f32.partialorder %v915_v25, 0.0  ;;  %v2942_v19 = vld [vmem:[%s4820_s0 + $0xf8] sm:$0xff] }
 0x1d8   :  { %v497_v27 = vadd.f32 %v3864_v26, %v496_v23  ;;  %v1333_v28 = vadd.f32 %v3807_v59, %v1332_v24 }
 0x1d9   :  { %v1168_v39 = vsel %vm1039_vm13, %v915_v25, %v1104_v30 }
 0x1da   :  { %2810 = vmatmul.msk.bf16.gmra.mxu0 %vm285_vm0, %v2940_v22  ;;  %v659_v35 = vmul.f32 %v3569_v21, %v497_v27  ;;  %v1549_v36 = vmul.f32 %v3814_v2, %v1333_v28  ;;  %vm594_vm15 = vcmp.gt.f32.partialorder %v497_v27, 0.0  ;;  %vm1484_vm1 = vcmp.gt.f32.partialorder %v1333_v28, 0.0 }
 0x1dc   :  { %v916_v29 = vpop.f32.mrf.mxu1  ;;  %v723_v45 = vsel %vm594_vm15, %v497_v27, %v659_v35  ;;  %v1613_v47 = vsel %vm1484_vm1, %v1333_v28, %v1549_v36 }
 0x1dd   :  { %v917_v31 = vadd.f32 %v3665_v55, %v916_v29 }
 0x1df   :  { %vm1040_vm14 = vcmp.gt.f32.partialorder %v917_v31, 0.0  ;;  %v1105_v32 = vmul.f32 %v3671_v60, %v917_v31  ;;  %v498_v33 = vpop.f32.mrf.mxu0  ;;  %v1334_v34 = vpop.f32.mrf.mxu2 }
 0x1e0   :  { %v499_v37 = vadd.f32 %v3864_v26, %v498_v33  ;;  %v1335_v38 = vadd.f32 %v3807_v59, %v1334_v34 }
 0x1e1   :  { %v1169_v40 = vsel %vm1040_vm14, %v917_v31, %v1105_v32 }
 0x1e2   :  { %vm595_vm2 = vcmp.gt.f32.partialorder %v499_v37, 0.0  ;;  %v660_v41 = vmul.f32 %v3569_v21, %v499_v37  ;;  %v1550_v42 = vmul.f32 %v3814_v2, %v1335_v38  ;;  %v1220_v43 = vpack.c.bf16 %v1169_v40, %v1168_v39 }
 0x1e3   :  { %vm1485_vm3 = vcmp.gt.f32.partialorder %v1335_v38, 0.0 }
 0x1e4   :  { %v919_v44 = vpop.f32.mrf.mxu1  ;;  %1376 = vmatmul.bf16.gmra.mxu2 %v1220_v43  ;;  %v724_v46 = vsel %vm595_vm2, %v499_v37, %v660_v41  ;;  %v1614_v48 = vsel %vm1485_vm3, %v1335_v38, %v1550_v42 }
 0x1e5   :  { %v766_v49 = vpack.c.bf16 %v724_v46, %v723_v45  ;;  %v1674_v50 = vpack.c.bf16 %v1614_v48, %v1613_v47  ;;  %v920_v54 = vadd.f32 %v3665_v55, %v919_v44 }
 0x1e7   :  { %v501_v52 = vpop.f32.mrf.mxu0  ;;  %958 = vmatmul.bf16.gmra.mxu1 %v766_v49  ;;  %v1337_v53 = vpop.f32.mrf.mxu2  ;;  %1794 = vmatmul.bf16.gmra.mxu3 %v1674_v50  ;;  %v1106_v61 = vmul.f32 %v3671_v60, %v920_v54  ;;  %vm1041_vm4 = vcmp.gt.f32.partialorder %v920_v54, 0.0 }
 0x1e8   :  { %v502_v56 = vadd.f32 %v3864_v26, %v501_v52  ;;  %v1338_v57 = vadd.f32 %v3807_v59, %v1337_v53 }
 0x1e9   :  { %v1170_v7 = vsel %vm1041_vm4, %v920_v54, %v1106_v61 }
 0x1ea   :  { %2811 = vmatmul.msk.bf16.gmra.mxu0 %vm285_vm0, %v2941_v51  ;;  %v661_v3 = vmul.f32 %v3569_v21, %v502_v56  ;;  %v1551_v4 = vmul.f32 %v3814_v2, %v1338_v57  ;;  %vm596_vm6 = vcmp.gt.f32.partialorder %v502_v56, 0.0  ;;  %vm1486_vm7 = vcmp.gt.f32.partialorder %v1338_v57, 0.0 }
 0x1ec   :  { %v921_v58 = vpop.f32.mrf.mxu1  ;;  %v725_v13 = vsel %vm596_vm6, %v502_v56, %v661_v3  ;;  %v1615_v15 = vsel %vm1486_vm7, %v1338_v57, %v1551_v4 }
 0x1ed   :  { %v922_v62 = vadd.f32 %v3665_v55, %v921_v58 }
 0x1ef   :  { %vm1042_vm5 = vcmp.gt.f32.partialorder %v922_v62, 0.0  ;;  %v1107_v63 = vmul.f32 %v3671_v60, %v922_v62  ;;  %v503_v0 = vpop.f32.mrf.mxu0  ;;  %v1339_v1 = vpop.f32.mrf.mxu2 }
 0x1f0   :  { %v504_v5 = vadd.f32 %v3864_v26, %v503_v0  ;;  %v1340_v6 = vadd.f32 %v3807_v59, %v1339_v1 }
 0x1f1   :  { %v1171_v8 = vsel %vm1042_vm5, %v922_v62, %v1107_v63 }
 0x1f2   :  { %vm597_vm8 = vcmp.gt.f32.partialorder %v504_v5, 0.0  ;;  %v662_v9 = vmul.f32 %v3569_v21, %v504_v5  ;;  %v1552_v10 = vmul.f32 %v3814_v2, %v1340_v6  ;;  %v1221_v11 = vpack.c.bf16 %v1171_v8, %v1170_v7 }
 0x1f3   :  { %vm1487_vm9 = vcmp.gt.f32.partialorder %v1340_v6, 0.0 }
 0x1f4   :  { %v924_v12 = vpop.f32.mrf.mxu1  ;;  %1381 = vmatmul.bf16.gmra.mxu2 %v1221_v11  ;;  %v726_v14 = vsel %vm597_vm8, %v504_v5, %v662_v9  ;;  %v1616_v16 = vsel %vm1487_vm9, %v1340_v6, %v1552_v10 }
 0x1f5   :  { %v767_v17 = vpack.c.bf16 %v726_v14, %v725_v13  ;;  %v1675_v18 = vpack.c.bf16 %v1616_v16, %v1615_v15  ;;  %v925_v23 = vadd.f32 %v3665_v55, %v924_v12 }
 0x1f7   :  { %v506_v20 = vpop.f32.mrf.mxu0  ;;  %963 = vmatmul.bf16.gmra.mxu1 %v767_v17  ;;  %v1342_v22 = vpop.f32.mrf.mxu2  ;;  %1799 = vmatmul.bf16.gmra.mxu3 %v1675_v18  ;;  %v1108_v28 = vmul.f32 %v3671_v60, %v925_v23  ;;  %vm1043_vm10 = vcmp.gt.f32.partialorder %v925_v23, 0.0  ;;  %v3924_v17 = vld [vmem:[%s4825_s5] ss:$0 sm:$0xff] }
 0x1f8   :  { %v507_v24 = vadd.f32 %v3864_v26, %v506_v20  ;;  %v1343_v25 = vadd.f32 %v3807_v59, %v1342_v22 }
 0x1f9   :  { %v1172_v37 = vsel %vm1043_vm10, %v925_v23, %v1108_v28 }
 0x1fa   :  { %2812 = vmatmul.msk.bf16.gmra.mxu0 %vm285_vm0, %v2942_v19  ;;  %v663_v33 = vmul.f32 %v3569_v21, %v507_v24  ;;  %v1553_v34 = vmul.f32 %v3814_v2, %v1343_v25  ;;  %vm598_vm0 = vcmp.gt.f32.partialorder %v507_v24, 0.0  ;;  %vm1488_vm12 = vcmp.gt.f32.partialorder %v1343_v25, 0.0 }
 0x1fc   :  { %v926_v27 = vpop.f32.mrf.mxu1  ;;  %v727_v43 = vsel %vm598_vm0, %v507_v24, %v663_v33  ;;  %v1617_v45 = vsel %vm1488_vm12, %v1343_v25, %v1553_v34 }
 0x1fd   :  { %v927_v29 = vadd.f32 %v3665_v55, %v926_v27 }
 0x1ff   :  { %vm1044_vm11 = vcmp.gt.f32.partialorder %v927_v29, 0.0  ;;  %v1109_v30 = vmul.f32 %v3671_v60, %v927_v29  ;;  %v508_v31 = vpop.f32.mrf.mxu0  ;;  %v1344_v32 = vpop.f32.mrf.mxu2 }
 0x200   :  { %v509_v35 = vadd.f32 %v3864_v26, %v508_v31  ;;  %v1345_v36 = vadd.f32 %v3807_v59, %v1344_v32 }
 0x201   :  { %v1173_v38 = vsel %vm1044_vm11, %v927_v29, %v1109_v30 }
 0x202   :  { %vm599_vm13 = vcmp.gt.f32.partialorder %v509_v35, 0.0  ;;  %v664_v39 = vmul.f32 %v3569_v21, %v509_v35  ;;  %v1554_v40 = vmul.f32 %v3814_v2, %v1345_v36  ;;  %v1222_v41 = vpack.c.bf16 %v1173_v38, %v1172_v37 }
 0x203   :  { %vm1489_vm14 = vcmp.gt.f32.partialorder %v1345_v36, 0.0 }
 0x204   :  { %v929_v42 = vpop.f32.mrf.mxu1  ;;  %1386 = vmatmul.bf16.gmra.mxu2 %v1222_v41  ;;  %v728_v44 = vsel %vm599_vm13, %v509_v35, %v664_v39  ;;  %v1618_v46 = vsel %vm1489_vm14, %v1345_v36, %v1554_v40 }
 0x205   :  { %v768_v47 = vpack.c.bf16 %v728_v44, %v727_v43  ;;  %v1676_v48 = vpack.c.bf16 %v1618_v46, %v1617_v45  ;;  %v930_v51 = vadd.f32 %v3665_v55, %v929_v42 }
 0x207   :  { %v511_v49 = vpop.f32.mrf.mxu0  ;;  %968 = vmatmul.bf16.gmra.mxu1 %v768_v47  ;;  %v1347_v50 = vpop.f32.mrf.mxu2  ;;  %1804 = vmatmul.bf16.gmra.mxu3 %v1676_v48  ;;  %v1110_v56 = vmul.f32 %v3671_v60, %v930_v51  ;;  %vm1045_vm15 = vcmp.gt.f32.partialorder %v930_v51, 0.0 }
 0x208   :  { %v512_v52 = vadd.f32 %v3864_v26, %v511_v49  ;;  %v1348_v53 = vadd.f32 %v3807_v59, %v1347_v50 }
 0x209   :  { %v1174_v4 = vsel %vm1045_vm15, %v930_v51, %v1110_v56 }
 0x20a   :  { %v665_v63 = vmul.f32 %v3569_v21, %v512_v52  ;;  %v1555_v0 = vmul.f32 %v3814_v2, %v1348_v53  ;;  %vm600_vm2 = vcmp.gt.f32.partialorder %v512_v52, 0.0  ;;  %vm1490_vm3 = vcmp.gt.f32.partialorder %v1348_v53, 0.0 }
 0x20c   :  { %v931_v54 = vpop.f32.mrf.mxu1  ;;  %v729_v9 = vsel %vm600_vm2, %v512_v52, %v665_v63  ;;  %v1619_v11 = vsel %vm1490_vm3, %v1348_v53, %v1555_v0 }
 0x20d   :  { %v932_v57 = vadd.f32 %v3665_v55, %v931_v54 }
 0x20f   :  { %vm1046_vm1 = vcmp.gt.f32.partialorder %v932_v57, 0.0  ;;  %v1111_v58 = vmul.f32 %v3671_v60, %v932_v57  ;;  %v513_v61 = vpop.f32.mrf.mxu0  ;;  %v1349_v62 = vpop.f32.mrf.mxu2 }
 0x210   :  { %v514_v1 = vadd.f32 %v3864_v26, %v513_v61  ;;  %v1350_v3 = vadd.f32 %v3807_v59, %v1349_v62 }
 0x211   :  { %v1175_v5 = vsel %vm1046_vm1, %v932_v57, %v1111_v58 }
 0x212   :  { %vm601_vm4 = vcmp.gt.f32.partialorder %v514_v1, 0.0  ;;  %v666_v55 = vmul.f32 %v3569_v21, %v514_v1  ;;  %v1556_v6 = vmul.f32 %v3814_v2, %v1350_v3  ;;  %v1223_v7 = vpack.c.bf16 %v1175_v5, %v1174_v4 }
 0x213   :  { %vm1491_vm5 = vcmp.gt.f32.partialorder %v1350_v3, 0.0 }
 0x214   :  { %v934_v8 = vpop.f32.mrf.mxu1  ;;  %1391 = vmatmul.bf16.gmra.mxu2 %v1223_v7  ;;  %v730_v10 = vsel %vm601_vm4, %v514_v1, %v666_v55  ;;  %v1620_v12 = vsel %vm1491_vm5, %v1350_v3, %v1556_v6 }
 0x215   :  { %v769_v13 = vpack.c.bf16 %v730_v10, %v729_v9  ;;  %v1677_v14 = vpack.c.bf16 %v1620_v12, %v1619_v11  ;;  %v935_v18 = vadd.f32 %v3924_v17, %v934_v8 }
 0x217   :  { %v516_v15 = vpop.f32.mrf.mxu0  ;;  %973 = vmatmul.bf16.gmra.mxu1 %v769_v13  ;;  %v1352_v16 = vpop.f32.mrf.mxu2  ;;  %1809 = vmatmul.bf16.gmra.mxu3 %v1677_v14  ;;  %v1112_v23 = vmul.f32 %v3671_v60, %v935_v18  ;;  %vm1047_vm6 = vcmp.gt.f32.partialorder %v935_v18, 0.0  ;;  %v3953_v13 = vld [vmem:[%s4829_s9] ss:$0 sm:$0xff] }
 0x218   :  { %v517_v19 = vadd.f32 %v3864_v26, %v516_v15  ;;  %v1353_v20 = vadd.f32 %v3807_v59, %v1352_v16 }
 0x219   :  { %v1176_v33 = vsel %vm1047_vm6, %v935_v18, %v1112_v23 }
 0x21a   :  { %v667_v29 = vmul.f32 %v3569_v21, %v517_v19  ;;  %v1557_v30 = vmul.f32 %v3814_v2, %v1353_v20  ;;  %vm602_vm8 = vcmp.gt.f32.partialorder %v517_v19, 0.0  ;;  %vm1492_vm9 = vcmp.gt.f32.partialorder %v1353_v20, 0.0 }
 0x21c   :  { %v936_v22 = vpop.f32.mrf.mxu1  ;;  %v731_v39 = vsel %vm602_vm8, %v517_v19, %v667_v29  ;;  %v1621_v41 = vsel %vm1492_vm9, %v1353_v20, %v1557_v30 }
 0x21d   :  { %v937_v24 = vadd.f32 %v3924_v17, %v936_v22 }
 0x21f   :  { %vm1048_vm7 = vcmp.gt.f32.partialorder %v937_v24, 0.0  ;;  %v1113_v25 = vmul.f32 %v3671_v60, %v937_v24  ;;  %v518_v27 = vpop.f32.mrf.mxu0  ;;  %v1354_v28 = vpop.f32.mrf.mxu2 }
 0x220   :  { %v519_v31 = vadd.f32 %v3864_v26, %v518_v27  ;;  %v1355_v32 = vadd.f32 %v3807_v59, %v1354_v28 }
 0x221   :  { %v1177_v34 = vsel %vm1048_vm7, %v937_v24, %v1113_v25 }
 0x222   :  { %vm603_vm10 = vcmp.gt.f32.partialorder %v519_v31, 0.0  ;;  %v668_v35 = vmul.f32 %v3569_v21, %v519_v31  ;;  %v1558_v36 = vmul.f32 %v3814_v2, %v1355_v32  ;;  %v1224_v37 = vpack.c.bf16 %v1177_v34, %v1176_v33 }
 0x223   :  { %vm1493_vm11 = vcmp.gt.f32.partialorder %v1355_v32, 0.0 }
 0x224   :  { %v939_v38 = vpop.f32.mrf.mxu1  ;;  %1396 = vmatmul.bf16.gmra.mxu2 %v1224_v37  ;;  %v732_v40 = vsel %vm603_vm10, %v519_v31, %v668_v35  ;;  %v1622_v42 = vsel %vm1493_vm11, %v1355_v32, %v1558_v36 }
 0x225   :  { %v770_v43 = vpack.c.bf16 %v732_v40, %v731_v39  ;;  %v1678_v44 = vpack.c.bf16 %v1622_v42, %v1621_v41  ;;  %v940_v47 = vadd.f32 %v3924_v17, %v939_v38 }
 0x227   :  { %v521_v45 = vpop.f32.mrf.mxu0  ;;  %978 = vmatmul.bf16.gmra.mxu1 %v770_v43  ;;  %v1357_v46 = vpop.f32.mrf.mxu2  ;;  %1814 = vmatmul.bf16.gmra.mxu3 %v1678_v44  ;;  %v1114_v51 = vmul.f32 %v3671_v60, %v940_v47  ;;  %vm1049_vm0 = vcmp.gt.f32.partialorder %v940_v47, 0.0 }
 0x228   :  { %v522_v48 = vadd.f32 %v3864_v26, %v521_v45  ;;  %v1358_v49 = vadd.f32 %v3807_v59, %v1357_v46 }
 0x229   :  { %v1178_v63 = vsel %vm1049_vm0, %v940_v47, %v1114_v51 }
 0x22a   :  { %v669_v57 = vmul.f32 %v3569_v21, %v522_v48  ;;  %v1559_v58 = vmul.f32 %v3814_v2, %v1358_v49  ;;  %vm604_vm13 = vcmp.gt.f32.partialorder %v522_v48, 0.0  ;;  %vm1494_vm14 = vcmp.gt.f32.partialorder %v1358_v49, 0.0 }
 0x22c   :  { %v941_v50 = vpop.f32.mrf.mxu1  ;;  %v733_v55 = vsel %vm604_vm13, %v522_v48, %v669_v57  ;;  %v1623_v7 = vsel %vm1494_vm14, %v1358_v49, %v1559_v58 }
 0x22d   :  { %v942_v52 = vadd.f32 %v3924_v17, %v941_v50 }
 0x22f   :  { %vm1050_vm12 = vcmp.gt.f32.partialorder %v942_v52, 0.0  ;;  %v1115_v53 = vmul.f32 %v3671_v60, %v942_v52  ;;  %v523_v54 = vpop.f32.mrf.mxu0  ;;  %v1359_v56 = vpop.f32.mrf.mxu2 }
 0x230   :  { %v524_v61 = vadd.f32 %v3864_v26, %v523_v54  ;;  %v1360_v62 = vadd.f32 %v3807_v59, %v1359_v56 }
 0x231   :  { %v1179_v0 = vsel %vm1050_vm12, %v942_v52, %v1115_v53 }
 0x232   :  { %vm605_vm15 = vcmp.gt.f32.partialorder %v524_v61, 0.0  ;;  %v670_v1 = vmul.f32 %v3569_v21, %v524_v61  ;;  %v1560_v3 = vmul.f32 %v3814_v2, %v1360_v62  ;;  %v1225_v4 = vpack.c.bf16 %v1179_v0, %v1178_v63 }
 0x233   :  { %vm1495_vm1 = vcmp.gt.f32.partialorder %v1360_v62, 0.0 }
 0x234   :  { %v944_v5 = vpop.f32.mrf.mxu1  ;;  %1401 = vmatmul.bf16.gmra.mxu2 %v1225_v4  ;;  %v734_v6 = vsel %vm605_vm15, %v524_v61, %v670_v1  ;;  %v1624_v8 = vsel %vm1495_vm1, %v1360_v62, %v1560_v3 }
 0x235   :  { %v771_v9 = vpack.c.bf16 %v734_v6, %v733_v55  ;;  %v1679_v10 = vpack.c.bf16 %v1624_v8, %v1623_v7  ;;  %v945_v14 = vadd.f32 %v3924_v17, %v944_v5 }
 0x237   :  { %v526_v11 = vpop.f32.mrf.mxu0  ;;  %983 = vmatmul.bf16.gmra.mxu1 %v771_v9  ;;  %v1362_v12 = vpop.f32.mrf.mxu2  ;;  %1819 = vmatmul.bf16.gmra.mxu3 %v1679_v10  ;;  %v1116_v22 = vmul.f32 %v3671_v60, %v945_v14  ;;  %vm1051_vm2 = vcmp.gt.f32.partialorder %v945_v14, 0.0 }
 0x238   :  { %v527_v18 = vadd.f32 %v3864_v26, %v526_v11  ;;  %v1363_v19 = vadd.f32 %v3807_v59, %v1362_v12 }
 0x239   :  { %v1180_v32 = vsel %vm1051_vm2, %v945_v14, %v1116_v22 }
 0x23a   :  { %v1780_v15 = vpop.f32.mrf.mxu3  ;;  %v671_v28 = vmul.f32 %v3569_v21, %v527_v18  ;;  %v1561_v29 = vmul.f32 %v3814_v2, %v1363_v19  ;;  %vm606_vm4 = vcmp.gt.f32.partialorder %v527_v18, 0.0  ;;  %vm1496_vm5 = vcmp.gt.f32.partialorder %v1363_v19, 0.0 }
 0x23b   :  { %v3957_v16 = vadd.f32 %v3953_v13, %v1780_v15 }
 0x23c   :  { %v946_v20 = vpop.f32.mrf.mxu1  ;;  %v735_v40 = vsel %vm606_vm4, %v527_v18, %v671_v28  ;;  %v1625_v42 = vsel %vm1496_vm5, %v1363_v19, %v1561_v29 }
 0x23d   :  { %v947_v23 = vadd.f32 %v3924_v17, %v946_v20  ;;  %1940 = vmax.xlane.f32.xlu0 %v3957_v16 }
 0x23f   :  { %vm1052_vm3 = vcmp.gt.f32.partialorder %v947_v23, 0.0  ;;  %v1117_v24 = vmul.f32 %v3671_v60, %v947_v23  ;;  %v528_v25 = vpop.f32.mrf.mxu0  ;;  %v1364_v27 = vpop.f32.mrf.mxu2 }
 0x240   :  { %v529_v30 = vadd.f32 %v3864_v26, %v528_v25  ;;  %v1365_v31 = vadd.f32 %v3807_v59, %v1364_v27 }
 0x241   :  { %v1181_v33 = vsel %vm1052_vm3, %v947_v23, %v1117_v24 }
 0x242   :  { %vm607_vm6 = vcmp.gt.f32.partialorder %v529_v30, 0.0  ;;  %v672_v34 = vmul.f32 %v3569_v21, %v529_v30  ;;  %v1562_v35 = vmul.f32 %v3814_v2, %v1365_v31  ;;  %v1782_v36 = vpop.f32.mrf.mxu3  ;;  %v1226_v37 = vpack.c.bf16 %v1181_v33, %v1180_v32 }
 0x243   :  { %v3972_v38 = vadd.f32 %v3953_v13, %v1782_v36  ;;  %vm1497_vm7 = vcmp.gt.f32.partialorder %v1365_v31, 0.0 }
 0x244   :  { %v949_v39 = vpop.f32.mrf.mxu1  ;;  %1406 = vmatmul.bf16.gmra.mxu2 %v1226_v37  ;;  %v736_v41 = vsel %vm607_vm6, %v529_v30, %v672_v34  ;;  %v1626_v43 = vsel %vm1497_vm7, %v1365_v31, %v1562_v35 }
 0x245   :  { %1942 = vmax.xlane.f32.xlu0 %v3972_v38  ;;  %v772_v44 = vpack.c.bf16 %v736_v41, %v735_v40  ;;  %v1680_v45 = vpack.c.bf16 %v1626_v43, %v1625_v42  ;;  %v950_v48 = vadd.f32 %v3924_v17, %v949_v39 }
 0x247   :  { %v531_v46 = vpop.f32.mrf.mxu0  ;;  %988 = vmatmul.bf16.gmra.mxu1 %v772_v44  ;;  %v1367_v47 = vpop.f32.mrf.mxu2  ;;  %1824 = vmatmul.bf16.gmra.mxu3 %v1680_v45  ;;  %v1118_v54 = vmul.f32 %v3671_v60, %v950_v48  ;;  %vm1053_vm8 = vcmp.gt.f32.partialorder %v950_v48, 0.0 }
 0x248   :  { %v532_v51 = vadd.f32 %v3864_v26, %v531_v46  ;;  %v1368_v52 = vadd.f32 %v3807_v59, %v1367_v47 }
 0x249   :  { %v1182_v3 = vsel %vm1053_vm8, %v950_v48, %v1118_v54 }
 0x24a   :  { %v1785_v49 = vpop.f32.mrf.mxu3  ;;  %v673_v62 = vmul.f32 %v3569_v21, %v532_v51  ;;  %v1563_v63 = vmul.f32 %v3814_v2, %v1368_v52  ;;  %vm608_vm10 = vcmp.gt.f32.partialorder %v532_v51, 0.0  ;;  %vm1498_vm11 = vcmp.gt.f32.partialorder %v1368_v52, 0.0 }
 0x24b   :  { %v3977_v50 = vadd.f32 %v3953_v13, %v1785_v49 }
 0x24c   :  { %v951_v53 = vpop.f32.mrf.mxu1  ;;  %v737_v10 = vsel %vm608_vm10, %v532_v51, %v673_v62  ;;  %v1627_v12 = vsel %vm1498_vm11, %v1368_v52, %v1563_v63 }
 0x24d   :  { %v952_v56 = vadd.f32 %v3924_v17, %v951_v53  ;;  %1944 = vmax.xlane.f32.xlu1 %v3977_v50 }
 0x24f   :  { %vm1054_vm9 = vcmp.gt.f32.partialorder %v952_v56, 0.0  ;;  %v1119_v57 = vmul.f32 %v3671_v60, %v952_v56  ;;  %v533_v58 = vpop.f32.mrf.mxu0  ;;  %v1369_v61 = vpop.f32.mrf.mxu2 }
 0x250   :  { %v534_v0 = vadd.f32 %v3864_v26, %v533_v58  ;;  %v1370_v1 = vadd.f32 %v3807_v59, %v1369_v61 }
 0x251   :  { %v1183_v4 = vsel %vm1054_vm9, %v952_v56, %v1119_v57 }
 0x252   :  { %vm609_vm0 = vcmp.gt.f32.partialorder %v534_v0, 0.0  ;;  %v674_v5 = vmul.f32 %v3569_v21, %v534_v0  ;;  %v1564_v55 = vmul.f32 %v3814_v2, %v1370_v1  ;;  %v1787_v6 = vpop.f32.mrf.mxu3  ;;  %v1227_v7 = vpack.c.bf16 %v1183_v4, %v1182_v3 }
 0x253   :  { %v3992_v8 = vadd.f32 %v3953_v13, %v1787_v6  ;;  %vm1499_vm12 = vcmp.gt.f32.partialorder %v1370_v1, 0.0 }
 0x254   :  { %v954_v9 = vpop.f32.mrf.mxu1  ;;  %1411 = vmatmul.bf16.gmra.mxu2 %v1227_v7  ;;  %v738_v11 = vsel %vm609_vm0, %v534_v0, %v674_v5  ;;  %v1628_v14 = vsel %vm1499_vm12, %v1370_v1, %v1564_v55 }
 0x255   :  { %1946 = vmax.xlane.f32.xlu1 %v3992_v8  ;;  %v773_v15 = vpack.c.bf16 %v738_v11, %v737_v10  ;;  %v1681_v18 = vpack.c.bf16 %v1628_v14, %v1627_v12  ;;  %v955_v22 = vadd.f32 %v3924_v17, %v954_v9 }
 0x257   :  { %v536_v19 = vpop.f32.mrf.mxu0  ;;  %993 = vmatmul.bf16.gmra.mxu1 %v773_v15  ;;  %v1372_v20 = vpop.f32.mrf.mxu2  ;;  %1829 = vmatmul.bf16.gmra.mxu3 %v1681_v18  ;;  %v1120_v29 = vmul.f32 %v3671_v60, %v955_v22  ;;  %vm1055_vm13 = vcmp.gt.f32.partialorder %v955_v22, 0.0 }
 0x258   :  { %v537_v25 = vadd.f32 %v3864_v26, %v536_v19  ;;  %v1373_v27 = vadd.f32 %v3807_v59, %v1372_v20 }
 0x259   :  { %v1184_v39 = vsel %vm1055_vm13, %v955_v22, %v1120_v29 }
 0x25a   :  { %v1790_v23 = vpop.f32.mrf.mxu3  ;;  %v675_v34 = vmul.f32 %v3569_v21, %v537_v25  ;;  %v1565_v35 = vmul.f32 %v3814_v2, %v1373_v27  ;;  %vm610_vm15 = vcmp.gt.f32.partialorder %v537_v25, 0.0  ;;  %vm1500_vm1 = vcmp.gt.f32.partialorder %v1373_v27, 0.0 }
 0x25b   :  { %v3997_v24 = vadd.f32 %v3953_v13, %v1790_v23 }
 0x25c   :  { %v956_v28 = vpop.f32.mrf.mxu1  ;;  %v739_v47 = vsel %vm610_vm15, %v537_v25, %v675_v34  ;;  %v1629_v49 = vsel %vm1500_vm1, %v1373_v27, %v1565_v35 }
 0x25d   :  { %v957_v30 = vadd.f32 %v3924_v17, %v956_v28  ;;  %1948 = vmax.xlane.f32.xlu2 %v3997_v24 }
 0x25f   :  { %vm1056_vm14 = vcmp.gt.f32.partialorder %v957_v30, 0.0  ;;  %v1121_v31 = vmul.f32 %v3671_v60, %v957_v30  ;;  %v538_v32 = vpop.f32.mrf.mxu0  ;;  %v1374_v33 = vpop.f32.mrf.mxu2 }
 0x260   :  { %v539_v36 = vadd.f32 %v3864_v26, %v538_v32  ;;  %v1375_v37 = vadd.f32 %v3807_v59, %v1374_v33 }
 0x261   :  { %v1185_v40 = vsel %vm1056_vm14, %v957_v30, %v1121_v31 }
 0x262   :  { %vm611_vm2 = vcmp.gt.f32.partialorder %v539_v36, 0.0  ;;  %v676_v41 = vmul.f32 %v3569_v21, %v539_v36  ;;  %v1566_v42 = vmul.f32 %v3814_v2, %v1375_v37  ;;  %v1792_v43 = vpop.f32.mrf.mxu3  ;;  %v1228_v44 = vpack.c.bf16 %v1185_v40, %v1184_v39 }
 0x263   :  { %v4012_v45 = vadd.f32 %v3953_v13, %v1792_v43  ;;  %vm1501_vm3 = vcmp.gt.f32.partialorder %v1375_v37, 0.0 }
 0x264   :  { %v959_v46 = vpop.f32.mrf.mxu1  ;;  %1416 = vmatmul.bf16.gmra.mxu2 %v1228_v44  ;;  %v740_v48 = vsel %vm611_vm2, %v539_v36, %v676_v41  ;;  %v1630_v51 = vsel %vm1501_vm3, %v1375_v37, %v1566_v42 }
 0x265   :  { %1950 = vmax.xlane.f32.xlu2 %v4012_v45  ;;  %v774_v52 = vpack.c.bf16 %v740_v48, %v739_v47  ;;  %v1682_v53 = vpack.c.bf16 %v1630_v51, %v1629_v49  ;;  %v960_v57 = vadd.f32 %v3924_v17, %v959_v46 }
 0x267   :  { %v541_v54 = vpop.f32.mrf.mxu0  ;;  %998 = vmatmul.bf16.gmra.mxu1 %v774_v52  ;;  %v1377_v56 = vpop.f32.mrf.mxu2  ;;  %1834 = vmatmul.bf16.gmra.mxu3 %v1682_v53  ;;  %v1122_v1 = vmul.f32 %v3671_v60, %v960_v57  ;;  %vm1057_vm4 = vcmp.gt.f32.partialorder %v960_v57, 0.0 }
 0x268   :  { %v542_v62 = vadd.f32 %v3864_v26, %v541_v54  ;;  %v1378_v63 = vadd.f32 %v3807_v59, %v1377_v56 }
 0x269   :  { %v1186_v11 = vsel %vm1057_vm4, %v960_v57, %v1122_v1 }
 0x26a   :  { %v1795_v58 = vpop.f32.mrf.mxu3  ;;  %v677_v6 = vmul.f32 %v3569_v21, %v542_v62  ;;  %v1567_v7 = vmul.f32 %v3814_v2, %v1378_v63  ;;  %vm612_vm6 = vcmp.gt.f32.partialorder %v542_v62, 0.0  ;;  %vm1502_vm7 = vcmp.gt.f32.partialorder %v1378_v63, 0.0 }
 0x26b   :  { %v4017_v61 = vadd.f32 %v3953_v13, %v1795_v58 }
 0x26c   :  { %v961_v0 = vpop.f32.mrf.mxu1  ;;  %v741_v23 = vsel %vm612_vm6, %v542_v62, %v677_v6  ;;  %v1631_v27 = vsel %vm1502_vm7, %v1378_v63, %v1567_v7 }
 0x26d   :  { %v962_v3 = vadd.f32 %v3924_v17, %v961_v0  ;;  %1952 = vmax.xlane.f32.xlu0 %v4017_v61 }
 0x26f   :  { %vm1058_vm5 = vcmp.gt.f32.partialorder %v962_v3, 0.0  ;;  %v1123_v4 = vmul.f32 %v3671_v60, %v962_v3  ;;  %v543_v5 = vpop.f32.mrf.mxu0  ;;  %v1379_v55 = vpop.f32.mrf.mxu2 }
 0x270   :  { %v544_v9 = vadd.f32 %v3864_v26, %v543_v5  ;;  %v1380_v10 = vadd.f32 %v3807_v59, %v1379_v55 }
 0x271   :  { %v1187_v12 = vsel %vm1058_vm5, %v962_v3, %v1123_v4 }
 0x272   :  { %vm613_vm8 = vcmp.gt.f32.partialorder %v544_v9, 0.0  ;;  %v678_v14 = vmul.f32 %v3569_v21, %v544_v9  ;;  %vm1503_vm9 = vcmp.gt.f32.partialorder %v1380_v10, 0.0  ;;  %v1568_v15 = vmul.f32 %v3814_v2, %v1380_v10  ;;  %v1797_v18 = vpop.f32.mrf.mxu3 }
 0x273   :  { %v1229_v19 = vpack.c.bf16 %v1187_v12, %v1186_v11  ;;  %v4032_v20 = vadd.f32 %v3953_v13, %v1797_v18 }
 0x274   :  { %v964_v22 = vpop.f32.mrf.mxu1  ;;  %v742_v25 = vsel %vm613_vm8, %v544_v9, %v678_v14  ;;  %v1632_v28 = vsel %vm1503_vm9, %v1380_v10, %v1568_v15 }
 0x275   :  { %1421 = vmatmul.bf16.gmra.mxu2 %v1229_v19  ;;  %1954 = vmax.xlane.f32.xlu1 %v4032_v20  ;;  %v775_v29 = vpack.c.bf16 %v742_v25, %v741_v23  ;;  %v1683_v30 = vpack.c.bf16 %v1632_v28, %v1631_v27  ;;  %v965_v33 = vadd.f32 %v3924_v17, %v964_v22 }
 0x277   :  { %v546_v31 = vpop.f32.mrf.mxu0  ;;  %1003 = vmatmul.bf16.gmra.mxu1 %v775_v29  ;;  %v1382_v32 = vpop.f32.mrf.mxu2  ;;  %1839 = vmatmul.bf16.gmra.mxu3 %v1683_v30  ;;  %v1124_v40 = vmul.f32 %v3671_v60, %v965_v33  ;;  %vm1059_vm10 = vcmp.gt.f32.partialorder %v965_v33, 0.0 }
 0x278   :  { %v547_v36 = vadd.f32 %v3864_v26, %v546_v31  ;;  %v1383_v37 = vadd.f32 %v3807_v59, %v1382_v32  ;;  %v4051_v59 = vld [vmem:[%s4827_s7] ss:$0 sm:$0xff] }
 0x279   :  { %v1188_v51 = vsel %vm1059_vm10, %v965_v33, %v1124_v40 }
 0x27a   :  { %v1800_v34 = vpop.f32.mrf.mxu3  ;;  %v679_v46 = vmul.f32 %v3569_v21, %v547_v36  ;;  %v1569_v47 = vmul.f32 %v3814_v2, %v1383_v37  ;;  %vm614_vm0 = vcmp.gt.f32.partialorder %v547_v36, 0.0  ;;  %vm1504_vm12 = vcmp.gt.f32.partialorder %v1383_v37, 0.0 }
 0x27b   :  { %v4037_v35 = vadd.f32 %v3953_v13, %v1800_v34 }
 0x27c   :  { %v966_v39 = vpop.f32.mrf.mxu1  ;;  %v743_v62 = vsel %vm614_vm0, %v547_v36, %v679_v46  ;;  %v1633_v0 = vsel %vm1504_vm12, %v1383_v37, %v1569_v47 }
 0x27d   :  { %v967_v41 = vadd.f32 %v3924_v17, %v966_v39  ;;  %1956 = vmax.xlane.f32.xlu2 %v4037_v35 }
 0x27f   :  { %vm1060_vm11 = vcmp.gt.f32.partialorder %v967_v41, 0.0  ;;  %v1125_v42 = vmul.f32 %v3671_v60, %v967_v41  ;;  %v548_v43 = vpop.f32.mrf.mxu0  ;;  %v1384_v44 = vpop.f32.mrf.mxu2 }
 0x280   :  { %v549_v48 = vadd.f32 %v3864_v26, %v548_v43  ;;  %v1385_v49 = vadd.f32 %v4051_v59, %v1384_v44 }
 0x281   :  { %v1189_v52 = vsel %vm1060_vm11, %v967_v41, %v1125_v42 }
 0x282   :  { %vm615_vm13 = vcmp.gt.f32.partialorder %v549_v48, 0.0  ;;  %v680_v53 = vmul.f32 %v3569_v21, %v549_v48  ;;  %vm1505_vm14 = vcmp.gt.f32.partialorder %v1385_v49, 0.0  ;;  %v1570_v54 = vmul.f32 %v3814_v2, %v1385_v49  ;;  %v1802_v56 = vpop.f32.mrf.mxu3 }
 0x283   :  { %v1230_v57 = vpack.c.bf16 %v1189_v52, %v1188_v51  ;;  %v4057_v26 = vadd.f32 %v3953_v13, %v1802_v56 }
 0x284   :  { %v969_v58 = vpop.f32.mrf.mxu1  ;;  %v744_v63 = vsel %vm615_vm13, %v549_v48, %v680_v53  ;;  %v1634_v1 = vsel %vm1505_vm14, %v1385_v49, %v1570_v54 }
 0x285   :  { %1426 = vmatmul.bf16.gmra.mxu2 %v1230_v57  ;;  %1958 = vmax.xlane.f32.xlu0 %v4057_v26  ;;  %v776_v3 = vpack.c.bf16 %v744_v63, %v743_v62  ;;  %v1684_v4 = vpack.c.bf16 %v1634_v1, %v1633_v0  ;;  %v970_v5 = vadd.f32 %v3924_v17, %v969_v58 }
 0x287   :  { %1008 = vmatmul.bf16.gmra.mxu1 %v776_v3  ;;  %v1387_v21 = vpop.f32.mrf.mxu2  ;;  %1844 = vmatmul.bf16.gmra.mxu3 %v1684_v4  ;;  %v1126_v10 = vmul.f32 %v3671_v60, %v970_v5  ;;  %vm1061_vm15 = vcmp.gt.f32.partialorder %v970_v5, 0.0 }
 0x288   :  { %v1388_v7 = vadd.f32 %v4051_v59, %v1387_v21 }
 0x289   :  { %v1190_v19 = vsel %vm1061_vm15, %v970_v5, %v1126_v10 }
 0x28a   :  { %v1805_v55 = vpop.f32.mrf.mxu3  ;;  %v1571_v15 = vmul.f32 %v3814_v2, %v1388_v7  ;;  %vm1506_vm2 = vcmp.gt.f32.partialorder %v1388_v7, 0.0 }
 0x28b   :  { %v4062_v6 = vadd.f32 %v3953_v13, %v1805_v55 }
 0x28c   :  { %v971_v9 = vpop.f32.mrf.mxu1  ;;  %v1635_v30 = vsel %vm1506_vm2, %v1388_v7, %v1571_v15 }
 0x28d   :  { %v972_v11 = vadd.f32 %v3924_v17, %v971_v9  ;;  %1960 = vmax.xlane.f32.xlu1 %v4062_v6 }
 0x28f   :  { %vm1062_vm1 = vcmp.gt.f32.partialorder %v972_v11, 0.0  ;;  %v1127_v12 = vmul.f32 %v3671_v60, %v972_v11  ;;  %v1389_v14 = vpop.f32.mrf.mxu2 }
 0x290   :  { %v1390_v18 = vadd.f32 %v4051_v59, %v1389_v14 }
 0x291   :  { %v1191_v22 = vsel %vm1062_vm1, %v972_v11, %v1127_v12 }
 0x292   :  { %vm1507_vm3 = vcmp.gt.f32.partialorder %v1390_v18, 0.0  ;;  %v1572_v23 = vmul.f32 %v3814_v2, %v1390_v18  ;;  %v1807_v25 = vpop.f32.mrf.mxu3  ;;  %v1231_v27 = vpack.c.bf16 %v1191_v22, %v1190_v19 }
 0x293   :  { %v4073_v28 = vadd.f32 %v3953_v13, %v1807_v25 }
 0x294   :  { %v974_v29 = vpop.f32.mrf.mxu1  ;;  %v1636_v31 = vsel %vm1507_vm3, %v1390_v18, %v1572_v23 }
 0x295   :  { %1431 = vmatmul.bf16.gmra.mxu2 %v1231_v27  ;;  %1962 = vmax.xlane.f32.xlu2 %v4073_v28  ;;  %v1685_v32 = vpack.c.bf16 %v1636_v31, %v1635_v30  ;;  %v975_v34 = vadd.f32 %v3924_v17, %v974_v29 }
 0x297   :  { %v1392_v33 = vpop.f32.mrf.mxu2  ;;  %1849 = vmatmul.bf16.gmra.mxu3 %v1685_v32  ;;  %v1128_v41 = vmul.f32 %v3671_v60, %v975_v34  ;;  %vm1063_vm4 = vcmp.gt.f32.partialorder %v975_v34, 0.0 }
 0x298   :  { %v1393_v39 = vadd.f32 %v4051_v59, %v1392_v33 }
 0x299   :  { %v1192_v48 = vsel %vm1063_vm4, %v975_v34, %v1128_v41 }
 0x29a   :  { %v1810_v36 = vpop.f32.mrf.mxu3  ;;  %v1573_v46 = vmul.f32 %v3814_v2, %v1393_v39  ;;  %vm1508_vm6 = vcmp.gt.f32.partialorder %v1393_v39, 0.0 }
 0x29b   :  { %v4078_v37 = vadd.f32 %v3953_v13, %v1810_v36 }
 0x29c   :  { %v976_v40 = vpop.f32.mrf.mxu1  ;;  %v1637_v57 = vsel %vm1508_vm6, %v1393_v39, %v1573_v46 }
 0x29d   :  { %v977_v42 = vadd.f32 %v3924_v17, %v976_v40  ;;  %1964 = vmax.xlane.f32.xlu0 %v4078_v37 }
 0x29f   :  { %vm1064_vm5 = vcmp.gt.f32.partialorder %v977_v42, 0.0  ;;  %v1129_v43 = vmul.f32 %v3671_v60, %v977_v42  ;;  %v1394_v44 = vpop.f32.mrf.mxu2 }
 0x2a0   :  { %v1395_v47 = vadd.f32 %v4051_v59, %v1394_v44 }
 0x2a1   :  { %v1193_v49 = vsel %vm1064_vm5, %v977_v42, %v1129_v43 }
 0x2a2   :  { %vm1509_vm7 = vcmp.gt.f32.partialorder %v1395_v47, 0.0  ;;  %v1574_v51 = vmul.f32 %v3814_v2, %v1395_v47  ;;  %v1812_v52 = vpop.f32.mrf.mxu3  ;;  %v1232_v53 = vpack.c.bf16 %v1193_v49, %v1192_v48 }
 0x2a3   :  { %v4089_v54 = vadd.f32 %v3953_v13, %v1812_v52 }
 0x2a4   :  { %v979_v56 = vpop.f32.mrf.mxu1  ;;  %v1638_v58 = vsel %vm1509_vm7, %v1395_v47, %v1574_v51 }
 0x2a5   :  { %1436 = vmatmul.bf16.gmra.mxu2 %v1232_v53  ;;  %1966 = vmax.xlane.f32.xlu1 %v4089_v54  ;;  %v1686_v62 = vpack.c.bf16 %v1638_v58, %v1637_v57  ;;  %v980_v0 = vadd.f32 %v3924_v17, %v979_v56 }
 0x2a7   :  { %v1397_v63 = vpop.f32.mrf.mxu2  ;;  %1854 = vmatmul.bf16.gmra.mxu3 %v1686_v62  ;;  %v1130_v5 = vmul.f32 %v3671_v60, %v980_v0  ;;  %vm1065_vm8 = vcmp.gt.f32.partialorder %v980_v0, 0.0 }
 0x2a8   :  { %v1398_v4 = vadd.f32 %v4051_v59, %v1397_v63 }
 0x2a9   :  { %v1194_v15 = vsel %vm1065_vm8, %v980_v0, %v1130_v5 }
 0x2aa   :  { %v1815_v1 = vpop.f32.mrf.mxu3  ;;  %v1575_v10 = vmul.f32 %v3814_v2, %v1398_v4  ;;  %vm1510_vm10 = vcmp.gt.f32.partialorder %v1398_v4, 0.0 }
 0x2ab   :  { %v4094_v3 = vadd.f32 %v3953_v13, %v1815_v1 }
 0x2ac   :  { %v981_v21 = vpop.f32.mrf.mxu1  ;;  %v1639_v30 = vsel %vm1510_vm10, %v1398_v4, %v1575_v10 }
 0x2ad   :  { %v982_v55 = vadd.f32 %v3924_v17, %v981_v21  ;;  %1968 = vmax.xlane.f32.xlu2 %v4094_v3 }
 0x2af   :  { %vm1066_vm9 = vcmp.gt.f32.partialorder %v982_v55, 0.0  ;;  %v1131_v7 = vmul.f32 %v3671_v60, %v982_v55  ;;  %v1399_v9 = vpop.f32.mrf.mxu2 }
 0x2b0   :  { %v1400_v11 = vadd.f32 %v4051_v59, %v1399_v9  ;;  %v1941_v12 = vpop.xlane.xlu0 %1940 }
 0x2b1   :  { %v2068_v14 = vsub.f32 %v3957_v16, %v1941_v12  ;;  %v1195_v18 = vsel %vm1066_vm9, %v982_v55, %v1131_v7 }
 0x2b2   :  { %vm1511_vm11 = vcmp.gt.f32.partialorder %v1400_v11, 0.0  ;;  %v1576_v19 = vmul.f32 %v3814_v2, %v1400_v11  ;;  %v1817_v22 = vpop.f32.mrf.mxu3  ;;  %v1233_v23 = vpack.c.bf16 %v1195_v18, %v1194_v15 }
 0x2b3   :  { %v2132_v25 = vmul.f32 1.442695, %v2068_v14  ;;  %v4106_v27 = vadd.f32 %v3953_v13, %v1817_v22 }
 0x2b4   :  { %v984_v29 = vpop.f32.mrf.mxu1  ;;  %v1640_v31 = vsel %vm1511_vm11, %v1400_v11, %v1576_v19 }
 0x2b5   :  { %3164 = vpow2.f32 %v2132_v25  ;;  %1441 = vmatmul.bf16.gmra.mxu2 %v1233_v23  ;;  %1970 = vmax.xlane.f32.xlu0 %v4106_v27  ;;  %v1687_v32 = vpack.c.bf16 %v1640_v31, %v1639_v30  ;;  %v985_v34 = vadd.f32 %v3924_v17, %v984_v29 }
 0x2b7   :  { %v1402_v16 = vpop.f32.mrf.mxu2  ;;  %1859 = vmatmul.bf16.gmra.mxu3 %v1687_v32  ;;  %v1132_v44 = vmul.f32 %v3671_v60, %v985_v34  ;;  %vm1067_vm0 = vcmp.gt.f32.partialorder %v985_v34, 0.0 }
 0x2b8   :  { %v1943_v33 = vpop.xlane.xlu0 %1942  ;;  %v1403_v42 = vadd.f32 %v4051_v59, %v1402_v16 }
 0x2b9   :  { %v2069_v36 = vsub.f32 %v3972_v38, %v1943_v33  ;;  %v1196_v53 = vsel %vm1067_vm0, %v985_v34, %v1132_v44 }
 0x2ba   :  { %v1820_v39 = vpop.f32.mrf.mxu3  ;;  %v1577_v38 = vmul.f32 %v3814_v2, %v1403_v42  ;;  %vm1512_vm13 = vcmp.gt.f32.partialorder %v1403_v42, 0.0 }
 0x2bb   :  { %v4111_v40 = vpop.eup %3164  ;;  %v2134_v41 = vmul.f32 1.442695, %v2069_v36  ;;  %v4122_v57 = vadd.f32 %v3953_v13, %v1820_v39 }
 0x2bc   :  { %v986_v43 = vpop.f32.mrf.mxu1  ;;  %2260 = vadd.xlane.f32.xlu1 %v4111_v40  ;;  %v1641_v21 = vsel %vm1512_vm13, %v1403_v42, %v1577_v38 }
 0x2bd   :  { %3166 = vpow2.f32 %v2134_v41  ;;  %v987_v46 = vadd.f32 %v3924_v17, %v986_v43 }
 0x2bf   :  { %vm1068_vm12 = vcmp.gt.f32.partialorder %v987_v46, 0.0  ;;  %v1133_v47 = vmul.f32 %v3671_v60, %v987_v46  ;;  %v1404_v48 = vpop.f32.mrf.mxu2 }
 0x2c0   :  { %v1405_v49 = vadd.f32 %v4051_v59, %v1404_v48  ;;  %v1945_v51 = vpop.xlane.xlu1 %1944 }
 0x2c1   :  { %v2070_v52 = vsub.f32 %v3977_v50, %v1945_v51  ;;  %v1197_v56 = vsel %vm1068_vm12, %v987_v46, %v1133_v47 }
 0x2c2   :  { %vm1513_vm14 = vcmp.gt.f32.partialorder %v1405_v49, 0.0  ;;  %v1578_v58 = vmul.f32 %v3814_v2, %v1405_v49  ;;  %v1822_v62 = vpop.f32.mrf.mxu3  ;;  %v1234_v63 = vpack.c.bf16 %v1197_v56, %v1196_v53 }
 0x2c3   :  { %v4125_v0 = vpop.eup %3166  ;;  %v2136_v1 = vmul.f32 1.442695, %v2070_v52  ;;  %v4132_v12 = vadd.f32 %v3953_v13, %v1822_v62 }
 0x2c4   :  { %v989_v4 = vpop.f32.mrf.mxu1  ;;  %1972 = vmax.xlane.f32.xlu1 %v4122_v57  ;;  %2262 = vadd.xlane.f32.xlu2 %v4125_v0  ;;  %v1642_v50 = vsel %vm1513_vm14, %v1405_v49, %v1578_v58 }
 0x2c5   :  { %3168 = vpow2.f32 %v2136_v1  ;;  %1446 = vmatmul.bf16.gmra.mxu2 %v1234_v63  ;;  %v1688_v5 = vpack.c.bf16 %v1642_v50, %v1641_v21  ;;  %v990_v9 = vadd.f32 %v3924_v17, %v989_v4 }
 0x2c7   :  { %v1407_v55 = vpop.f32.mrf.mxu2  ;;  %1864 = vmatmul.bf16.gmra.mxu3 %v1688_v5  ;;  %v1134_v22 = vmul.f32 %v3671_v60, %v990_v9  ;;  %vm1069_vm15 = vcmp.gt.f32.partialorder %v990_v9, 0.0 }
 0x2c8   :  { %v1947_v7 = vpop.xlane.xlu1 %1946  ;;  %v1408_v18 = vadd.f32 %v4051_v59, %v1407_v55 }
 0x2c9   :  { %v2071_v10 = vsub.f32 %v3992_v8, %v1947_v7  ;;  %v1198_v16 = vsel %vm1069_vm15, %v990_v9, %v1134_v22 }
 0x2ca   :  { %v1825_v11 = vpop.f32.mrf.mxu3  ;;  %v1579_v29 = vmul.f32 %v3814_v2, %v1408_v18  ;;  %vm1514_vm2 = vcmp.gt.f32.partialorder %v1408_v18, 0.0 }
 0x2cb   :  { %v4134_v14 = vpop.eup %3168  ;;  %v2138_v15 = vmul.f32 1.442695, %v2071_v10  ;;  %v4146_v34 = vadd.f32 %v3953_v13, %v1825_v11 }
 0x2cc   :  { %v991_v19 = vpop.f32.mrf.mxu1  ;;  %2264 = vadd.xlane.f32.xlu0 %v4134_v14  ;;  %1974 = vmax.xlane.f32.xlu2 %v4132_v12  ;;  %v1643_v46 = vsel %vm1514_vm2, %v1408_v18, %v1579_v29 }
 0x2cd   :  { %3170 = vpow2.f32 %v2138_v15  ;;  %v992_v23 = vadd.f32 %v3924_v17, %v991_v19 }
 0x2cf   :  { %vm1070_vm1 = vcmp.gt.f32.partialorder %v992_v23, 0.0  ;;  %v1135_v8 = vmul.f32 %v3671_v60, %v992_v23  ;;  %v1409_v25 = vpop.f32.mrf.mxu2 }
 0x2d0   :  { %v1410_v30 = vadd.f32 %v4051_v59, %v1409_v25  ;;  %v1949_v31 = vpop.xlane.xlu2 %1948 }
 0x2d1   :  { %v2072_v32 = vsub.f32 %v3997_v24, %v1949_v31  ;;  %v1199_v33 = vsel %vm1070_vm1, %v992_v23, %v1135_v8 }
 0x2d2   :  { %vm1515_vm3 = vcmp.gt.f32.partialorder %v1410_v30, 0.0  ;;  %v1580_v36 = vmul.f32 %v3814_v2, %v1410_v30  ;;  %v1827_v39 = vpop.f32.mrf.mxu3  ;;  %v1235_v41 = vpack.c.bf16 %v1199_v33, %v1198_v16 }
 0x2d3   :  { %v4149_v42 = vpop.eup %3170  ;;  %v2140_v43 = vmul.f32 1.442695, %v2072_v32  ;;  %v4156_v53 = vadd.f32 %v3953_v13, %v1827_v39 }
 0x2d4   :  { %v994_v44 = vpop.f32.mrf.mxu1  ;;  %1976 = vmax.xlane.f32.xlu0 %v4146_v34  ;;  %2266 = vadd.xlane.f32.xlu1 %v4149_v42  ;;  %v1644_v24 = vsel %vm1515_vm3, %v1410_v30, %v1580_v36 }
 0x2d5   :  { %3172 = vpow2.f32 %v2140_v43  ;;  %1451 = vmatmul.bf16.gmra.mxu2 %v1235_v41  ;;  %v1689_v47 = vpack.c.bf16 %v1644_v24, %v1643_v46  ;;  %v995_v49 = vadd.f32 %v3924_v17, %v994_v44 }
 0x2d7   :  { %v1412_v48 = vpop.f32.mrf.mxu2  ;;  %1869 = vmatmul.bf16.gmra.mxu3 %v1689_v47  ;;  %v1136_v1 = vmul.f32 %v3671_v60, %v995_v49  ;;  %vm1071_vm4 = vcmp.gt.f32.partialorder %v995_v49, 0.0 }
 0x2d8   :  { %v1951_v38 = vpop.xlane.xlu2 %1950  ;;  %v1413_v62 = vadd.f32 %v4051_v59, %v1412_v48 }
 0x2d9   :  { %v2073_v51 = vsub.f32 %v4012_v45, %v1951_v38  ;;  %v1200_v9 = vsel %vm1071_vm4, %v995_v49, %v1136_v1 }
 0x2da   :  { %v1830_v52 = vpop.f32.mrf.mxu3  ;;  %v1581_v50 = vmul.f32 %v3814_v2, %v1413_v62  ;;  %vm1516_vm6 = vcmp.gt.f32.partialorder %v1413_v62, 0.0 }
 0x2db   :  { %v4158_v56 = vpop.eup %3172  ;;  %v2142_v58 = vmul.f32 1.442695, %v2073_v51  ;;  %v4170_v11 = vadd.f32 %v3953_v13, %v1830_v52 }
 0x2dc   :  { %v996_v63 = vpop.f32.mrf.mxu1  ;;  %1978 = vmax.xlane.f32.xlu1 %v4156_v53  ;;  %2268 = vadd.xlane.f32.xlu2 %v4158_v56  ;;  %v1645_v25 = vsel %vm1516_vm6, %v1413_v62, %v1581_v50 }
 0x2dd   :  { %3174 = vpow2.f32 %v2142_v58  ;;  %v997_v4 = vadd.f32 %v3924_v17, %v996_v63 }
 0x2df   :  { %vm1072_vm5 = vcmp.gt.f32.partialorder %v997_v4, 0.0  ;;  %v1137_v45 = vmul.f32 %v3671_v60, %v997_v4  ;;  %v1414_v21 = vpop.f32.mrf.mxu2 }
 0x2e0   :  { %v1415_v5 = vadd.f32 %v4051_v59, %v1414_v21  ;;  %v1953_v55 = vpop.xlane.xlu0 %1952 }
 0x2e1   :  { %v2074_v7 = vsub.f32 %v4017_v61, %v1953_v55  ;;  %v1201_v10 = vsel %vm1072_vm5, %v997_v4, %v1137_v45 }
 0x2e2   :  { %vm1517_vm7 = vcmp.gt.f32.partialorder %v1415_v5, 0.0  ;;  %v1582_v15 = vmul.f32 %v3814_v2, %v1415_v5  ;;  %v1832_v18 = vpop.f32.mrf.mxu3  ;;  %v1236_v19 = vpack.c.bf16 %v1201_v10, %v1200_v9 }
 0x2e3   :  { %v4173_v22 = vpop.eup %3174  ;;  %v2144_v23 = vmul.f32 1.442695, %v2074_v7  ;;  %v4180_v36 = vadd.f32 %v3953_v13, %v1832_v18 }
 0x2e4   :  { %v999_v8 = vpop.f32.mrf.mxu1  ;;  %2270 = vadd.xlane.f32.xlu0 %v4173_v22  ;;  %1980 = vmax.xlane.f32.xlu2 %v4170_v11  ;;  %v1646_v61 = vsel %vm1517_vm7, %v1415_v5, %v1582_v15 }
 0x2e5   :  { %3176 = vpow2.f32 %v2144_v23  ;;  %1456 = vmatmul.bf16.gmra.mxu2 %v1236_v19  ;;  %v1690_v29 = vpack.c.bf16 %v1646_v61, %v1645_v25  ;;  %v1000_v32 = vadd.f32 %v3924_v17, %v999_v8  ;;  %v4191_v17 = vld [vmem:[%s4825_s5] ss:$0 sm:$0xff] }
 0x2e7   :  { %v1417_v30 = vpop.f32.mrf.mxu2  ;;  %1874 = vmatmul.bf16.gmra.mxu3 %v1690_v29  ;;  %v1138_v46 = vmul.f32 %v3671_v60, %v1000_v32  ;;  %vm1073_vm8 = vcmp.gt.f32.partialorder %v1000_v32, 0.0 }
 0x2e8   :  { %v1955_v31 = vpop.xlane.xlu1 %1954  ;;  %v1418_v43 = vadd.f32 %v4051_v59, %v1417_v30 }
 0x2e9   :  { %v2075_v16 = vsub.f32 %v4032_v20, %v1955_v31  ;;  %v1202_v52 = vsel %vm1073_vm8, %v1000_v32, %v1138_v46 }
 0x2ea   :  { %v1835_v33 = vpop.f32.mrf.mxu3  ;;  %v1583_v48 = vmul.f32 %v3814_v2, %v1418_v43  ;;  %vm1518_vm10 = vcmp.gt.f32.partialorder %v1418_v43, 0.0 }
 0x2eb   :  { %v4182_v39 = vpop.eup %3176  ;;  %v2146_v41 = vmul.f32 1.442695, %v2075_v16  ;;  %v4199_v62 = vadd.f32 %v3953_v13, %v1835_v33 }
 0x2ec   :  { %v1001_v44 = vpop.f32.mrf.mxu1  ;;  %1982 = vmax.xlane.f32.xlu0 %v4180_v36  ;;  %2272 = vadd.xlane.f32.xlu1 %v4182_v39  ;;  %v1647_v5 = vsel %vm1518_vm10, %v1418_v43, %v1583_v48 }
 0x2ed   :  { %3178 = vpow2.f32 %v2146_v41  ;;  %v1002_v20 = vadd.f32 %v4191_v17, %v1001_v44 }
 0x2ef   :  { %vm1074_vm9 = vcmp.gt.f32.partialorder %v1002_v20, 0.0  ;;  %v1139_v24 = vmul.f32 %v3671_v60, %v1002_v20  ;;  %v1419_v47 = vpop.f32.mrf.mxu2 }
 0x2f0   :  { %v1420_v38 = vadd.f32 %v4051_v59, %v1419_v47  ;;  %v1957_v49 = vpop.xlane.xlu2 %1956 }
 0x2f1   :  { %v2076_v51 = vsub.f32 %v4037_v35, %v1957_v49  ;;  %v1203_v58 = vsel %vm1074_vm9, %v1002_v20, %v1139_v24 }
 0x2f2   :  { %vm1519_vm11 = vcmp.gt.f32.partialorder %v1420_v38, 0.0  ;;  %v1584_v63 = vmul.f32 %v3814_v2, %v1420_v38  ;;  %v1837_v1 = vpop.f32.mrf.mxu3  ;;  %v1237_v4 = vpack.c.bf16 %v1203_v58, %v1202_v52 }
 0x2f3   :  { %v4202_v45 = vpop.eup %3178  ;;  %v2148_v21 = vmul.f32 1.442695, %v2076_v51  ;;  %v4209_v19 = vadd.f32 %v3953_v13, %v1837_v1 }
 0x2f4   :  { %v1004_v50 = vpop.f32.mrf.mxu1  ;;  %2274 = vadd.xlane.f32.xlu2 %v4202_v45  ;;  %1984 = vmax.xlane.f32.xlu1 %v4199_v62  ;;  %v1648_v35 = vsel %vm1519_vm11, %v1420_v38, %v1584_v63 }
 0x2f5   :  { %3180 = vpow2.f32 %v2148_v21  ;;  %1461 = vmatmul.bf16.gmra.mxu2 %v1237_v4  ;;  %v1691_v55 = vpack.c.bf16 %v1648_v35, %v1647_v5  ;;  %v1005_v7 = vadd.f32 %v4191_v17, %v1004_v50  ;;  %v4235_v21 = vld [vmem:[%s4829_s9] ss:$0 sm:$0xff] }
 0x2f7   :  { %1879 = vmatmul.bf16.gmra.mxu3 %v1691_v55  ;;  %v1140_v25 = vmul.f32 %v3671_v60, %v1005_v7  ;;  %vm1075_vm0 = vcmp.gt.f32.partialorder %v1005_v7, 0.0 }
 0x2f8   :  { %v1422_v9 = vpop.f32.mrf.mxu2  ;;  %v1959_v10 = vpop.xlane.xlu0 %1958 }
 0x2f9   :  { %v2077_v15 = vsub.f32 %v4057_v26, %v1959_v10  ;;  %v1423_v29 = vadd.f32 %v4051_v59, %v1422_v9  ;;  %v1204_v16 = vsel %vm1075_vm0, %v1005_v7, %v1140_v25 }
 0x2fa   :  { %v1840_v18 = vpop.f32.mrf.mxu3 }
 0x2fb   :  { %v4211_v23 = vpop.eup %3180  ;;  %v2150_v8 = vmul.f32 1.442695, %v2077_v15  ;;  %v1585_v33 = vmul.f32 %v3814_v2, %v1423_v29  ;;  %vm1520_vm13 = vcmp.gt.f32.partialorder %v1423_v29, 0.0  ;;  %v4223_v46 = vadd.f32 %v3953_v13, %v1840_v18 }
 0x2fc   :  { %v1006_v61 = vpop.f32.mrf.mxu1  ;;  %2276 = vadd.xlane.f32.xlu0 %v4211_v23  ;;  %1986 = vmax.xlane.f32.xlu2 %v4209_v19 }
 0x2fd   :  { %3182 = vpow2.f32 %v2150_v8  ;;  %v1007_v26 = vadd.f32 %v4191_v17, %v1006_v61 }
 0x2ff   :  { %vm1076_vm12 = vcmp.gt.f32.partialorder %v1007_v26, 0.0  ;;  %v1141_v30 = vmul.f32 %v3671_v60, %v1007_v26 }
 0x300   :  { %v1424_v31 = vpop.f32.mrf.mxu2  ;;  %v1961_v32 = vpop.xlane.xlu1 %1960 }
 0x301   :  { %v1425_v41 = vadd.f32 %v4051_v59, %v1424_v31  ;;  %v2078_v43 = vsub.f32 %v4062_v6, %v1961_v32  ;;  %v1205_v44 = vsel %vm1076_vm12, %v1007_v26, %v1141_v30  ;;  %v1649_v6 = vsel %vm1520_vm13, %v1423_v29, %v1585_v33 }
 0x302   :  { %v1842_v20 = vpop.f32.mrf.mxu3  ;;  %v1238_v24 = vpack.c.bf16 %v1205_v44, %v1204_v16 }
 0x303   :  { %v4225_v47 = vpop.eup %3182  ;;  %vm1521_vm14 = vcmp.gt.f32.partialorder %v1425_v41, 0.0  ;;  %v1586_v48 = vmul.f32 %v3814_v2, %v1425_v41  ;;  %v2152_v38 = vmul.f32 1.442695, %v2078_v43  ;;  %v4238_v50 = vadd.f32 %v4235_v21, %v1842_v20 }
 0x304   :  { %v1009_v49 = vpop.f32.mrf.mxu1  ;;  %1988 = vmax.xlane.f32.xlu0 %v4223_v46  ;;  %2278 = vadd.xlane.f32.xlu1 %v4225_v47 }
 0x305   :  { %3184 = vpow2.f32 %v2152_v38  ;;  %1466 = vmatmul.bf16.gmra.mxu2 %v1238_v24  ;;  %v1650_v51 = vsel %vm1521_vm14, %v1425_v41, %v1586_v48  ;;  %v1010_v13 = vadd.f32 %v4191_v17, %v1009_v49 }
 0x306   :  { %v1692_v52 = vpack.c.bf16 %v1650_v51, %v1649_v6 }
 0x307   :  { %v1142_v55 = vmul.f32 %v3671_v60, %v1010_v13  ;;  %vm1077_vm15 = vcmp.gt.f32.partialorder %v1010_v13, 0.0 }
 0x308   :  { %v1427_v58 = vpop.f32.mrf.mxu2  ;;  %1884 = vmatmul.bf16.gmra.mxu3 %v1692_v52  ;;  %v1963_v63 = vpop.xlane.xlu2 %1962 }
 0x309   :  { %v2079_v1 = vsub.f32 %v4073_v28, %v1963_v63  ;;  %v1428_v28 = vadd.f32 %v4051_v59, %v1427_v58  ;;  %v1206_v8 = vsel %vm1077_vm15, %v1010_v13, %v1142_v55 }
 0x30a   :  { %v1845_v4 = vpop.f32.mrf.mxu3 }
 0x30b   :  { %v4240_v5 = vpop.eup %3184  ;;  %v2154_v35 = vmul.f32 1.442695, %v2079_v1  ;;  %v1587_v25 = vmul.f32 %v3814_v2, %v1428_v28  ;;  %vm1522_vm2 = vcmp.gt.f32.partialorder %v1428_v28, 0.0  ;;  %v4252_v30 = vadd.f32 %v4235_v21, %v1845_v4 }
 0x30c   :  { %v1011_v7 = vpop.f32.mrf.mxu1  ;;  %2280 = vadd.xlane.f32.xlu2 %v4240_v5  ;;  %1990 = vmax.xlane.f32.xlu1 %v4238_v50 }
 0x30d   :  { %3186 = vpow2.f32 %v2154_v35  ;;  %v1012_v9 = vadd.f32 %v4191_v17, %v1011_v7 }
 0x30f   :  { %vm1078_vm1 = vcmp.gt.f32.partialorder %v1012_v9, 0.0  ;;  %v1143_v10 = vmul.f32 %v3671_v60, %v1012_v9 }
 0x310   :  { %v1429_v15 = vpop.f32.mrf.mxu2  ;;  %v1965_v18 = vpop.xlane.xlu0 %1964 }
 0x311   :  { %v1430_v61 = vadd.f32 %v4051_v59, %v1429_v15  ;;  %v2080_v29 = vsub.f32 %v4078_v37, %v1965_v18  ;;  %v1207_v26 = vsel %vm1078_vm1, %v1012_v9, %v1143_v10  ;;  %v1651_v37 = vsel %vm1522_vm2, %v1428_v28, %v1587_v25 }
 0x312   :  { %v1847_v31 = vpop.f32.mrf.mxu3  ;;  %v1239_v32 = vpack.c.bf16 %v1207_v26, %v1206_v8 }
 0x313   :  { %v4254_v17 = vpop.eup %3186  ;;  %vm1523_vm3 = vcmp.gt.f32.partialorder %v1430_v61, 0.0  ;;  %v1588_v60 = vmul.f32 %v3814_v2, %v1430_v61  ;;  %v2156_v16 = vmul.f32 1.442695, %v2080_v29  ;;  %v4261_v48 = vadd.f32 %v4235_v21, %v1847_v31 }
 0x314   :  { %2282 = vadd.xlane.f32.xlu0 %v4254_v17  ;;  %1992 = vmax.xlane.f32.xlu2 %v4252_v30 }
 0x315   :  { %3188 = vpow2.f32 %v2156_v16  ;;  %1471 = vmatmul.bf16.gmra.mxu2 %v1239_v32  ;;  %v1652_v33 = vsel %vm1523_vm3, %v1430_v61, %v1588_v60 }
 0x316   :  { %v1693_v41 = vpack.c.bf16 %v1652_v33, %v1651_v37 }
 0x318   :  { %v1432_v43 = vpop.f32.mrf.mxu2  ;;  %1889 = vmatmul.bf16.gmra.mxu3 %v1693_v41  ;;  %v1967_v44 = vpop.xlane.xlu1 %1966 }
 0x319   :  { %v2081_v20 = vsub.f32 %v4089_v54, %v1967_v44  ;;  %v1433_v6 = vadd.f32 %v4051_v59, %v1432_v43 }
 0x31a   :  { %v1850_v24 = vpop.f32.mrf.mxu3 }
 0x31b   :  { %v4263_v38 = vpop.eup %3188  ;;  %v2158_v49 = vmul.f32 1.442695, %v2081_v20  ;;  %v1589_v13 = vmul.f32 %v3814_v2, %v1433_v6  ;;  %vm1524_vm4 = vcmp.gt.f32.partialorder %v1433_v6, 0.0  ;;  %v4272_v63 = vadd.f32 %v4235_v21, %v1850_v24 }
 0x31c   :  { %1994 = vmax.xlane.f32.xlu0 %v4261_v48  ;;  %2284 = vadd.xlane.f32.xlu1 %v4263_v38 }
 0x31d   :  { %3190 = vpow2.f32 %v2158_v49  ;;  %v1653_v7 = vsel %vm1524_vm4, %v1433_v6, %v1589_v13 }
 0x320   :  { %v1434_v51 = vpop.f32.mrf.mxu2  ;;  %v1969_v52 = vpop.xlane.xlu2 %1968 }
 0x321   :  { %v1435_v54 = vadd.f32 %v4051_v59, %v1434_v51  ;;  %v2082_v58 = vsub.f32 %v4094_v3, %v1969_v52 }
 0x322   :  { %v1852_v1 = vpop.f32.mrf.mxu3 }
 0x323   :  { %v4274_v4 = vpop.eup %3190  ;;  %vm1525_vm5 = vcmp.gt.f32.partialorder %v1435_v54, 0.0  ;;  %v1590_v35 = vmul.f32 %v3814_v2, %v1435_v54  ;;  %v2160_v55 = vmul.f32 1.442695, %v2082_v58  ;;  %v4281_v8 = vadd.f32 %v4235_v21, %v1852_v1 }
 0x324   :  { %2286 = vadd.xlane.f32.xlu2 %v4274_v4  ;;  %1996 = vmax.xlane.f32.xlu1 %v4272_v63 }
 0x325   :  { %3192 = vpow2.f32 %v2160_v55  ;;  %v1654_v28 = vsel %vm1525_vm5, %v1435_v54, %v1590_v35 }
 0x326   :  { %v1694_v9 = vpack.c.bf16 %v1654_v28, %v1653_v7 }
 0x328   :  { %v1437_v3 = vpop.f32.mrf.mxu2  ;;  %1894 = vmatmul.bf16.gmra.mxu3 %v1694_v9  ;;  %v1971_v10 = vpop.xlane.xlu0 %1970 }
 0x329   :  { %v2083_v15 = vsub.f32 %v4106_v27, %v1971_v10  ;;  %v1438_v29 = vadd.f32 %v4051_v59, %v1437_v3 }
 0x32a   :  { %v1855_v18 = vpop.f32.mrf.mxu3 }
 0x32b   :  { %v4283_v25 = vpop.eup %3192  ;;  %v2162_v61 = vmul.f32 1.442695, %v2083_v15  ;;  %v1591_v32 = vmul.f32 %v3814_v2, %v1438_v29  ;;  %vm1526_vm6 = vcmp.gt.f32.partialorder %v1438_v29, 0.0  ;;  %v4291_v60 = vadd.f32 %v4235_v21, %v1855_v18 }
 0x32c   :  { %2288 = vadd.xlane.f32.xlu0 %v4283_v25  ;;  %1998 = vmax.xlane.f32.xlu2 %v4281_v8 }
 0x32d   :  { %3194 = vpow2.f32 %v2162_v61  ;;  %v1655_v41 = vsel %vm1526_vm6, %v1438_v29, %v1591_v32 }
 0x32f   :  { %v2261_v26 = vpop.xlane.xlu1 %2260 }
 0x330   :  { %v1439_v31 = vpop.f32.mrf.mxu2  ;;  %3196 = vrcp.f32 %v2261_v26 }
 0x331   :  { %v1440_v27 = vadd.f32 %v4051_v59, %v1439_v31 }
 0x332   :  { %v1857_v16 = vpop.f32.mrf.mxu3 }
 0x333   :  { %v4293_v37 = vpop.eup %3194  ;;  %vm1527_vm7 = vcmp.gt.f32.partialorder %v1440_v27, 0.0  ;;  %v1592_v33 = vmul.f32 %v3814_v2, %v1440_v27  ;;  %v4300_v13 = vadd.f32 %v4235_v21, %v1857_v16 }
 0x334   :  { %2000 = vmax.xlane.f32.xlu0 %v4291_v60  ;;  %2290 = vadd.xlane.f32.xlu1 %v4293_v37 }
 0x335   :  { %v1656_v43 = vsel %vm1527_vm7, %v1440_v27, %v1592_v33 }
 0x336   :  { %v1695_v44 = vpack.c.bf16 %v1656_v43, %v1655_v41  ;;  %v3197_v54 = vpop.eup %3196 }
 0x337   :  { %v1973_v20 = vpop.xlane.xlu1 %1972  ;;  %v2263_v24 = vpop.xlane.xlu2 %2262  ;;  %v2452_v35 = vmul.f32 %v3197_v54, %v4111_v40 }
 0x338   :  { %v1442_v49 = vpop.f32.mrf.mxu2  ;;  %1899 = vmatmul.bf16.gmra.mxu3 %v1695_v44  ;;  %v2084_v6 = vsub.f32 %v4122_v57, %v1973_v20  ;;  %3198 = vrcp.f32 %v2263_v24 }
 0x339   :  { %v1443_v58 = vadd.f32 %v4051_v59, %v1442_v49 }
 0x33a   :  { %v2164_v51 = vmul.f32 1.442695, %v2084_v6  ;;  %v1860_v52 = vpop.f32.mrf.mxu3 }
 0x33b   :  { %v1593_v3 = vmul.f32 %v3814_v2, %v1443_v58  ;;  %vm1528_vm8 = vcmp.gt.f32.partialorder %v1443_v58, 0.0  ;;  %v4318_v33 = vadd.f32 %v4235_v21, %v1860_v52 }
 0x33c   :  { %3200 = vpow2.f32 %v2164_v51  ;;  %2002 = vmax.xlane.f32.xlu1 %v4300_v13 }
 0x33e   :  { %v3199_v1 = vpop.eup %3198 }
 0x33f   :  { %v2453_v55 = vmul.f32 %v3199_v1, %v4125_v0  ;;  %v1975_v7 = vpop.xlane.xlu2 %1974  ;;  %v2265_v28 = vpop.xlane.xlu0 %2264  ;;  %v1657_v0 = vsel %vm1528_vm8, %v1443_v58, %v1593_v3 }
 0x340   :  { %v1444_v57 = vpop.f32.mrf.mxu2  ;;  %v2085_v9 = vsub.f32 %v4132_v12, %v1975_v7 }
 0x341   :  { %v2971_v10 = vpack.c.bf16 %v2453_v55, %v2452_v35  ;;  %v1445_v15 = vadd.f32 %v4051_v59, %v1444_v57 }
 0x342   :  { %v4309_v18 = vpop.eup %3200  ;;  %v2166_v61 = vmul.f32 1.442695, %v2085_v9  ;;  %v1862_v29 = vpop.f32.mrf.mxu3 }
 0x343   :  { %2972 = vst [vmem:[%s4830_s10] sm:$0xff] %v2971_v10   ;;  %vm1529_vm9 = vcmp.gt.f32.partialorder %v1445_v15, 0.0  ;;  %v1594_v40 = vmul.f32 %v3814_v2, %v1445_v15  ;;  %2292 = vadd.xlane.f32.xlu2 %v4309_v18  ;;  %v4331_v7 = vadd.f32 %v4235_v21, %v1862_v29 }
 0x344   :  { %3202 = vpow2.f32 %v2166_v61 }
 0x345   :  { %v1658_v12 = vsel %vm1529_vm9, %v1445_v15, %v1594_v40  ;;  %3204 = vrcp.f32 %v2265_v28 }
 0x346   :  { %v1696_v26 = vpack.c.bf16 %v1658_v12, %v1657_v0 }
 0x347   :  { %v2267_v31 = vpop.xlane.xlu1 %2266  ;;  %v1977_v32 = vpop.xlane.xlu0 %1976 }
 0x348   :  { %v1447_v27 = vpop.f32.mrf.mxu2  ;;  %1904 = vmatmul.bf16.gmra.mxu3 %v1696_v26  ;;  %3206 = vrcp.f32 %v2267_v31  ;;  %v2086_v16 = vsub.f32 %v4146_v34, %v1977_v32  ;;  %v4352_v31 = vld [vmem:[%s4827_s7] ss:$0 sm:$0xff] }
 0x349   :  { %v1448_v24 = vadd.f32 %v4051_v59, %v1447_v27 }
 0x34a   :  { %v4320_v41 = vpop.eup %3202  ;;  %v2168_v43 = vmul.f32 1.442695, %v2086_v16  ;;  %v1865_v44 = vpop.f32.mrf.mxu3 }
 0x34b   :  { %2004 = vmax.xlane.f32.xlu2 %v4318_v33  ;;  %2294 = vadd.xlane.f32.xlu0 %v4320_v41  ;;  %v3205_v20 = vpop.eup %3204  ;;  %v1595_v1 = vmul.f32 %v3814_v2, %v1448_v24  ;;  %vm1530_vm10 = vcmp.gt.f32.partialorder %v1448_v24, 0.0  ;;  %v4343_v29 = vadd.f32 %v4235_v21, %v1865_v44 }
 0x34c   :  { %3208 = vpow2.f32 %v2168_v43  ;;  %v2454_v6 = vmul.f32 %v3205_v20, %v4134_v14 }
 0x34e   :  { %v3207_v49 = vpop.eup %3206 }
 0x34f   :  { %v2455_v34 = vmul.f32 %v3207_v49, %v4149_v42  ;;  %v1979_v51 = vpop.xlane.xlu1 %1978  ;;  %v2269_v52 = vpop.xlane.xlu2 %2268 }
 0x350   :  { %v1449_v54 = vpop.f32.mrf.mxu2  ;;  %v2087_v58 = vsub.f32 %v4156_v53, %v1979_v51 }
 0x351   :  { %v2976_v35 = vpack.c.bf16 %v2455_v34, %v2454_v6  ;;  %v1450_v55 = vadd.f32 %v4051_v59, %v1449_v54  ;;  %v1659_v59 = vsel %vm1530_vm10, %v1448_v24, %v1595_v1 }
 0x352   :  { %v4333_v28 = vpop.eup %3208  ;;  %v2170_v57 = vmul.f32 1.442695, %v2087_v58  ;;  %v1867_v14 = vpop.f32.mrf.mxu3 }
 0x353   :  { %3128 = vst [vmem:[%s4830_s10 + $0x8] sm:$0xff] %v2976_v35   ;;  %vm1531_vm11 = vcmp.gt.f32.partialorder %v1450_v55, 0.0  ;;  %v1596_v42 = vmul.f32 %v3814_v2, %v1450_v55  ;;  %2006 = vmax.xlane.f32.xlu0 %v4331_v7  ;;  %2296 = vadd.xlane.f32.xlu1 %v4333_v28  ;;  %v4361_v51 = vadd.f32 %v4235_v21, %v1867_v14 }
 0x354   :  { %3210 = vpow2.f32 %v2170_v57 }
 0x355   :  { %v1660_v53 = vsel %vm1531_vm11, %v1450_v55, %v1596_v42  ;;  %3212 = vrcp.f32 %v2269_v52 }
 0x356   :  { %v1697_v9 = vpack.c.bf16 %v1660_v53, %v1659_v59 }
 0x357   :  { %v1981_v3 = vpop.xlane.xlu2 %1980  ;;  %v2271_v10 = vpop.xlane.xlu0 %2270 }
 0x358   :  { %v1452_v15 = vpop.f32.mrf.mxu2  ;;  %1909 = vmatmul.bf16.gmra.mxu3 %v1697_v9  ;;  %v2088_v61 = vsub.f32 %v4170_v11, %v1981_v3  ;;  %3214 = vrcp.f32 %v2271_v10 }
 0x359   :  { %v1453_v11 = vadd.f32 %v4352_v31, %v1452_v15 }
 0x35a   :  { %v4345_v40 = vpop.eup %3210  ;;  %v2172_v0 = vmul.f32 1.442695, %v2088_v61  ;;  %v1870_v12 = vpop.f32.mrf.mxu3 }
 0x35b   :  { %2298 = vadd.xlane.f32.xlu2 %v4345_v40  ;;  %2008 = vmax.xlane.f32.xlu1 %v4343_v29  ;;  %v3213_v26 = vpop.eup %3212  ;;  %v1597_v49 = vmul.f32 %v3814_v2, %v1453_v11  ;;  %vm1532_vm0 = vcmp.gt.f32.partialorder %v1453_v11, 0.0  ;;  %v4373_v42 = vadd.f32 %v4235_v21, %v1870_v12 }
 0x35c   :  { %3216 = vpow2.f32 %v2172_v0  ;;  %v2456_v27 = vmul.f32 %v3213_v26, %v4158_v56 }
 0x35e   :  { %v3215_v32 = vpop.eup %3214 }
 0x35f   :  { %v2457_v16 = vmul.f32 %v3215_v32, %v4173_v22  ;;  %v2273_v43 = vpop.xlane.xlu1 %2272  ;;  %v1983_v44 = vpop.xlane.xlu0 %1982 }
 0x360   :  { %v1454_v20 = vpop.f32.mrf.mxu2  ;;  %v2089_v24 = vsub.f32 %v4180_v36, %v1983_v44  ;;  %v1661_v36 = vsel %vm1532_vm0, %v1453_v11, %v1597_v49 }
 0x361   :  { %v2981_v6 = vpack.c.bf16 %v2457_v16, %v2456_v27  ;;  %v1455_v34 = vadd.f32 %v4352_v31, %v1454_v20 }
 0x362   :  { %v4363_v52 = vpop.eup %3216  ;;  %v2174_v54 = vmul.f32 1.442695, %v2089_v24  ;;  %v1872_v56 = vpop.f32.mrf.mxu3 }
 0x363   :  { %3129 = vst [vmem:[%s4830_s10 + $0x10] sm:$0xff] %v2981_v6   ;;  %vm1533_vm12 = vcmp.gt.f32.partialorder %v1455_v34, 0.0  ;;  %v1598_v22 = vmul.f32 %v3814_v2, %v1455_v34  ;;  %2010 = vmax.xlane.f32.xlu2 %v4361_v51  ;;  %2300 = vadd.xlane.f32.xlu0 %v4363_v52 }
 0x364   :  { %3218 = vpow2.f32 %v2174_v54 }
 0x365   :  { %v1662_v58 = vsel %vm1533_vm12, %v1455_v34, %v1598_v22  ;;  %3220 = vrcp.f32 %v2273_v43  ;;  %v4386_v43 = vadd.f32 %v4235_v21, %v1872_v56 }
 0x366   :  { %v1698_v1 = vpack.c.bf16 %v1662_v58, %v1661_v36 }
 0x367   :  { %v2275_v35 = vpop.xlane.xlu2 %2274  ;;  %v1985_v55 = vpop.xlane.xlu1 %1984 }
 0x368   :  { %v1457_v57 = vpop.f32.mrf.mxu2  ;;  %1914 = vmatmul.bf16.gmra.mxu3 %v1698_v1  ;;  %3222 = vrcp.f32 %v2275_v35  ;;  %v2090_v14 = vsub.f32 %v4199_v62, %v1985_v55 }
 0x369   :  { %v1458_v10 = vadd.f32 %v4352_v31, %v1457_v57 }
 0x36a   :  { %v4375_v59 = vpop.eup %3218  ;;  %v2176_v53 = vmul.f32 1.442695, %v2090_v14  ;;  %v1875_v9 = vpop.f32.mrf.mxu3 }
 0x36b   :  { %2012 = vmax.xlane.f32.xlu0 %v4373_v42  ;;  %2302 = vadd.xlane.f32.xlu1 %v4375_v59  ;;  %v3221_v3 = vpop.eup %3220  ;;  %v1599_v32 = vmul.f32 %v3814_v2, %v1458_v10  ;;  %vm1534_vm13 = vcmp.gt.f32.partialorder %v1458_v10, 0.0  ;;  %v4398_v22 = vadd.f32 %v4235_v21, %v1875_v9 }
 0x36c   :  { %3224 = vpow2.f32 %v2176_v53  ;;  %v2458_v61 = vmul.f32 %v3221_v3, %v4182_v39 }
 0x36e   :  { %v3223_v15 = vpop.eup %3222 }
 0x36f   :  { %v2459_v62 = vmul.f32 %v3223_v15, %v4202_v45  ;;  %v1987_v0 = vpop.xlane.xlu2 %1986  ;;  %v2277_v12 = vpop.xlane.xlu0 %2276 }
 0x370   :  { %v1459_v26 = vpop.f32.mrf.mxu2  ;;  %v2091_v11 = vsub.f32 %v4209_v19, %v1987_v0  ;;  %v1663_v19 = vsel %vm1534_vm13, %v1458_v10, %v1599_v32 }
 0x371   :  { %v2986_v27 = vpack.c.bf16 %v2459_v62, %v2458_v61  ;;  %v1460_v16 = vadd.f32 %v4352_v31, %v1459_v26 }
 0x372   :  { %v4388_v44 = vpop.eup %3224  ;;  %v2178_v20 = vmul.f32 1.442695, %v2091_v11  ;;  %v1877_v39 = vpop.f32.mrf.mxu3 }
 0x373   :  { %3130 = vst [vmem:[%s4830_s10 + $0x18] sm:$0xff] %v2986_v27   ;;  %vm1535_vm14 = vcmp.gt.f32.partialorder %v1460_v16, 0.0  ;;  %v1600_v45 = vmul.f32 %v3814_v2, %v1460_v16  ;;  %2304 = vadd.xlane.f32.xlu2 %v4388_v44  ;;  %2014 = vmax.xlane.f32.xlu1 %v4386_v43  ;;  %v4411_v0 = vadd.f32 %v4235_v21, %v1877_v39 }
 0x374   :  { %3226 = vpow2.f32 %v2178_v20 }
 0x375   :  { %v1664_v24 = vsel %vm1535_vm14, %v1460_v16, %v1600_v45  ;;  %3228 = vrcp.f32 %v2277_v12 }
 0x376   :  { %v1699_v49 = vpack.c.bf16 %v1664_v24, %v1663_v19 }
 0x377   :  { %v2279_v6 = vpop.xlane.xlu1 %2278  ;;  %v1989_v34 = vpop.xlane.xlu0 %1988 }
 0x378   :  { %v1462_v54 = vpop.f32.mrf.mxu2  ;;  %1919 = vmatmul.bf16.gmra.mxu3 %v1699_v49  ;;  %3230 = vrcp.f32 %v2279_v6  ;;  %v2092_v56 = vsub.f32 %v4223_v46, %v1989_v34 }
 0x379   :  { %v1463_v55 = vadd.f32 %v4352_v31, %v1462_v54 }
 0x37a   :  { %v4400_v36 = vpop.eup %3226  ;;  %v2180_v58 = vmul.f32 1.442695, %v2092_v56  ;;  %v1880_v1 = vpop.f32.mrf.mxu3 }
 0x37b   :  { %2306 = vadd.xlane.f32.xlu0 %v4400_v36  ;;  %2016 = vmax.xlane.f32.xlu2 %v4398_v22  ;;  %v3229_v35 = vpop.eup %3228  ;;  %v1601_v15 = vmul.f32 %v3814_v2, %v1463_v55  ;;  %vm1536_vm15 = vcmp.gt.f32.partialorder %v1463_v55, 0.0  ;;  %v4423_v45 = vadd.f32 %v4235_v21, %v1880_v1 }
 0x37c   :  { %3232 = vpow2.f32 %v2180_v58  ;;  %v2460_v14 = vmul.f32 %v3229_v35, %v4211_v23 }
 0x37e   :  { %v3231_v57 = vpop.eup %3230 }
 0x37f   :  { %v2461_v46 = vmul.f32 %v3231_v57, %v4225_v47  ;;  %v2281_v53 = vpop.xlane.xlu2 %2280  ;;  %v1991_v9 = vpop.xlane.xlu1 %1990 }
 0x380   :  { %v1464_v3 = vpop.f32.mrf.mxu2  ;;  %v2093_v10 = vsub.f32 %v4238_v50, %v1991_v9  ;;  %v1665_v50 = vsel %vm1536_vm15, %v1463_v55, %v1601_v15 }
 0x381   :  { %v2991_v61 = vpack.c.bf16 %v2461_v46, %v2460_v14  ;;  %v1465_v62 = vadd.f32 %v4352_v31, %v1464_v3 }
 0x382   :  { %v4413_v12 = vpop.eup %3232  ;;  %v2182_v26 = vmul.f32 1.442695, %v2093_v10  ;;  %v1882_v23 = vpop.f32.mrf.mxu3 }
 0x383   :  { %3131 = vst [vmem:[%s4830_s10 + $0x20] sm:$0xff] %v2991_v61   ;;  %vm1537_vm1 = vcmp.gt.f32.partialorder %v1465_v62, 0.0  ;;  %v1602_v47 = vmul.f32 %v3814_v2, %v1465_v62  ;;  %2018 = vmax.xlane.f32.xlu0 %v4411_v0  ;;  %2308 = vadd.xlane.f32.xlu1 %v4413_v12  ;;  %v4434_v57 = vadd.f32 %v4235_v21, %v1882_v23 }
 0x384   :  { %3234 = vpow2.f32 %v2182_v26 }
 0x385   :  { %v1666_v11 = vsel %vm1537_vm1, %v1465_v62, %v1602_v47  ;;  %3236 = vrcp.f32 %v2281_v53 }
 0x386   :  { %v1700_v32 = vpack.c.bf16 %v1666_v11, %v1665_v50 }
 0x387   :  { %v1993_v27 = vpop.xlane.xlu2 %1992  ;;  %v2283_v16 = vpop.xlane.xlu0 %2282 }
 0x388   :  { %v1467_v20 = vpop.f32.mrf.mxu2  ;;  %1924 = vmatmul.bf16.gmra.mxu3 %v1700_v32  ;;  %v2094_v39 = vsub.f32 %v4252_v30, %v1993_v27  ;;  %3238 = vrcp.f32 %v2283_v16 }
 0x389   :  { %v1468_v34 = vadd.f32 %v4352_v31, %v1467_v20 }
 0x38a   :  { %v4425_v19 = vpop.eup %3234  ;;  %v2184_v24 = vmul.f32 1.442695, %v2094_v39 }
 0x38b   :  { %v1885_v49 = vpop.f32.mrf.mxu3  ;;  %2310 = vadd.xlane.f32.xlu2 %v4425_v19  ;;  %2020 = vmax.xlane.f32.xlu1 %v4423_v45  ;;  %v3237_v6 = vpop.eup %3236  ;;  %v1603_v14 = vmul.f32 %v3814_v2, %v1468_v34  ;;  %vm1538_vm2 = vcmp.gt.f32.partialorder %v1468_v34, 0.0 }
 0x38c   :  { %3240 = vpow2.f32 %v2184_v24  ;;  %v2462_v56 = vmul.f32 %v3237_v6, %v4240_v5  ;;  %v4448_v47 = vadd.f32 %v4235_v21, %v1885_v49 }
 0x38e   :  { %v3239_v54 = vpop.eup %3238 }
 0x38f   :  { %v2463_v30 = vmul.f32 %v3239_v54, %v4254_v17  ;;  %v2285_v58 = vpop.xlane.xlu1 %2284  ;;  %v1995_v1 = vpop.xlane.xlu0 %1994 }
 0x390   :  { %v1469_v35 = vpop.f32.mrf.mxu2  ;;  %v2095_v55 = vsub.f32 %v4261_v48, %v1995_v1  ;;  %v1667_v48 = vsel %vm1538_vm2, %v1468_v34, %v1603_v14 }
 0x391   :  { %v2996_v46 = vpack.c.bf16 %v2463_v30, %v2462_v56  ;;  %v1470_v53 = vadd.f32 %v4352_v31, %v1469_v35 }
 0x392   :  { %v4438_v9 = vpop.eup %3240  ;;  %v2186_v3 = vmul.f32 1.442695, %v2095_v55 }
 0x393   :  { %3132 = vst [vmem:[%s4830_s10 + $0x28] sm:$0xff] %v2996_v46   ;;  %vm1539_vm3 = vcmp.gt.f32.partialorder %v1470_v53, 0.0  ;;  %v1604_v5 = vmul.f32 %v3814_v2, %v1470_v53  ;;  %v1887_v17 = vpop.f32.mrf.mxu3  ;;  %2312 = vadd.xlane.f32.xlu0 %v4438_v9  ;;  %2022 = vmax.xlane.f32.xlu2 %v4434_v57 }
 0x394   :  { %3242 = vpow2.f32 %v2186_v3  ;;  %v4459_v54 = vadd.f32 %v4235_v21, %v1887_v17 }
 0x395   :  { %v1668_v10 = vsel %vm1539_vm3, %v1470_v53, %v1604_v5  ;;  %3244 = vrcp.f32 %v2285_v58 }
 0x396   :  { %v1701_v15 = vpack.c.bf16 %v1668_v10, %v1667_v48 }
 0x397   :  { %v2287_v61 = vpop.xlane.xlu2 %2286  ;;  %v1997_v62 = vpop.xlane.xlu1 %1996 }
 0x398   :  { %v1472_v26 = vpop.f32.mrf.mxu2  ;;  %1929 = vmatmul.bf16.gmra.mxu3 %v1701_v15  ;;  %3246 = vrcp.f32 %v2287_v61  ;;  %v2096_v23 = vsub.f32 %v4272_v63, %v1997_v62 }
 0x399   :  { %v1473_v16 = vadd.f32 %v4352_v31, %v1472_v26 }
 0x39a   :  { %v4450_v50 = vpop.eup %3242  ;;  %v2188_v11 = vmul.f32 1.442695, %v2096_v23 }
 0x39b   :  { %v1890_v32 = vpop.f32.mrf.mxu3  ;;  %2024 = vmax.xlane.f32.xlu0 %v4448_v47  ;;  %2314 = vadd.xlane.f32.xlu1 %v4450_v50  ;;  %v3245_v27 = vpop.eup %3244  ;;  %v1605_v56 = vmul.f32 %v3814_v2, %v1473_v16  ;;  %vm1540_vm4 = vcmp.gt.f32.partialorder %v1473_v16, 0.0 }
 0x39c   :  { %3248 = vpow2.f32 %v2188_v11  ;;  %v2464_v39 = vmul.f32 %v3245_v27, %v4263_v38  ;;  %v4473_v3 = vadd.f32 %v4235_v21, %v1890_v32 }
 0x39e   :  { %v3247_v20 = vpop.eup %3246 }
 0x39f   :  { %v2465_v63 = vmul.f32 %v3247_v20, %v4274_v4  ;;  %v1999_v24 = vpop.xlane.xlu2 %1998  ;;  %v2289_v49 = vpop.xlane.xlu0 %2288 }
 0x3a0   :  { %v1474_v6 = vpop.f32.mrf.mxu2  ;;  %v2097_v34 = vsub.f32 %v4281_v8, %v1999_v24  ;;  %v1669_v8 = vsel %vm1540_vm4, %v1473_v16, %v1605_v56 }
 0x3a1   :  { %v3001_v30 = vpack.c.bf16 %v2465_v63, %v2464_v39  ;;  %v1475_v58 = vadd.f32 %v4352_v31, %v1474_v6 }
 0x3a2   :  { %v4463_v1 = vpop.eup %3248  ;;  %v2190_v35 = vmul.f32 1.442695, %v2097_v34 }
 0x3a3   :  { %3133 = vst [vmem:[%s4830_s10 + $0x30] sm:$0xff] %v3001_v30   ;;  %vm1541_vm5 = vcmp.gt.f32.partialorder %v1475_v58, 0.0  ;;  %v1606_v38 = vmul.f32 %v3814_v2, %v1475_v58  ;;  %v1892_v4 = vpop.f32.mrf.mxu3  ;;  %2316 = vadd.xlane.f32.xlu2 %v4463_v1  ;;  %2026 = vmax.xlane.f32.xlu1 %v4459_v54 }
 0x3a4   :  { %3250 = vpow2.f32 %v2190_v35  ;;  %v4483_v26 = vadd.f32 %v4235_v21, %v1892_v4 }
 0x3a5   :  { %v1670_v55 = vsel %vm1541_vm5, %v1475_v58, %v1606_v38  ;;  %3252 = vrcp.f32 %v2289_v49 }
 0x3a6   :  { %v1702_v31 = vpack.c.bf16 %v1670_v55, %v1669_v8 }
 0x3a7   :  { %v2291_v14 = vpop.xlane.xlu1 %2290  ;;  %v2001_v46 = vpop.xlane.xlu0 %2000 }
 0x3a8   :  { %1934 = vmatmul.bf16.gmra.mxu3 %v1702_v31  ;;  %3254 = vrcp.f32 %v2291_v14  ;;  %v2098_v53 = vsub.f32 %v4291_v60, %v2001_v46 }
 0x3aa   :  { %v4475_v2 = vpop.eup %3250  ;;  %v2192_v5 = vmul.f32 1.442695, %v2098_v53 }
 0x3ab   :  { %v1895_v17 = vpop.f32.mrf.mxu3  ;;  %2318 = vadd.xlane.f32.xlu0 %v4475_v2  ;;  %2028 = vmax.xlane.f32.xlu2 %v4473_v3  ;;  %v3253_v48 = vpop.eup %3252 }
 0x3ac   :  { %3256 = vpow2.f32 %v2192_v5  ;;  %v2466_v15 = vmul.f32 %v3253_v48, %v4283_v25 }
 0x3ae   :  { %v3255_v10 = vpop.eup %3254 }
 0x3af   :  { %v2467_v61 = vmul.f32 %v3255_v10, %v4293_v37  ;;  %v2003_v62 = vpop.xlane.xlu1 %2002  ;;  %v4493_v37 = vadd.f32 %v4235_v21, %v1895_v17 }
 0x3b0   :  { %v2099_v60 = vsub.f32 %v4300_v13, %v2003_v62 }
 0x3b1   :  { %v3006_v23 = vpack.c.bf16 %v2467_v61, %v2466_v15 }
 0x3b2   :  { %v4485_v11 = vpop.eup %3256  ;;  %v2194_v32 = vmul.f32 1.442695, %v2099_v60 }
 0x3b3   :  { %3134 = vst [vmem:[%s4830_s10 + $0x38] sm:$0xff] %v3006_v23   ;;  %v1897_v27 = vpop.f32.mrf.mxu3  ;;  %2030 = vmax.xlane.f32.xlu0 %v4483_v26  ;;  %2320 = vadd.xlane.f32.xlu1 %v4485_v11 }
 0x3b4   :  { %3258 = vpow2.f32 %v2194_v32  ;;  %v4501_v24 = vadd.f32 %v4235_v21, %v1897_v27 }
 0x3b6   :  { %v2293_v25 = vpop.xlane.xlu2 %2292 }
 0x3b7   :  { %3260 = vrcp.f32 %v2293_v25 }
 0x3ba   :  { %v4495_v13 = vpop.eup %3258 }
 0x3bb   :  { %v1900_v16 = vpop.f32.mrf.mxu3  ;;  %2322 = vadd.xlane.f32.xlu2 %v4495_v13  ;;  %2032 = vmax.xlane.f32.xlu1 %v4493_v37 }
 0x3bd   :  { %v3261_v6 = vpop.eup %3260 }
 0x3be   :  { %v2005_v20 = vpop.xlane.xlu2 %2004  ;;  %v2295_v39 = vpop.xlane.xlu0 %2294  ;;  %v2468_v30 = vmul.f32 %v3261_v6, %v4309_v18 }
 0x3bf   :  { %v2100_v63 = vsub.f32 %v4318_v33, %v2005_v20  ;;  %3262 = vrcp.f32 %v2295_v39 }
 0x3c1   :  { %v2196_v49 = vmul.f32 1.442695, %v2100_v63 }
 0x3c3   :  { %3264 = vpow2.f32 %v2196_v49  ;;  %v1902_v34 = vpop.f32.mrf.mxu3  ;;  %2034 = vmax.xlane.f32.xlu2 %v4501_v24 }
 0x3c4   :  { %v4525_v60 = vadd.f32 %v4235_v21, %v1902_v34 }
 0x3c5   :  { %v3263_v56 = vpop.eup %3262 }
 0x3c6   :  { %v2469_v58 = vmul.f32 %v3263_v56, %v4320_v41  ;;  %v2297_v35 = vpop.xlane.xlu1 %2296  ;;  %v2007_v38 = vpop.xlane.xlu0 %2006 }
 0x3c7   :  { %v2101_v4 = vsub.f32 %v4331_v7, %v2007_v38  ;;  %v4515_v7 = vadd.f32 %v4235_v21, %v1900_v16 }
 0x3c8   :  { %v3011_v33 = vpack.c.bf16 %v2469_v58, %v2468_v30 }
 0x3c9   :  { %v4507_v8 = vpop.eup %3264  ;;  %v2198_v55 = vmul.f32 1.442695, %v2101_v4 }
 0x3ca   :  { %3135 = vst [vmem:[%s4830_s10 + $0x40] sm:$0xff] %v3011_v33   ;;  %2324 = vadd.xlane.f32.xlu0 %v4507_v8 }
 0x3cb   :  { %3266 = vpow2.f32 %v2198_v55  ;;  %v1905_v31 = vpop.f32.mrf.mxu3 }
 0x3cc   :  { %3268 = vrcp.f32 %v2297_v35  ;;  %v4536_v16 = vadd.f32 %v4235_v21, %v1905_v31 }
 0x3ce   :  { %v2299_v18 = vpop.xlane.xlu2 %2298  ;;  %v2009_v14 = vpop.xlane.xlu1 %2008 }
 0x3cf   :  { %3270 = vrcp.f32 %v2299_v18  ;;  %v2102_v41 = vsub.f32 %v4343_v29, %v2009_v14 }
 0x3d1   :  { %v4517_v46 = vpop.eup %3266  ;;  %v2200_v53 = vmul.f32 1.442695, %v2102_v41 }
 0x3d2   :  { %2036 = vmax.xlane.f32.xlu0 %v4515_v7  ;;  %2326 = vadd.xlane.f32.xlu1 %v4517_v46  ;;  %v3269_v5 = vpop.eup %3268 }
 0x3d3   :  { %3272 = vpow2.f32 %v2200_v53  ;;  %v1907_v17 = vpop.f32.mrf.mxu3  ;;  %v2470_v10 = vmul.f32 %v3269_v5, %v4333_v28 }
 0x3d4   :  { %v4546_v35 = vadd.f32 %v4235_v21, %v1907_v17 }
 0x3d5   :  { %v3271_v48 = vpop.eup %3270 }
 0x3d6   :  { %v2471_v15 = vmul.f32 %v3271_v48, %v4345_v40  ;;  %v2011_v61 = vpop.xlane.xlu2 %2010  ;;  %v2301_v29 = vpop.xlane.xlu0 %2300 }
 0x3d7   :  { %v2103_v62 = vsub.f32 %v4361_v51, %v2011_v61 }
 0x3d8   :  { %v3016_v23 = vpack.c.bf16 %v2471_v15, %v2470_v10 }
 0x3d9   :  { %v4527_v32 = vpop.eup %3272  ;;  %v2202_v27 = vmul.f32 1.442695, %v2103_v62 }
 0x3da   :  { %3136 = vst [vmem:[%s4830_s10 + $0x48] sm:$0xff] %v3016_v23   ;;  %2328 = vadd.xlane.f32.xlu2 %v4527_v32  ;;  %2038 = vmax.xlane.f32.xlu1 %v4525_v60 }
 0x3db   :  { %3274 = vpow2.f32 %v2202_v27  ;;  %v1910_v28 = vpop.f32.mrf.mxu3  ;;  %v4580_v27 = vld [vmem:[%s4829_s9] ss:$0 sm:$0xff] }
 0x3dc   :  { %3276 = vrcp.f32 %v2301_v29  ;;  %v4557_v31 = vadd.f32 %v4235_v21, %v1910_v28 }
 0x3de   :  { %v2303_v40 = vpop.xlane.xlu1 %2302  ;;  %v2013_v51 = vpop.xlane.xlu0 %2012 }
 0x3df   :  { %3278 = vrcp.f32 %v2303_v40  ;;  %v2104_v25 = vsub.f32 %v4373_v42, %v2013_v51 }
 0x3e1   :  { %v4538_v20 = vpop.eup %3274  ;;  %v2204_v39 = vmul.f32 1.442695, %v2104_v25 }
 0x3e2   :  { %2330 = vadd.xlane.f32.xlu0 %v4538_v20  ;;  %2040 = vmax.xlane.f32.xlu2 %v4536_v16  ;;  %v3277_v63 = vpop.eup %3276 }
 0x3e3   :  { %3280 = vpow2.f32 %v2204_v39  ;;  %v1912_v49 = vpop.f32.mrf.mxu3  ;;  %v2472_v34 = vmul.f32 %v3277_v63, %v4363_v52 }
 0x3e4   :  { %v4567_v61 = vadd.f32 %v4235_v21, %v1912_v49 }
 0x3e5   :  { %v3279_v6 = vpop.eup %3278 }
 0x3e6   :  { %v2473_v56 = vmul.f32 %v3279_v6, %v4375_v59  ;;  %v2305_v30 = vpop.xlane.xlu2 %2304  ;;  %v2015_v42 = vpop.xlane.xlu1 %2014 }
 0x3e7   :  { %v2105_v58 = vsub.f32 %v4386_v43, %v2015_v42 }
 0x3e8   :  { %v3021_v38 = vpack.c.bf16 %v2473_v56, %v2472_v34 }
 0x3e9   :  { %v4548_v4 = vpop.eup %3280  ;;  %v2206_v33 = vmul.f32 1.442695, %v2105_v58 }
 0x3ea   :  { %3137 = vst [vmem:[%s4830_s10 + $0x50] sm:$0xff] %v3021_v38   ;;  %2042 = vmax.xlane.f32.xlu0 %v4546_v35  ;;  %2332 = vadd.xlane.f32.xlu1 %v4548_v4 }
 0x3eb   :  { %3282 = vpow2.f32 %v2206_v33  ;;  %v1915_v52 = vpop.f32.mrf.mxu3 }
 0x3ec   :  { %3284 = vrcp.f32 %v2305_v30  ;;  %v4583_v28 = vadd.f32 %v4580_v27, %v1915_v52 }
 0x3ee   :  { %v2017_v59 = vpop.xlane.xlu2 %2016  ;;  %v2307_v43 = vpop.xlane.xlu0 %2306 }
 0x3ef   :  { %v2106_v55 = vsub.f32 %v4398_v22, %v2017_v59  ;;  %3286 = vrcp.f32 %v2307_v43 }
 0x3f1   :  { %v4559_v18 = vpop.eup %3282  ;;  %v2208_v14 = vmul.f32 1.442695, %v2106_v55 }
 0x3f2   :  { %2334 = vadd.xlane.f32.xlu2 %v4559_v18  ;;  %2044 = vmax.xlane.f32.xlu1 %v4557_v31  ;;  %v3285_v41 = vpop.eup %3284 }
 0x3f3   :  { %3288 = vpow2.f32 %v2208_v14  ;;  %v1917_v53 = vpop.f32.mrf.mxu3  ;;  %v2474_v17 = vmul.f32 %v3285_v41, %v4388_v44 }
 0x3f4   :  { %v4593_v30 = vadd.f32 %v4580_v27, %v1917_v53 }
 0x3f5   :  { %v3287_v5 = vpop.eup %3286 }
 0x3f6   :  { %v2475_v48 = vmul.f32 %v3287_v5, %v4400_v36  ;;  %v2309_v22 = vpop.xlane.xlu1 %2308  ;;  %v2019_v10 = vpop.xlane.xlu0 %2018 }
 0x3f7   :  { %v2107_v15 = vsub.f32 %v4411_v0, %v2019_v10 }
 0x3f8   :  { %v3026_v29 = vpack.c.bf16 %v2475_v48, %v2474_v17 }
 0x3f9   :  { %v4569_v62 = vpop.eup %3288  ;;  %v2210_v23 = vmul.f32 1.442695, %v2107_v15 }
 0x3fa   :  { %3138 = vst [vmem:[%s4830_s10 + $0x58] sm:$0xff] %v3026_v29   ;;  %2336 = vadd.xlane.f32.xlu0 %v4569_v62  ;;  %2046 = vmax.xlane.f32.xlu2 %v4567_v61 }
 0x3fb   :  { %3290 = vpow2.f32 %v2210_v23  ;;  %v1920_v44 = vpop.f32.mrf.mxu3 }
 0x3fc   :  { %3292 = vrcp.f32 %v2309_v22  ;;  %v4604_v52 = vadd.f32 %v4580_v27, %v1920_v44 }
 0x3fe   :  { %v2311_v36 = vpop.xlane.xlu2 %2310  ;;  %v2021_v0 = vpop.xlane.xlu1 %2020 }
 0x3ff   :  { %3294 = vrcp.f32 %v2311_v36  ;;  %v2108_v21 = vsub.f32 %v4423_v45, %v2021_v0 }
 0x401   :  { %v4585_v40 = vpop.eup %3290  ;;  %v2212_v51 = vmul.f32 1.442695, %v2108_v21 }
 0x402   :  { %2048 = vmax.xlane.f32.xlu0 %v4583_v28  ;;  %2338 = vadd.xlane.f32.xlu1 %v4585_v40  ;;  %v3293_v25 = vpop.eup %3292 }
 0x403   :  { %3296 = vpow2.f32 %v2212_v51  ;;  %v1922_v39 = vpop.f32.mrf.mxu3  ;;  %v2476_v45 = vmul.f32 %v3293_v25, %v4413_v12 }
 0x405   :  { %v3295_v63 = vpop.eup %3294 }
 0x406   :  { %v2477_v49 = vmul.f32 %v3295_v63, %v4425_v19  ;;  %v2023_v6 = vpop.xlane.xlu2 %2022  ;;  %v2313_v34 = vpop.xlane.xlu0 %2312 }
 0x407   :  { %v2109_v56 = vsub.f32 %v4434_v57, %v2023_v6 }
 0x408   :  { %v3031_v42 = vpack.c.bf16 %v2477_v49, %v2476_v45 }
 0x409   :  { %v4595_v58 = vpop.eup %3296  ;;  %v2214_v38 = vmul.f32 1.442695, %v2109_v56 }
 0x40a   :  { %3139 = vst [vmem:[%s4830_s10 + $0x60] sm:$0xff] %v3031_v42   ;;  %2340 = vadd.xlane.f32.xlu2 %v4595_v58  ;;  %2050 = vmax.xlane.f32.xlu1 %v4593_v30 }
 0x40b   :  { %3298 = vpow2.f32 %v2214_v38  ;;  %v1925_v12 = vpop.f32.mrf.mxu3 }
 0x40c   :  { %3300 = vrcp.f32 %v2313_v34  ;;  %v4630_v23 = vadd.f32 %v4580_v27, %v1925_v12 }
 0x40e   :  { %v2315_v19 = vpop.xlane.xlu1 %2314  ;;  %v2025_v57 = vpop.xlane.xlu0 %2024 }
 0x40f   :  { %3302 = vrcp.f32 %v2315_v19  ;;  %v2110_v33 = vsub.f32 %v4448_v47, %v2025_v57  ;;  %v4613_v47 = vadd.f32 %v4580_v27, %v1922_v39 }
 0x411   :  { %v4606_v59 = vpop.eup %3298  ;;  %v2216_v43 = vmul.f32 1.442695, %v2110_v33 }
 0x412   :  { %2342 = vadd.xlane.f32.xlu0 %v4606_v59  ;;  %2052 = vmax.xlane.f32.xlu2 %v4604_v52  ;;  %v3301_v55 = vpop.eup %3300 }
 0x413   :  { %3304 = vpow2.f32 %v2216_v43  ;;  %v1927_v14 = vpop.f32.mrf.mxu3  ;;  %v2478_v53 = vmul.f32 %v3301_v55, %v4438_v9 }
 0x414   :  { %v4616_v48 = vadd.f32 %v4580_v27, %v1927_v14 }
 0x415   :  { %v3303_v41 = vpop.eup %3302 }
 0x416   :  { %v2479_v5 = vmul.f32 %v3303_v41, %v4450_v50  ;;  %v2317_v10 = vpop.xlane.xlu2 %2316  ;;  %v2027_v50 = vpop.xlane.xlu1 %2026 }
 0x417   :  { %3306 = vrcp.f32 %v2317_v10  ;;  %v2111_v25 = vsub.f32 %v4459_v54, %v2027_v50 }
 0x418   :  { %v3036_v17 = vpack.c.bf16 %v2479_v5, %v2478_v53 }
 0x419   :  { %v4618_v22 = vpop.eup %3304  ;;  %v2218_v42 = vmul.f32 1.442695, %v2111_v25 }
 0x41a   :  { %3140 = vst [vmem:[%s4830_s10 + $0x68] sm:$0xff] %v3036_v17   ;;  %2054 = vmax.xlane.f32.xlu0 %v4613_v47  ;;  %2058 = vmax.xlane.f32.xlu2 %v4616_v48 }
 0x41b   :  { %v1930_v9 = vpop.f32.mrf.mxu3  ;;  %2344 = vadd.xlane.f32.xlu1 %v4618_v22 }
 0x41c   :  { %v4627_v29 = vadd.f32 %v4580_v27, %v1930_v9 }
 0x41d   :  { %v3307_v44 = vpop.eup %3306 }
 0x41e   :  { %v2319_v15 = vpop.xlane.xlu0 %2318  ;;  %v2029_v21 = vpop.xlane.xlu2 %2028  ;;  %v2480_v51 = vmul.f32 %v3307_v44, %v4463_v1 }
 0x41f   :  { %3308 = vrcp.f32 %v2319_v15 }
 0x422   :  { %2060 = vmax.xlane.f32.xlu0 %v4627_v29 }
 0x423   :  { %v1932_v36 = vpop.f32.mrf.mxu3  ;;  %2056 = vmax.xlane.f32.xlu1 %v4630_v23 }
 0x424   :  { %v4639_v34 = vadd.f32 %v4580_v27, %v1932_v36 }
 0x425   :  { %v3309_v0 = vpop.eup %3308 }
 0x426   :  { %v2481_v39 = vmul.f32 %v3309_v0, %v4475_v2  ;;  %v2321_v63 = vpop.xlane.xlu1 %2320  ;;  %v2031_v45 = vpop.xlane.xlu0 %2030  ;;  %v2112_v2 = vsub.f32 %v4473_v3, %v2029_v21 }
 0x427   :  { %v2113_v49 = vsub.f32 %v4483_v26, %v2031_v45 }
 0x428   :  { %v3041_v6 = vpack.c.bf16 %v2481_v39, %v2480_v51  ;;  %v2220_v57 = vmul.f32 1.442695, %v2112_v2 }
 0x429   :  { %v2222_v56 = vmul.f32 1.442695, %v2113_v49 }
 0x42a   :  { %3141 = vst [vmem:[%s4830_s10 + $0x70] sm:$0xff] %v3041_v6  }
 0x42b   :  { %3310 = vpow2.f32 %v2222_v56  ;;  %v1935_v1 = vpop.f32.mrf.mxu3  ;;  %2062 = vmax.xlane.f32.xlu1 %v4639_v34 }
 0x42c   :  { %v4646_v54 = vadd.f32 %v4580_v27, %v1935_v1  ;;  %3312 = vrcp.f32 %v2321_v63 }
 0x42d   :  { %3314 = vpow2.f32 %v2218_v42 }
 0x42e   :  { %2064 = vmax.xlane.f32.xlu2 %v4646_v54  ;;  %v2323_v26 = vpop.xlane.xlu2 %2322  ;;  %v2033_v38 = vpop.xlane.xlu1 %2032 }
 0x42f   :  { %3316 = vrcp.f32 %v2323_v26  ;;  %v2114_v12 = vsub.f32 %v4493_v37, %v2033_v38 }
 0x430   :  { %3318 = vpow2.f32 %v2220_v57 }
 0x431   :  { %v4651_v19 = vpop.eup %3310  ;;  %v2224_v43 = vmul.f32 1.442695, %v2114_v12 }
 0x432   :  { %v3313_v33 = vpop.eup %3312 }
 0x433   :  { %v1937_v55 = vpop.f32.mrf.mxu3  ;;  %2350 = vadd.xlane.f32.xlu1 %v4651_v19  ;;  %v4654_v14 = vpop.eup %3314  ;;  %v2482_v53 = vmul.f32 %v3313_v33, %v4485_v11  ;;  %3320 = vpow2.f32 %v2224_v43 }
 0x434   :  { %v4657_v41 = vadd.f32 %v4580_v27, %v1937_v55 }
 0x435   :  { %v3317_v3 = vpop.eup %3316 }
 0x436   :  { %v2483_v5 = vmul.f32 %v3317_v3, %v4495_v13  ;;  %2066 = vmax.xlane.f32.xlu0 %v4657_v41  ;;  %2346 = vadd.xlane.f32.xlu2 %v4654_v14  ;;  %v2035_v37 = vpop.xlane.xlu2 %2034  ;;  %v4667_v9 = vpop.eup %3318 }
 0x437   :  { %v2115_v17 = vsub.f32 %v4501_v24, %v2035_v37 }
 0x438   :  { %v3046_v10 = vpack.c.bf16 %v2483_v5, %v2482_v53 }
 0x439   :  { %v2226_v27 = vmul.f32 1.442695, %v2115_v17  ;;  %v4669_v50 = vpop.eup %3320 }
 0x43a   :  { %3142 = vst [vmem:[%s4830_s10 + $0x78] sm:$0xff] %v3046_v10  }
 0x43b   :  { %3322 = vpow2.f32 %v2226_v27 }
 0x43d   :  { %v2325_v11 = vpop.xlane.xlu0 %2324 }
 0x43e   :  { %2348 = vadd.xlane.f32.xlu0 %v4667_v9  ;;  %2352 = vadd.xlane.f32.xlu2 %v4669_v50  ;;  %3324 = vrcp.f32 %v2325_v11 }
 0x441   :  { %v4673_v13 = vpop.eup %3322 }
 0x444   :  { %v3325_v0 = vpop.eup %3324 }
 0x445   :  { %v2327_v24 = vpop.xlane.xlu1 %2326  ;;  %v2037_v15 = vpop.xlane.xlu0 %2036  ;;  %v2484_v51 = vmul.f32 %v3325_v0, %v4507_v8 }
 0x446   :  { %2354 = vadd.xlane.f32.xlu0 %v4673_v13  ;;  %3326 = vrcp.f32 %v2327_v24  ;;  %v2116_v44 = vsub.f32 %v4515_v7, %v2037_v15 }
 0x448   :  { %v2228_v36 = vmul.f32 1.442695, %v2116_v44 }
 0x44a   :  { %3328 = vpow2.f32 %v2228_v36 }
 0x44c   :  { %v3327_v21 = vpop.eup %3326 }
 0x44d   :  { %v2485_v25 = vmul.f32 %v3327_v21, %v4517_v46  ;;  %v2329_v39 = vpop.xlane.xlu2 %2328  ;;  %v2039_v63 = vpop.xlane.xlu1 %2038 }
 0x44e   :  { %v2117_v45 = vsub.f32 %v4525_v60, %v2039_v63 }
 0x44f   :  { %v3051_v49 = vpack.c.bf16 %v2485_v25, %v2484_v51 }
 0x450   :  { %v4680_v6 = vpop.eup %3328  ;;  %v2230_v56 = vmul.f32 1.442695, %v2117_v45 }
 0x451   :  { %3143 = vst [vmem:[%s4830_s10 + $0x80] sm:$0xff] %v3051_v49   ;;  %2356 = vadd.xlane.f32.xlu1 %v4680_v6 }
 0x452   :  { %3330 = vpow2.f32 %v2230_v56 }
 0x453   :  { %3332 = vrcp.f32 %v2329_v39 }
 0x455   :  { %v2041_v7 = vpop.xlane.xlu2 %2040  ;;  %v2331_v8 = vpop.xlane.xlu0 %2330 }
 0x456   :  { %v2118_v46 = vsub.f32 %v4536_v16, %v2041_v7  ;;  %3334 = vrcp.f32 %v2331_v8 }
 0x458   :  { %v4687_v42 = vpop.eup %3330  ;;  %v2232_v60 = vmul.f32 1.442695, %v2118_v46 }
 0x459   :  { %2358 = vadd.xlane.f32.xlu2 %v4687_v42  ;;  %v3333_v1 = vpop.eup %3332 }
 0x45a   :  { %3336 = vpow2.f32 %v2232_v60  ;;  %v2486_v26 = vmul.f32 %v3333_v1, %v4527_v32 }
 0x45c   :  { %v3335_v2 = vpop.eup %3334 }
 0x45d   :  { %v2487_v38 = vmul.f32 %v3335_v2, %v4538_v20  ;;  %v2333_v12 = vpop.xlane.xlu1 %2332  ;;  %v2043_v57 = vpop.xlane.xlu0 %2042 }
 0x45e   :  { %v2119_v33 = vsub.f32 %v4546_v35, %v2043_v57 }
 0x45f   :  { %v3056_v43 = vpack.c.bf16 %v2487_v38, %v2486_v26 }
 0x460   :  { %v4693_v55 = vpop.eup %3336  ;;  %v2234_v16 = vmul.f32 1.442695, %v2119_v33 }
 0x461   :  { %3144 = vst [vmem:[%s4830_s10 + $0x88] sm:$0xff] %v3056_v43   ;;  %2360 = vadd.xlane.f32.xlu0 %v4693_v55 }
 0x462   :  { %3338 = vpow2.f32 %v2234_v16 }
 0x463   :  { %3340 = vrcp.f32 %v2333_v12 }
 0x465   :  { %v2335_v3 = vpop.xlane.xlu2 %2334  ;;  %v2045_v32 = vpop.xlane.xlu1 %2044 }
 0x466   :  { %3342 = vrcp.f32 %v2335_v3  ;;  %v2120_v20 = vsub.f32 %v4557_v31, %v2045_v32 }
 0x468   :  { %v4700_v53 = vpop.eup %3338  ;;  %v2236_v35 = vmul.f32 1.442695, %v2120_v20 }
 0x469   :  { %2362 = vadd.xlane.f32.xlu1 %v4700_v53  ;;  %v3341_v5 = vpop.eup %3340 }
 0x46a   :  { %3344 = vpow2.f32 %v2236_v35  ;;  %v2488_v17 = vmul.f32 %v3341_v5, %v4548_v4 }
 0x46c   :  { %v3343_v37 = vpop.eup %3342 }
 0x46d   :  { %v2489_v10 = vmul.f32 %v3343_v37, %v4559_v18  ;;  %v2047_v27 = vpop.xlane.xlu2 %2046  ;;  %v2337_v11 = vpop.xlane.xlu0 %2336 }
 0x46e   :  { %v2121_v24 = vsub.f32 %v4567_v61, %v2047_v27 }
 0x46f   :  { %v3061_v15 = vpack.c.bf16 %v2489_v10, %v2488_v17 }
 0x470   :  { %v4706_v44 = vpop.eup %3344  ;;  %v2238_v31 = vmul.f32 1.442695, %v2121_v24 }
 0x471   :  { %3145 = vst [vmem:[%s4830_s10 + $0x90] sm:$0xff] %v3061_v15   ;;  %2364 = vadd.xlane.f32.xlu2 %v4706_v44 }
 0x472   :  { %3346 = vpow2.f32 %v2238_v31 }
 0x473   :  { %3348 = vrcp.f32 %v2337_v11 }
 0x475   :  { %v2339_v36 = vpop.xlane.xlu1 %2338  ;;  %v2049_v4 = vpop.xlane.xlu0 %2048 }
 0x476   :  { %3350 = vrcp.f32 %v2339_v36  ;;  %v2122_v18 = vsub.f32 %v4583_v28, %v2049_v4 }
 0x478   :  { %v4713_v0 = vpop.eup %3346  ;;  %v2240_v61 = vmul.f32 1.442695, %v2122_v18 }
 0x479   :  { %2366 = vadd.xlane.f32.xlu0 %v4713_v0  ;;  %v3349_v21 = vpop.eup %3348 }
 0x47a   :  { %3352 = vpow2.f32 %v2240_v61  ;;  %v2490_v25 = vmul.f32 %v3349_v21, %v4569_v62 }
 0x47c   :  { %v3351_v51 = vpop.eup %3350 }
 0x47d   :  { %v2491_v39 = vmul.f32 %v3351_v51, %v4585_v40  ;;  %v2341_v63 = vpop.xlane.xlu2 %2340  ;;  %v2051_v45 = vpop.xlane.xlu1 %2050 }
 0x47e   :  { %v2123_v49 = vsub.f32 %v4593_v30, %v2051_v45 }
 0x47f   :  { %v3066_v56 = vpack.c.bf16 %v2491_v39, %v2490_v25 }
 0x480   :  { %v4719_v7 = vpop.eup %3352  ;;  %v2242_v28 = vmul.f32 1.442695, %v2123_v49 }
 0x481   :  { %3146 = vst [vmem:[%s4830_s10 + $0x98] sm:$0xff] %v3066_v56   ;;  %2368 = vadd.xlane.f32.xlu1 %v4719_v7 }
 0x482   :  { %3354 = vpow2.f32 %v2242_v28 }
 0x483   :  { %3356 = vrcp.f32 %v2341_v63 }
 0x485   :  { %v2053_v8 = vpop.xlane.xlu2 %2052  ;;  %v2343_v62 = vpop.xlane.xlu0 %2342 }
 0x486   :  { %v2124_v40 = vsub.f32 %v4604_v52, %v2053_v8  ;;  %3358 = vrcp.f32 %v2343_v62 }
 0x488   :  { %v4726_v46 = vpop.eup %3354  ;;  %v2244_v30 = vmul.f32 1.442695, %v2124_v40 }
 0x489   :  { %2370 = vadd.xlane.f32.xlu2 %v4726_v46  ;;  %v3357_v60 = vpop.eup %3356 }
 0x48a   :  { %3360 = vpow2.f32 %v2244_v30  ;;  %v2492_v2 = vmul.f32 %v3357_v60, %v4595_v58 }
 0x48c   :  { %v3359_v1 = vpop.eup %3358 }
 0x48d   :  { %v2493_v26 = vmul.f32 %v3359_v1, %v4606_v59  ;;  %v2059_v38 = vpop.xlane.xlu2 %2058  ;;  %v2055_v12 = vpop.xlane.xlu0 %2054 }
 0x48e   :  { %v2127_v57 = vsub.f32 %v4616_v48, %v2059_v38  ;;  %v2345_v33 = vpop.xlane.xlu1 %2344  ;;  %v2125_v52 = vsub.f32 %v4613_v47, %v2055_v12 }
 0x48f   :  { %v3071_v43 = vpack.c.bf16 %v2493_v26, %v2492_v2 }
 0x490   :  { %v4733_v16 = vpop.eup %3360  ;;  %v2250_v3 = vmul.f32 1.442695, %v2127_v57  ;;  %v2246_v32 = vmul.f32 1.442695, %v2125_v52 }
 0x491   :  { %3147 = vst [vmem:[%s4830_s10 + $0xa0] sm:$0xff] %v3071_v43   ;;  %2372 = vadd.xlane.f32.xlu0 %v4733_v16 }
 0x492   :  { %3362 = vpow2.f32 %v2250_v3 }
 0x493   :  { %3364 = vpow2.f32 %v2246_v32 }
 0x495   :  { %v2061_v58 = vpop.xlane.xlu0 %2060 }
 0x496   :  { %v2057_v59 = vpop.xlane.xlu1 %2056  ;;  %v2128_v48 = vsub.f32 %v4627_v29, %v2061_v58 }
 0x497   :  { %v2126_v20 = vsub.f32 %v4630_v23, %v2057_v59 }
 0x498   :  { %v4741_v47 = vpop.eup %3362  ;;  %v2252_v35 = vmul.f32 1.442695, %v2128_v48 }
 0x499   :  { %v4743_v5 = vpop.eup %3364  ;;  %v2248_v37 = vmul.f32 1.442695, %v2126_v20  ;;  %2378 = vadd.xlane.f32.xlu0 %v4741_v47 }
 0x49a   :  { %3366 = vpow2.f32 %v2252_v35  ;;  %2374 = vadd.xlane.f32.xlu1 %v4743_v5 }
 0x49b   :  { %3368 = vpow2.f32 %v2248_v37 }
 0x49e   :  { %v2063_v17 = vpop.xlane.xlu1 %2062 }
 0x49f   :  { %v2129_v10 = vsub.f32 %v4639_v34, %v2063_v17 }
 0x4a0   :  { %v4748_v27 = vpop.eup %3366 }
 0x4a1   :  { %v4750_v29 = vpop.eup %3368  ;;  %v2254_v23 = vmul.f32 1.442695, %v2129_v10  ;;  %v2065_v11 = vpop.xlane.xlu2 %2064 }
 0x4a2   :  { %v2130_v24 = vsub.f32 %v4646_v54, %v2065_v11  ;;  %2376 = vadd.xlane.f32.xlu2 %v4750_v29  ;;  %2380 = vadd.xlane.f32.xlu1 %v4748_v27 }
 0x4a3   :  { %3370 = vpow2.f32 %v2254_v23 }
 0x4a4   :  { %v2256_v15 = vmul.f32 1.442695, %v2130_v24 }
 0x4a6   :  { %3372 = vpow2.f32 %v2256_v15  ;;  %v2351_v21 = vpop.xlane.xlu1 %2350 }
 0x4a7   :  { %3374 = vrcp.f32 %v2345_v33 }
 0x4a9   :  { %v4755_v31 = vpop.eup %3370  ;;  %v2347_v36 = vpop.xlane.xlu2 %2346 }
 0x4aa   :  { %v2067_v34 = vpop.xlane.xlu0 %2066  ;;  %3376 = vrcp.f32 %v2347_v36  ;;  %2382 = vadd.xlane.f32.xlu2 %v4755_v31 }
 0x4ab   :  { %v2131_v4 = vsub.f32 %v4657_v41, %v2067_v34 }
 0x4ac   :  { %v4759_v18 = vpop.eup %3372 }
 0x4ad   :  { %v2258_v54 = vmul.f32 1.442695, %v2131_v4  ;;  %2384 = vadd.xlane.f32.xlu0 %v4759_v18  ;;  %v3375_v61 = vpop.eup %3374 }
 0x4ae   :  { %v2494_v25 = vmul.f32 %v3375_v61, %v4618_v22 }
 0x4af   :  { %3378 = vpow2.f32 %v2258_v54 }
 0x4b0   :  { %v3377_v51 = vpop.eup %3376  ;;  %3380 = vrcp.f32 %v2351_v21 }
 0x4b1   :  { %v2495_v39 = vmul.f32 %v3377_v51, %v4654_v14  ;;  %v2353_v49 = vpop.xlane.xlu2 %2352 }
 0x4b2   :  { %v2349_v63 = vpop.xlane.xlu0 %2348 }
 0x4b3   :  { %v3076_v45 = vpack.c.bf16 %v2495_v39, %v2494_v25  ;;  %3382 = vrcp.f32 %v2349_v63 }
 0x4b4   :  { %3384 = vrcp.f32 %v2353_v49 }
 0x4b5   :  { %v4764_v41 = vpop.eup %3378  ;;  %3148 = vst [vmem:[%s4830_s10 + $0xa8] sm:$0xff] %v3076_v45  }
 0x4b6   :  { %2386 = vadd.xlane.f32.xlu1 %v4764_v41  ;;  %v3381_v56 = vpop.eup %3380 }
 0x4b7   :  { %v2497_v22 = vmul.f32 %v3381_v56, %v4651_v19 }
 0x4b9   :  { %v3383_v28 = vpop.eup %3382 }
 0x4ba   :  { %v2355_v8 = vpop.xlane.xlu0 %2354  ;;  %v2496_v14 = vmul.f32 %v3383_v28, %v4667_v9  ;;  %v3385_v40 = vpop.eup %3384 }
 0x4bb   :  { %3386 = vrcp.f32 %v2355_v8  ;;  %v2498_v60 = vmul.f32 %v3385_v40, %v4669_v50 }
 0x4bc   :  { %v3081_v62 = vpack.c.bf16 %v2497_v22, %v2496_v14 }
 0x4be   :  { %3149 = vst [vmem:[%s4830_s10 + $0xb0] sm:$0xff] %v3081_v62  }
 0x4c1   :  { %v3387_v30 = vpop.eup %3386 }
 0x4c2   :  { %v2499_v1 = vmul.f32 %v3387_v30, %v4673_v13 }
 0x4c4   :  { %v3086_v2 = vpack.c.bf16 %v2499_v1, %v2498_v60  ;;  %v2357_v19 = vpop.xlane.xlu1 %2356 }
 0x4c5   :  { %3388 = vrcp.f32 %v2357_v19 }
 0x4c6   :  { %3150 = vst [vmem:[%s4830_s10 + $0xb8] sm:$0xff] %v3086_v2  }
 0x4cb   :  { %v3389_v26 = vpop.eup %3388 }
 0x4cc   :  { %v2359_v9 = vpop.xlane.xlu2 %2358  ;;  %v2500_v12 = vmul.f32 %v3389_v26, %v4680_v6 }
 0x4cd   :  { %3390 = vrcp.f32 %v2359_v9 }
 0x4d3   :  { %v3391_v38 = vpop.eup %3390 }
 0x4d4   :  { %v2501_v57 = vmul.f32 %v3391_v38, %v4687_v42  ;;  %v2361_v50 = vpop.xlane.xlu0 %2360 }
 0x4d5   :  { %3392 = vrcp.f32 %v2361_v50 }
 0x4d6   :  { %v3091_v33 = vpack.c.bf16 %v2501_v57, %v2500_v12 }
 0x4d8   :  { %3151 = vst [vmem:[%s4830_s10 + $0xc0] sm:$0xff] %v3091_v33  }
 0x4db   :  { %v3393_v52 = vpop.eup %3392 }
 0x4dc   :  { %v2363_v13 = vpop.xlane.xlu1 %2362  ;;  %v2502_v3 = vmul.f32 %v3393_v52, %v4693_v55 }
 0x4dd   :  { %3394 = vrcp.f32 %v2363_v13 }
 0x4e3   :  { %v3395_v43 = vpop.eup %3394 }
 0x4e4   :  { %v2503_v32 = vmul.f32 %v3395_v43, %v4700_v53  ;;  %v2365_v6 = vpop.xlane.xlu2 %2364 }
 0x4e5   :  { %3396 = vrcp.f32 %v2365_v6 }
 0x4e6   :  { %v3096_v58 = vpack.c.bf16 %v2503_v32, %v2502_v3 }
 0x4e8   :  { %3152 = vst [vmem:[%s4830_s10 + $0xc8] sm:$0xff] %v3096_v58  }
 0x4eb   :  { %v3397_v59 = vpop.eup %3396 }
 0x4ec   :  { %v2367_v42 = vpop.xlane.xlu0 %2366  ;;  %v2504_v20 = vmul.f32 %v3397_v59, %v4706_v44 }
 0x4ed   :  { %3398 = vrcp.f32 %v2367_v42 }
 0x4f3   :  { %v3399_v48 = vpop.eup %3398 }
 0x4f4   :  { %v2505_v35 = vmul.f32 %v3399_v48, %v4713_v0  ;;  %v2369_v55 = vpop.xlane.xlu1 %2368 }
 0x4f5   :  { %3400 = vrcp.f32 %v2369_v55 }
 0x4f6   :  { %v3101_v37 = vpack.c.bf16 %v2505_v35, %v2504_v20 }
 0x4f8   :  { %3153 = vst [vmem:[%s4830_s10 + $0xd0] sm:$0xff] %v3101_v37  }
 0x4fb   :  { %v3401_v17 = vpop.eup %3400 }
 0x4fc   :  { %v2371_v53 = vpop.xlane.xlu2 %2370  ;;  %v2506_v23 = vmul.f32 %v3401_v17, %v4719_v7 }
 0x4fd   :  { %3402 = vrcp.f32 %v2371_v53 }
 0x503   :  { %v3403_v10 = vpop.eup %3402 }
 0x504   :  { %v2507_v11 = vmul.f32 %v3403_v10, %v4726_v46  ;;  %v2373_v15 = vpop.xlane.xlu0 %2372 }
 0x505   :  { %3404 = vrcp.f32 %v2373_v15 }
 0x506   :  { %v3106_v24 = vpack.c.bf16 %v2507_v11, %v2506_v23 }
 0x508   :  { %3154 = vst [vmem:[%s4830_s10 + $0xd8] sm:$0xff] %v3106_v24  }
 0x50b   :  { %v3405_v36 = vpop.eup %3404 }
 0x50c   :  { %v2379_v0 = vpop.xlane.xlu0 %2378  ;;  %v2508_v4 = vmul.f32 %v3405_v36, %v4733_v16 }
 0x50d   :  { %v2375_v44 = vpop.xlane.xlu1 %2374 }
 0x50e   :  { %3406 = vrcp.f32 %v2375_v44 }
 0x50f   :  { %3408 = vrcp.f32 %v2379_v0 }
 0x514   :  { %v3407_v34 = vpop.eup %3406 }
 0x515   :  { %v2509_v54 = vmul.f32 %v3407_v34, %v4743_v5  ;;  %v2377_v7 = vpop.xlane.xlu2 %2376  ;;  %v2381_v61 = vpop.xlane.xlu1 %2380 }
 0x516   :  { %3410 = vrcp.f32 %v2377_v7  ;;  %v3409_v21 = vpop.eup %3408 }
 0x517   :  { %v3111_v46 = vpack.c.bf16 %v2509_v54, %v2508_v4  ;;  %3412 = vrcp.f32 %v2381_v61  ;;  %v2511_v25 = vmul.f32 %v3409_v21, %v4741_v47 }
 0x519   :  { %3155 = vst [vmem:[%s4830_s10 + $0xe0] sm:$0xff] %v3111_v46  }
 0x51c   :  { %v3411_v51 = vpop.eup %3410 }
 0x51d   :  { %v2510_v39 = vmul.f32 %v3411_v51, %v4750_v29  ;;  %v2383_v63 = vpop.xlane.xlu2 %2382  ;;  %v3413_v5 = vpop.eup %3412 }
 0x51e   :  { %3414 = vrcp.f32 %v2383_v63  ;;  %v2512_v56 = vmul.f32 %v3413_v5, %v4748_v27 }
 0x51f   :  { %v3116_v16 = vpack.c.bf16 %v2511_v25, %v2510_v39 }
 0x520   :  { %v2385_v49 = vpop.xlane.xlu0 %2384 }
 0x521   :  { %3156 = vst [vmem:[%s4830_s10 + $0xe8] sm:$0xff] %v3116_v16   ;;  %3416 = vrcp.f32 %v2385_v49 }
 0x524   :  { %v3415_v45 = vpop.eup %3414 }
 0x525   :  { %v2513_v28 = vmul.f32 %v3415_v45, %v4755_v31 }
 0x527   :  { %v3121_v8 = vpack.c.bf16 %v2513_v28, %v2512_v56  ;;  %v3417_v47 = vpop.eup %3416 }
 0x528   :  { %v2514_v14 = vmul.f32 %v3417_v47, %v4759_v18 }
 0x529   :  { %v2387_v22 = vpop.xlane.xlu1 %2386  ;;  %3157 = vst [vmem:[%s4830_s10 + $0xf0] sm:$0xff] %v3121_v8  }
 0x52a   :  { %3418 = vrcp.f32 %v2387_v22 }
 0x530   :  { %v3419_v29 = vpop.eup %3418 }
 0x531   :  { %v2515_v62 = vmul.f32 %v3419_v29, %v4764_v41 }
 0x533   :  { %v3126_v40 = vpack.c.bf16 %v2515_v62, %v2514_v14 }
 0x535   :  { %3158 = vst [vmem:[%s4830_s10 + $0xf8] sm:$0xff] %v3126_v40  }
 0x536   :  { %2648 = vsyncpa [#allocation3], 1 }

</bundles_post_ra>
